<compile_context>
chip_gen: v6e
topology: v6e:2x2x1
jax: 0.10.0
libtpu: 0.0.40
codegen_flags: <defaults>
</compile_context>

<pallas_src>
import functools

import jax
import jax.numpy as jnp
from jax.experimental import pallas as pl
from jax.experimental.pallas import tpu as pltpu

EPS = 1e-5
KERNEL1 = 50     # conv1 kernel size
STRIDE1 = 6      # conv1 stride
POOL1 = 8        # maxpool1 kernel/stride
POOL2 = 4        # maxpool2 kernel/stride
C_OUT = 8        # conv2/3/4 output channels

WIN = STRIDE1 * (POOL1 - 1) + KERNEL1     # signal window feeding one pool1 window (= 92)
TB_STRIDE = STRIDE1 * POOL1               # signal stride between pool1 windows (= 48)
PADK = 128                                # window width padded to one full lane group


# ---------------------------------------------------------------------------
# Fused Pallas kernel
# ---------------------------------------------------------------------------
def _fused_kernel(sig_ref, wb_ref, b1_ref, w2_ref, b2_ref,
                  w3_ref, b3_ref, w4_ref, b4_ref, o_ref, act_ref,
                  *, c1, l2, rows):
    """conv1+bn1+relu+pool1 -> batched 1x1 chain -> pool2 for one row block."""
    wb = wb_ref[...]                      # (PADK, POOL1*c1) bf16, banded conv1 weight (BN folded)
    b1 = b1_ref[...]                      # (1, c1) f32
    w2, b2 = w2_ref[...], b2_ref[...]
    w3, b3 = w3_ref[...], b3_ref[...]
    w4, b4 = w4_ref[...], b4_ref[...]

    t = l2 * POOL2                        # number of pool1 windows used by pool2

    # conv1 + bn1(+fold) + bias + relu + maxpool1: one banded bf16 MXU matmul
    # per pool1 window; each read is a lane-group-aligned 128-wide slice.
    for tb in range(t):
        xw = sig_ref[:, tb * PADK:(tb + 1) * PADK]                   # (rows, 128) bf16
        h = jnp.dot(xw, wb, preferred_element_type=jnp.float32)      # (rows, POOL1*c1) f32
        m = h[:, 0:c1]
        for u in range(1, POOL1):
            m = jnp.maximum(m, h[:, u * c1:(u + 1) * c1])
        # bias + relu commute with the max (same bias for every window position).
        act_ref[tb * rows:(tb + 1) * rows, :] = jnp.maximum(m + b1, 0.0)

    # Batched 1x1-conv chain (BN folded): 3 matmuls with M = t*rows instead of
    # 3*t tiny N=8 matmuls.
    a = act_ref[...]                                                 # (t*rows, c1) f32
    a = jnp.maximum(jnp.dot(a, w2, preferred_element_type=jnp.float32) + b2, 0.0)
    a = jnp.maximum(jnp.dot(a, w3, preferred_element_type=jnp.float32) + b3, 0.0)
    a = jnp.maximum(jnp.dot(a, w4, preferred_element_type=jnp.float32) + b4, 0.0)

    # maxpool2 over POOL2 consecutive pool1 windows (sublane-block slices).
    chunks = []
    for j in range(l2):
        cur = a[j * POOL2 * rows:(j * POOL2 + 1) * rows, :]
        for u in range(1, POOL2):
            cur = jnp.maximum(cur, a[(j * POOL2 + u) * rows:(j * POOL2 + u + 1) * rows, :])
        chunks.append(cur)                                           # (rows, C_OUT)

    # j-major output: out[:, j*C_OUT + c].  NCW-flatten reorder happens in the wrapper.
    o_ref[...] = jnp.concatenate(chunks, axis=1)                     # (rows, l2*C_OUT)


def _fused_cnn(sigw, fp, l2, row_block):
    n = sigw.shape[0]
    c1 = fp['w2'].shape[0]
    t = l2 * POOL2
    f = l2 * C_OUT                        # j-major feature width

    nt = n if n < row_block else row_block
    grid = (pl.cdiv(n, nt),)
    kernel = functools.partial(_fused_kernel, c1=c1, l2=l2, rows=nt)

    # Constant index_maps keep wb / biases / 1x1 weights resident across the
    # row grid (no per-step re-DMA of parameters).
    return pl.pallas_call(
        kernel,
        out_shape=jax.ShapeDtypeStruct((n, f), jnp.float32),
        grid=grid,
        in_specs=[
            pl.BlockSpec((nt, t * PADK), lambda i: (i, 0)),
            pl.BlockSpec((PADK, POOL1 * c1), lambda i: (0, 0)),
            pl.BlockSpec((1, c1), lambda i: (0, 0)),
            pl.BlockSpec((c1, C_OUT), lambda i: (0, 0)),
            pl.BlockSpec((1, C_OUT), lambda i: (0, 0)),
            pl.BlockSpec((C_OUT, C_OUT), lambda i: (0, 0)),
            pl.BlockSpec((1, C_OUT), lambda i: (0, 0)),
            pl.BlockSpec((C_OUT, C_OUT), lambda i: (0, 0)),
            pl.BlockSpec((1, C_OUT), lambda i: (0, 0)),
        ],
        out_specs=pl.BlockSpec((nt, f), lambda i: (i, 0)),
        scratch_shapes=[pltpu.VMEM((t * nt, c1), jnp.float32)],
        compiler_params=pltpu.CompilerParams(dimension_semantics=("parallel",)),
    )(sigw, fp['wb'], fp['b1'], fp['w2'], fp['b2'],
      fp['w3'], fp['b3'], fp['w4'], fp['b4'])


@functools.partial(jax.jit, static_argnames=("row_block",))
def tinysleepnet_cnn_forward(x, fp, row_block=128):
    """x: (B, S, 1, L) float32 -> (B, S, 8*L2) in PyTorch NCW-flatten order."""
    b, s, _, length = x.shape
    n = b * s
    sig = x.reshape(n, length)            # the chunk/cat prologue == reshape

    l_out = (length - KERNEL1) // STRIDE1 + 1
    l1 = l_out // POOL1
    l2 = l1 // POOL2
    if l2 < 1:
        raise ValueError("input length too short for conv1 + pool1 + pool2")
    t = l2 * POOL2

    # Pre-window the signal once in XLA: one 92-sample window per pool1
    # window, zero-padded to 128 lanes, cast to bf16 for the native MXU path.
    idx = jnp.arange(t)[:, None] * TB_STRIDE + jnp.arange(WIN)[None, :]   # (t, WIN)
    wins = sig[:, idx]                                                    # (n, t, WIN)
    wins = jnp.pad(wins, ((0, 0), (0, 0), (0, PADK - WIN)))               # (n, t, 128)
    sigw = wins.reshape(n, t * PADK).astype(jnp.bfloat16)

    feat_j = _fused_cnn(sigw, fp, l2, row_block)                          # (n, l2*8) j-major
    # PyTorch flatten of (N, C=8, L2): feature index = c*l2 + j.
    feat = feat_j.reshape(n, l2, C_OUT).transpose(0, 2, 1).reshape(n, C_OUT * l2)
    return feat.reshape(b, s, C_OUT * l2)


# ---------------------------------------------------------------------------
# Parameters
# ---------------------------------------------------------------------------
def init_params(key, conv1_ch=128):
    ks = jax.random.split(key, 12)

    def bn_stats(k, c):
        k1, k2, k3, k4 = jax.random.split(k, 4)
        return dict(gamma=1.0 + 0.1 * jax.random.normal(k1, (c,), jnp.float32),
                    beta=0.1 * jax.random.normal(k2, (c,), jnp.float32),
                    mean=0.1 * jax.random.normal(k3, (c,), jnp.float32),
                    var=0.5 + jax.random.uniform(k4, (c,), jnp.float32))

    return {
        'w1': jax.random.normal(ks[0], (KERNEL1, conv1_ch), jnp.float32) / jnp.sqrt(KERNEL1),
        'b1': 0.05 * jax.random.normal(ks[1], (conv1_ch,), jnp.float32),
        'bn1': bn_stats(ks[2], conv1_ch),
        'w2': jax.random.normal(ks[3], (conv1_ch, C_OUT), jnp.float32) / jnp.sqrt(conv1_ch),
        'b2': 0.05 * jax.random.normal(ks[4], (C_OUT,), jnp.float32),
        'bn2': bn_stats(ks[5], C_OUT),
        'w3': jax.random.normal(ks[6], (C_OUT, C_OUT), jnp.float32) / jnp.sqrt(float(C_OUT)),
        'b3': 0.05 * jax.random.normal(ks[7], (C_OUT,), jnp.float32),
        'bn3': bn_stats(ks[8], C_OUT),
        'w4': jax.random.normal(ks[9], (C_OUT, C_OUT), jnp.float32) / jnp.sqrt(float(C_OUT)),
        'b4': 0.05 * jax.random.normal(ks[10], (C_OUT,), jnp.float32),
        'bn4': bn_stats(ks[11], C_OUT),
    }


def prepare_params(p):
    """Fold eval-mode BN into conv weights/biases, build the K=128 banded conv1 weight."""
    def fold(w, b, stats):
        scale = stats['gamma'] / jnp.sqrt(stats['var'] + EPS)
        return w * scale[None, :], (b - stats['mean']) * scale + stats['beta']

    c1 = p['w1'].shape[1]
    w1f, b1f = fold(p['w1'], p['b1'], p['bn1'])
    # Banded weight, zero-padded to K=128:
    #   wb[j, u*c1 + c] = w1f[j - STRIDE1*u, c] inside the band, else 0.
    # (rows, 128) @ wb yields conv1 outputs for all POOL1 positions of one
    # maxpool1 window in a single bf16 MXU matmul.
    wb = jnp.zeros((PADK, POOL1 * c1), jnp.float32)
    for u in range(POOL1):
        wb = wb.at[u * STRIDE1: u * STRIDE1 + KERNEL1, u * c1:(u + 1) * c1].set(w1f)
    wb = wb.astype(jnp.bfloat16)

    w2f, b2f = fold(p['w2'], p['b2'], p['bn2'])
    w3f, b3f = fold(p['w3'], p['b3'], p['bn3'])
    w4f, b4f = fold(p['w4'], p['b4'], p['bn4'])
    return {
        'wb': wb, 'b1': b1f.reshape(1, -1),
        'w2': w2f, 'b2': b2f.reshape(1, -1),
        'w3': w3f, 'b3': b3f.reshape(1, -1),
        'w4': w4f, 'b4': b4f.reshape(1, -1),
    }


# ---------------------------------------------------------------------------
# Pure-JAX reference (unfused, f32, explicit eval-mode BatchNorm) for validation
# ---------------------------------------------------------------------------
def reference_forward(x, p):
    b, s, _, length = x.shape
    n = b * s
    c1 = p['w1'].shape[1]
    sig = x.reshape(n, length)
    l_out = (length - KERNEL1) // STRIDE1 + 1
    idx = jnp.arange(l_out)[:, None] * STRIDE1 + jnp.arange(KERNEL1)[None, :]
    patches = sig[:, idx]                                            # (n, l_out, 50)

    def bn(h, stats):
        return ((h - stats['mean']) / jnp.sqrt(stats['var'] + EPS)
                * stats['gamma'] + stats['beta'])

    with jax.default_matmul_precision('float32'):
        h = jnp.einsum('nlk,kc->nlc', patches, p['w1']) + p['b1']
        h = jnp.maximum(bn(h, p['bn1']), 0.0)
        l1 = l_out // POOL1
        h = h[:, :l1 * POOL1].reshape(n, l1, POOL1, c1).max(axis=2)  # maxpool1
        for i in (2, 3, 4):
            h = jnp.einsum('nlc,cd->nld', h, p[f'w{i}']) + p[f'b{i}']
            h = jnp.maximum(bn(h, p[f'bn{i}']), 0.0)
        l2 = l1 // POOL2
        h = h[:, :l2 * POOL2].reshape(n, l2, POOL2, C_OUT).max(axis=2)  # maxpool2
    feat = h.transpose(0, 2, 1).reshape(n, C_OUT * l2)               # NCW flatten
    return feat.reshape(b, s, C_OUT * l2)


if __name__ == "__main__":
    B, S, L = 2, 8, 620      # L=620 -> conv1 out 96 -> pool1 12 -> pool2 3 -> 24 features
    CONV1_CH = 128           # module default

    key = jax.random.PRNGKey(0)
    k_x, k_p = jax.random.split(key)
    x = jax.random.normal(k_x, (B, S, 1, L), jnp.float32)
    raw = init_params(k_p, conv1_ch=CONV1_CH)
    fp = prepare_params(raw)

    # row_block=8 -> a 2-step parallel row grid at this tiny size
    # (use the default 128, or 512-1024 on v6e, for real loads).
    out = tinysleepnet_cnn_forward(x, fp, row_block=8)
    out = jax.block_until_ready(out)

    ref = jax.block_until_ready(reference_forward(x, raw))
    l2 = (((L - KERNEL1) // STRIDE1 + 1) // POOL1) // POOL2
    assert out.shape == (B, S, C_OUT * l2), out.shape
    # Tolerance covers the bf16 conv1 matmul (f32 accumulation) vs f32 reference.
    assert jnp.allclose(out, ref, atol=3e-2, rtol=3e-2), (
        f"mismatch vs reference, max abs err {jnp.max(jnp.abs(out - ref))}")
    print("KERNEL_OK")
</pallas_src>

<mosaic_0001>
module attributes {stable_mosaic.version = 11 : i64} {
  func.func @_fused_kernel(%arg0: i32, %arg1: memref<8x1536xbf16, #tpu.memory_space<vmem>>, %arg2: memref<128x1024xbf16, #tpu.memory_space<vmem>>, %arg3: memref<1x128xf32, #tpu.memory_space<vmem>>, %arg4: memref<128x8xf32, #tpu.memory_space<vmem>>, %arg5: memref<1x8xf32, #tpu.memory_space<vmem>>, %arg6: memref<8x8xf32, #tpu.memory_space<vmem>>, %arg7: memref<1x8xf32, #tpu.memory_space<vmem>>, %arg8: memref<8x8xf32, #tpu.memory_space<vmem>>, %arg9: memref<1x8xf32, #tpu.memory_space<vmem>>, %arg10: memref<8x24xf32, #tpu.memory_space<vmem>>, %arg11: memref<96x128xf32, #tpu.memory_space<vmem>>) attributes {dimension_semantics = [#tpu.dimension_semantics<parallel>], iteration_bounds = array<i64: 2>, scalar_prefetch = 0 : i64, scratch_operands = 1 : i64, tpu.core_type = #tpu.core_type<tc>, window_params = [{transform_indices = @transform_0, window_bounds = array<i64: 8, 1536>}, {pipeline_mode = #tpu.pipeline_mode<synchronous>, transform_indices = @transform_1, window_bounds = array<i64: 128, 1024>}, {pipeline_mode = #tpu.pipeline_mode<synchronous>, transform_indices = @transform_2, window_bounds = array<i64: 1, 128>}, {pipeline_mode = #tpu.pipeline_mode<synchronous>, transform_indices = @transform_3, window_bounds = array<i64: 128, 8>}, {pipeline_mode = #tpu.pipeline_mode<synchronous>, transform_indices = @transform_4, window_bounds = array<i64: 1, 8>}, {pipeline_mode = #tpu.pipeline_mode<synchronous>, transform_indices = @transform_5, window_bounds = array<i64: 8, 8>}, {pipeline_mode = #tpu.pipeline_mode<synchronous>, transform_indices = @transform_6, window_bounds = array<i64: 1, 8>}, {pipeline_mode = #tpu.pipeline_mode<synchronous>, transform_indices = @transform_7, window_bounds = array<i64: 8, 8>}, {pipeline_mode = #tpu.pipeline_mode<synchronous>, transform_indices = @transform_8, window_bounds = array<i64: 1, 8>}, {transform_indices = @transform_9, window_bounds = array<i64: 8, 24>}]} {
    %c0 = arith.constant 0 : index
    %c0_0 = arith.constant 0 : index
    %0 = vector.load %arg2[%c0, %c0_0] : memref<128x1024xbf16, #tpu.memory_space<vmem>>, vector<128x1024xbf16>
    %c0_1 = arith.constant 0 : index
    %c0_2 = arith.constant 0 : index
    %1 = vector.load %arg3[%c0_1, %c0_2] : memref<1x128xf32, #tpu.memory_space<vmem>>, vector<1x128xf32>
    %c0_3 = arith.constant 0 : index
    %c0_4 = arith.constant 0 : index
    %2 = vector.load %arg4[%c0_3, %c0_4] : memref<128x8xf32, #tpu.memory_space<vmem>>, vector<128x8xf32>
    %c0_5 = arith.constant 0 : index
    %c0_6 = arith.constant 0 : index
    %3 = vector.load %arg5[%c0_5, %c0_6] : memref<1x8xf32, #tpu.memory_space<vmem>>, vector<1x8xf32>
    %c0_7 = arith.constant 0 : index
    %c0_8 = arith.constant 0 : index
    %4 = vector.load %arg6[%c0_7, %c0_8] : memref<8x8xf32, #tpu.memory_space<vmem>>, vector<8x8xf32>
    %c0_9 = arith.constant 0 : index
    %c0_10 = arith.constant 0 : index
    %5 = vector.load %arg7[%c0_9, %c0_10] : memref<1x8xf32, #tpu.memory_space<vmem>>, vector<1x8xf32>
    %c0_11 = arith.constant 0 : index
    %c0_12 = arith.constant 0 : index
    %6 = vector.load %arg8[%c0_11, %c0_12] : memref<8x8xf32, #tpu.memory_space<vmem>>, vector<8x8xf32>
    %c0_13 = arith.constant 0 : index
    %c0_14 = arith.constant 0 : index
    %7 = vector.load %arg9[%c0_13, %c0_14] : memref<1x8xf32, #tpu.memory_space<vmem>>, vector<1x8xf32>
    %c0_15 = arith.constant 0 : index
    %c0_16 = arith.constant 0 : index
    %8 = vector.load %arg1[%c0_15, %c0_16] : memref<8x1536xbf16, #tpu.memory_space<vmem>>, vector<8x128xbf16>
    %cst = arith.constant dense<0.000000e+00> : vector<8x1024xf32>
    %9 = tpu.matmul %8, %0, %cst {dimension_numbers = #tpu.dot_dimension_numbers<[1], [0], [0], [1], [0, 0, 1, 1], [], []>} : vector<8x128xbf16>, vector<128x1024xbf16>, vector<8x1024xf32> -> vector<8x1024xf32>
    %10 = vector.extract_strided_slice %9 {offsets = [0, 0], sizes = [8, 128], strides = [1, 1]} : vector<8x1024xf32> to vector<8x128xf32>
    %11 = vector.extract_strided_slice %9 {offsets = [0, 128], sizes = [8, 128], strides = [1, 1]} : vector<8x1024xf32> to vector<8x128xf32>
    %12 = arith.maximumf %10, %11 : vector<8x128xf32>
    %13 = vector.extract_strided_slice %9 {offsets = [0, 256], sizes = [8, 128], strides = [1, 1]} : vector<8x1024xf32> to vector<8x128xf32>
    %14 = arith.maximumf %12, %13 : vector<8x128xf32>
    %15 = vector.extract_strided_slice %9 {offsets = [0, 384], sizes = [8, 128], strides = [1, 1]} : vector<8x1024xf32> to vector<8x128xf32>
    %16 = arith.maximumf %14, %15 : vector<8x128xf32>
    %17 = vector.extract_strided_slice %9 {offsets = [0, 512], sizes = [8, 128], strides = [1, 1]} : vector<8x1024xf32> to vector<8x128xf32>
    %18 = arith.maximumf %16, %17 : vector<8x128xf32>
    %19 = vector.extract_strided_slice %9 {offsets = [0, 640], sizes = [8, 128], strides = [1, 1]} : vector<8x1024xf32> to vector<8x128xf32>
    %20 = arith.maximumf %18, %19 : vector<8x128xf32>
    %21 = vector.extract_strided_slice %9 {offsets = [0, 768], sizes = [8, 128], strides = [1, 1]} : vector<8x1024xf32> to vector<8x128xf32>
    %22 = arith.maximumf %20, %21 : vector<8x128xf32>
    %23 = vector.extract_strided_slice %9 {offsets = [0, 896], sizes = [8, 128], strides = [1, 1]} : vector<8x1024xf32> to vector<8x128xf32>
    %24 = arith.maximumf %22, %23 : vector<8x128xf32>
    %25 = vector.broadcast %1 : vector<1x128xf32> to vector<8x128xf32>
    %26 = arith.addf %24, %25 : vector<8x128xf32>
    %cst_17 = arith.constant 0.000000e+00 : f32
    %27 = vector.broadcast %cst_17 : f32 to vector<8x128xf32>
    %28 = arith.maximumf %26, %27 : vector<8x128xf32>
    %c0_18 = arith.constant 0 : index
    %c0_19 = arith.constant 0 : index
    %29 = vector.load %arg11[%c0_18, %c0_19] : memref<96x128xf32, #tpu.memory_space<vmem>>, vector<8x128xf32>
    tpu.vector_store %arg11[%c0_18, %c0_19], %28 {strides = array<i32>} : memref<96x128xf32, #tpu.memory_space<vmem>>, vector<8x128xf32>,
    %c0_20 = arith.constant 0 : index
    %c128 = arith.constant 128 : index
    %30 = vector.load %arg1[%c0_20, %c128] : memref<8x1536xbf16, #tpu.memory_space<vmem>>, vector<8x128xbf16>
    %cst_21 = arith.constant dense<0.000000e+00> : vector<8x1024xf32>
    %31 = tpu.matmul %30, %0, %cst_21 {dimension_numbers = #tpu.dot_dimension_numbers<[1], [0], [0], [1], [0, 0, 1, 1], [], []>} : vector<8x128xbf16>, vector<128x1024xbf16>, vector<8x1024xf32> -> vector<8x1024xf32>
    %32 = vector.extract_strided_slice %31 {offsets = [0, 0], sizes = [8, 128], strides = [1, 1]} : vector<8x1024xf32> to vector<8x128xf32>
    %33 = vector.extract_strided_slice %31 {offsets = [0, 128], sizes = [8, 128], strides = [1, 1]} : vector<8x1024xf32> to vector<8x128xf32>
    %34 = arith.maximumf %32, %33 : vector<8x128xf32>
    %35 = vector.extract_strided_slice %31 {offsets = [0, 256], sizes = [8, 128], strides = [1, 1]} : vector<8x1024xf32> to vector<8x128xf32>
    %36 = arith.maximumf %34, %35 : vector<8x128xf32>
    %37 = vector.extract_strided_slice %31 {offsets = [0, 384], sizes = [8, 128], strides = [1, 1]} : vector<8x1024xf32> to vector<8x128xf32>
    %38 = arith.maximumf %36, %37 : vector<8x128xf32>
    %39 = vector.extract_strided_slice %31 {offsets = [0, 512], sizes = [8, 128], strides = [1, 1]} : vector<8x1024xf32> to vector<8x128xf32>
    %40 = arith.maximumf %38, %39 : vector<8x128xf32>
    %41 = vector.extract_strided_slice %31 {offsets = [0, 640], sizes = [8, 128], strides = [1, 1]} : vector<8x1024xf32> to vector<8x128xf32>
    %42 = arith.maximumf %40, %41 : vector<8x128xf32>
    %43 = vector.extract_strided_slice %31 {offsets = [0, 768], sizes = [8, 128], strides = [1, 1]} : vector<8x1024xf32> to vector<8x128xf32>
    %44 = arith.maximumf %42, %43 : vector<8x128xf32>
    %45 = vector.extract_strided_slice %31 {offsets = [0, 896], sizes = [8, 128], strides = [1, 1]} : vector<8x1024xf32> to vector<8x128xf32>
    %46 = arith.maximumf %44, %45 : vector<8x128xf32>
    %47 = vector.broadcast %1 : vector<1x128xf32> to vector<8x128xf32>
    %48 = arith.addf %46, %47 : vector<8x128xf32>
    %cst_22 = arith.constant 0.000000e+00 : f32
    %49 = vector.broadcast %cst_22 : f32 to vector<8x128xf32>
    %50 = arith.maximumf %48, %49 : vector<8x128xf32>
    %c8 = arith.constant 8 : index
    %c0_23 = arith.constant 0 : index
    %51 = vector.load %arg11[%c8, %c0_23] : memref<96x128xf32, #tpu.memory_space<vmem>>, vector<8x128xf32>
    tpu.vector_store %arg11[%c8, %c0_23], %50 {strides = array<i32>} : memref<96x128xf32, #tpu.memory_space<vmem>>, vector<8x128xf32>,
    %c0_24 = arith.constant 0 : index
    %c256 = arith.constant 256 : index
    %52 = vector.load %arg1[%c0_24, %c256] : memref<8x1536xbf16, #tpu.memory_space<vmem>>, vector<8x128xbf16>
    %cst_25 = arith.constant dense<0.000000e+00> : vector<8x1024xf32>
    %53 = tpu.matmul %52, %0, %cst_25 {dimension_numbers = #tpu.dot_dimension_numbers<[1], [0], [0], [1], [0, 0, 1, 1], [], []>} : vector<8x128xbf16>, vector<128x1024xbf16>, vector<8x1024xf32> -> vector<8x1024xf32>
    %54 = vector.extract_strided_slice %53 {offsets = [0, 0], sizes = [8, 128], strides = [1, 1]} : vector<8x1024xf32> to vector<8x128xf32>
    %55 = vector.extract_strided_slice %53 {offsets = [0, 128], sizes = [8, 128], strides = [1, 1]} : vector<8x1024xf32> to vector<8x128xf32>
    %56 = arith.maximumf %54, %55 : vector<8x128xf32>
    %57 = vector.extract_strided_slice %53 {offsets = [0, 256], sizes = [8, 128], strides = [1, 1]} : vector<8x1024xf32> to vector<8x128xf32>
    %58 = arith.maximumf %56, %57 : vector<8x128xf32>
    %59 = vector.extract_strided_slice %53 {offsets = [0, 384], sizes = [8, 128], strides = [1, 1]} : vector<8x1024xf32> to vector<8x128xf32>
    %60 = arith.maximumf %58, %59 : vector<8x128xf32>
    %61 = vector.extract_strided_slice %53 {offsets = [0, 512], sizes = [8, 128], strides = [1, 1]} : vector<8x1024xf32> to vector<8x128xf32>
    %62 = arith.maximumf %60, %61 : vector<8x128xf32>
    %63 = vector.extract_strided_slice %53 {offsets = [0, 640], sizes = [8, 128], strides = [1, 1]} : vector<8x1024xf32> to vector<8x128xf32>
    %64 = arith.maximumf %62, %63 : vector<8x128xf32>
    %65 = vector.extract_strided_slice %53 {offsets = [0, 768], sizes = [8, 128], strides = [1, 1]} : vector<8x1024xf32> to vector<8x128xf32>
    %66 = arith.maximumf %64, %65 : vector<8x128xf32>
    %67 = vector.extract_strided_slice %53 {offsets = [0, 896], sizes = [8, 128], strides = [1, 1]} : vector<8x1024xf32> to vector<8x128xf32>
    %68 = arith.maximumf %66, %67 : vector<8x128xf32>
    %69 = vector.broadcast %1 : vector<1x128xf32> to vector<8x128xf32>
    %70 = arith.addf %68, %69 : vector<8x128xf32>
    %cst_26 = arith.constant 0.000000e+00 : f32
    %71 = vector.broadcast %cst_26 : f32 to vector<8x128xf32>
    %72 = arith.maximumf %70, %71 : vector<8x128xf32>
    %c16 = arith.constant 16 : index
    %c0_27 = arith.constant 0 : index
    %73 = vector.load %arg11[%c16, %c0_27] : memref<96x128xf32, #tpu.memory_space<vmem>>, vector<8x128xf32>
    tpu.vector_store %arg11[%c16, %c0_27], %72 {strides = array<i32>} : memref<96x128xf32, #tpu.memory_space<vmem>>, vector<8x128xf32>,
    %c0_28 = arith.constant 0 : index
    %c384 = arith.constant 384 : index
    %74 = vector.load %arg1[%c0_28, %c384] : memref<8x1536xbf16, #tpu.memory_space<vmem>>, vector<8x128xbf16>
    %cst_29 = arith.constant dense<0.000000e+00> : vector<8x1024xf32>
    %75 = tpu.matmul %74, %0, %cst_29 {dimension_numbers = #tpu.dot_dimension_numbers<[1], [0], [0], [1], [0, 0, 1, 1], [], []>} : vector<8x128xbf16>, vector<128x1024xbf16>, vector<8x1024xf32> -> vector<8x1024xf32>
    %76 = vector.extract_strided_slice %75 {offsets = [0, 0], sizes = [8, 128], strides = [1, 1]} : vector<8x1024xf32> to vector<8x128xf32>
    %77 = vector.extract_strided_slice %75 {offsets = [0, 128], sizes = [8, 128], strides = [1, 1]} : vector<8x1024xf32> to vector<8x128xf32>
    %78 = arith.maximumf %76, %77 : vector<8x128xf32>
    %79 = vector.extract_strided_slice %75 {offsets = [0, 256], sizes = [8, 128], strides = [1, 1]} : vector<8x1024xf32> to vector<8x128xf32>
    %80 = arith.maximumf %78, %79 : vector<8x128xf32>
    %81 = vector.extract_strided_slice %75 {offsets = [0, 384], sizes = [8, 128], strides = [1, 1]} : vector<8x1024xf32> to vector<8x128xf32>
    %82 = arith.maximumf %80, %81 : vector<8x128xf32>
    %83 = vector.extract_strided_slice %75 {offsets = [0, 512], sizes = [8, 128], strides = [1, 1]} : vector<8x1024xf32> to vector<8x128xf32>
    %84 = arith.maximumf %82, %83 : vector<8x128xf32>
    %85 = vector.extract_strided_slice %75 {offsets = [0, 640], sizes = [8, 128], strides = [1, 1]} : vector<8x1024xf32> to vector<8x128xf32>
    %86 = arith.maximumf %84, %85 : vector<8x128xf32>
    %87 = vector.extract_strided_slice %75 {offsets = [0, 768], sizes = [8, 128], strides = [1, 1]} : vector<8x1024xf32> to vector<8x128xf32>
    %88 = arith.maximumf %86, %87 : vector<8x128xf32>
    %89 = vector.extract_strided_slice %75 {offsets = [0, 896], sizes = [8, 128], strides = [1, 1]} : vector<8x1024xf32> to vector<8x128xf32>
    %90 = arith.maximumf %88, %89 : vector<8x128xf32>
    %91 = vector.broadcast %1 : vector<1x128xf32> to vector<8x128xf32>
    %92 = arith.addf %90, %91 : vector<8x128xf32>
    %cst_30 = arith.constant 0.000000e+00 : f32
    %93 = vector.broadcast %cst_30 : f32 to vector<8x128xf32>
    %94 = arith.maximumf %92, %93 : vector<8x128xf32>
    %c24 = arith.constant 24 : index
    %c0_31 = arith.constant 0 : index
    %95 = vector.load %arg11[%c24, %c0_31] : memref<96x128xf32, #tpu.memory_space<vmem>>, vector<8x128xf32>
    tpu.vector_store %arg11[%c24, %c0_31], %94 {strides = array<i32>} : memref<96x128xf32, #tpu.memory_space<vmem>>, vector<8x128xf32>,
    %c0_32 = arith.constant 0 : index
    %c512 = arith.constant 512 : index
    %96 = vector.load %arg1[%c0_32, %c512] : memref<8x1536xbf16, #tpu.memory_space<vmem>>, vector<8x128xbf16>
    %cst_33 = arith.constant dense<0.000000e+00> : vector<8x1024xf32>
    %97 = tpu.matmul %96, %0, %cst_33 {dimension_numbers = #tpu.dot_dimension_numbers<[1], [0], [0], [1], [0, 0, 1, 1], [], []>} : vector<8x128xbf16>, vector<128x1024xbf16>, vector<8x1024xf32> -> vector<8x1024xf32>
    %98 = vector.extract_strided_slice %97 {offsets = [0, 0], sizes = [8, 128], strides = [1, 1]} : vector<8x1024xf32> to vector<8x128xf32>
    %99 = vector.extract_strided_slice %97 {offsets = [0, 128], sizes = [8, 128], strides = [1, 1]} : vector<8x1024xf32> to vector<8x128xf32>
    %100 = arith.maximumf %98, %99 : vector<8x128xf32>
    %101 = vector.extract_strided_slice %97 {offsets = [0, 256], sizes = [8, 128], strides = [1, 1]} : vector<8x1024xf32> to vector<8x128xf32>
    %102 = arith.maximumf %100, %101 : vector<8x128xf32>
    %103 = vector.extract_strided_slice %97 {offsets = [0, 384], sizes = [8, 128], strides = [1, 1]} : vector<8x1024xf32> to vector<8x128xf32>
    %104 = arith.maximumf %102, %103 : vector<8x128xf32>
    %105 = vector.extract_strided_slice %97 {offsets = [0, 512], sizes = [8, 128], strides = [1, 1]} : vector<8x1024xf32> to vector<8x128xf32>
    %106 = arith.maximumf %104, %105 : vector<8x128xf32>
    %107 = vector.extract_strided_slice %97 {offsets = [0, 640], sizes = [8, 128], strides = [1, 1]} : vector<8x1024xf32> to vector<8x128xf32>
    %108 = arith.maximumf %106, %107 : vector<8x128xf32>
    %109 = vector.extract_strided_slice %97 {offsets = [0, 768], sizes = [8, 128], strides = [1, 1]} : vector<8x1024xf32> to vector<8x128xf32>
    %110 = arith.maximumf %108, %109 : vector<8x128xf32>
    %111 = vector.extract_strided_slice %97 {offsets = [0, 896], sizes = [8, 128], strides = [1, 1]} : vector<8x1024xf32> to vector<8x128xf32>
    %112 = arith.maximumf %110, %111 : vector<8x128xf32>
    %113 = vector.broadcast %1 : vector<1x128xf32> to vector<8x128xf32>
    %114 = arith.addf %112, %113 : vector<8x128xf32>
    %cst_34 = arith.constant 0.000000e+00 : f32
    %115 = vector.broadcast %cst_34 : f32 to vector<8x128xf32>
    %116 = arith.maximumf %114, %115 : vector<8x128xf32>
    %c32 = arith.constant 32 : index
    %c0_35 = arith.constant 0 : index
    %117 = vector.load %arg11[%c32, %c0_35] : memref<96x128xf32, #tpu.memory_space<vmem>>, vector<8x128xf32>
    tpu.vector_store %arg11[%c32, %c0_35], %116 {strides = array<i32>} : memref<96x128xf32, #tpu.memory_space<vmem>>, vector<8x128xf32>,
    %c0_36 = arith.constant 0 : index
    %c640 = arith.constant 640 : index
    %118 = vector.load %arg1[%c0_36, %c640] : memref<8x1536xbf16, #tpu.memory_space<vmem>>, vector<8x128xbf16>
    %cst_37 = arith.constant dense<0.000000e+00> : vector<8x1024xf32>
    %119 = tpu.matmul %118, %0, %cst_37 {dimension_numbers = #tpu.dot_dimension_numbers<[1], [0], [0], [1], [0, 0, 1, 1], [], []>} : vector<8x128xbf16>, vector<128x1024xbf16>, vector<8x1024xf32> -> vector<8x1024xf32>
    %120 = vector.extract_strided_slice %119 {offsets = [0, 0], sizes = [8, 128], strides = [1, 1]} : vector<8x1024xf32> to vector<8x128xf32>
    %121 = vector.extract_strided_slice %119 {offsets = [0, 128], sizes = [8, 128], strides = [1, 1]} : vector<8x1024xf32> to vector<8x128xf32>
    %122 = arith.maximumf %120, %121 : vector<8x128xf32>
    %123 = vector.extract_strided_slice %119 {offsets = [0, 256], sizes = [8, 128], strides = [1, 1]} : vector<8x1024xf32> to vector<8x128xf32>
    %124 = arith.maximumf %122, %123 : vector<8x128xf32>
    %125 = vector.extract_strided_slice %119 {offsets = [0, 384], sizes = [8, 128], strides = [1, 1]} : vector<8x1024xf32> to vector<8x128xf32>
    %126 = arith.maximumf %124, %125 : vector<8x128xf32>
    %127 = vector.extract_strided_slice %119 {offsets = [0, 512], sizes = [8, 128], strides = [1, 1]} : vector<8x1024xf32> to vector<8x128xf32>
    %128 = arith.maximumf %126, %127 : vector<8x128xf32>
    %129 = vector.extract_strided_slice %119 {offsets = [0, 640], sizes = [8, 128], strides = [1, 1]} : vector<8x1024xf32> to vector<8x128xf32>
    %130 = arith.maximumf %128, %129 : vector<8x128xf32>
    %131 = vector.extract_strided_slice %119 {offsets = [0, 768], sizes = [8, 128], strides = [1, 1]} : vector<8x1024xf32> to vector<8x128xf32>
    %132 = arith.maximumf %130, %131 : vector<8x128xf32>
    %133 = vector.extract_strided_slice %119 {offsets = [0, 896], sizes = [8, 128], strides = [1, 1]} : vector<8x1024xf32> to vector<8x128xf32>
    %134 = arith.maximumf %132, %133 : vector<8x128xf32>
    %135 = vector.broadcast %1 : vector<1x128xf32> to vector<8x128xf32>
    %136 = arith.addf %134, %135 : vector<8x128xf32>
    %cst_38 = arith.constant 0.000000e+00 : f32
    %137 = vector.broadcast %cst_38 : f32 to vector<8x128xf32>
    %138 = arith.maximumf %136, %137 : vector<8x128xf32>
    %c40 = arith.constant 40 : index
    %c0_39 = arith.constant 0 : index
    %139 = vector.load %arg11[%c40, %c0_39] : memref<96x128xf32, #tpu.memory_space<vmem>>, vector<8x128xf32>
    tpu.vector_store %arg11[%c40, %c0_39], %138 {strides = array<i32>} : memref<96x128xf32, #tpu.memory_space<vmem>>, vector<8x128xf32>,
    %c0_40 = arith.constant 0 : index
    %c768 = arith.constant 768 : index
    %140 = vector.load %arg1[%c0_40, %c768] : memref<8x1536xbf16, #tpu.memory_space<vmem>>, vector<8x128xbf16>
    %cst_41 = arith.constant dense<0.000000e+00> : vector<8x1024xf32>
    %141 = tpu.matmul %140, %0, %cst_41 {dimension_numbers = #tpu.dot_dimension_numbers<[1], [0], [0], [1], [0, 0, 1, 1], [], []>} : vector<8x128xbf16>, vector<128x1024xbf16>, vector<8x1024xf32> -> vector<8x1024xf32>
    %142 = vector.extract_strided_slice %141 {offsets = [0, 0], sizes = [8, 128], strides = [1, 1]} : vector<8x1024xf32> to vector<8x128xf32>
    %143 = vector.extract_strided_slice %141 {offsets = [0, 128], sizes = [8, 128], strides = [1, 1]} : vector<8x1024xf32> to vector<8x128xf32>
    %144 = arith.maximumf %142, %143 : vector<8x128xf32>
    %145 = vector.extract_strided_slice %141 {offsets = [0, 256], sizes = [8, 128], strides = [1, 1]} : vector<8x1024xf32> to vector<8x128xf32>
    %146 = arith.maximumf %144, %145 : vector<8x128xf32>
    %147 = vector.extract_strided_slice %141 {offsets = [0, 384], sizes = [8, 128], strides = [1, 1]} : vector<8x1024xf32> to vector<8x128xf32>
    %148 = arith.maximumf %146, %147 : vector<8x128xf32>
    %149 = vector.extract_strided_slice %141 {offsets = [0, 512], sizes = [8, 128], strides = [1, 1]} : vector<8x1024xf32> to vector<8x128xf32>
    %150 = arith.maximumf %148, %149 : vector<8x128xf32>
    %151 = vector.extract_strided_slice %141 {offsets = [0, 640], sizes = [8, 128], strides = [1, 1]} : vector<8x1024xf32> to vector<8x128xf32>
    %152 = arith.maximumf %150, %151 : vector<8x128xf32>
    %153 = vector.extract_strided_slice %141 {offsets = [0, 768], sizes = [8, 128], strides = [1, 1]} : vector<8x1024xf32> to vector<8x128xf32>
    %154 = arith.maximumf %152, %153 : vector<8x128xf32>
    %155 = vector.extract_strided_slice %141 {offsets = [0, 896], sizes = [8, 128], strides = [1, 1]} : vector<8x1024xf32> to vector<8x128xf32>
    %156 = arith.maximumf %154, %155 : vector<8x128xf32>
    %157 = vector.broadcast %1 : vector<1x128xf32> to vector<8x128xf32>
    %158 = arith.addf %156, %157 : vector<8x128xf32>
    %cst_42 = arith.constant 0.000000e+00 : f32
    %159 = vector.broadcast %cst_42 : f32 to vector<8x128xf32>
    %160 = arith.maximumf %158, %159 : vector<8x128xf32>
    %c48 = arith.constant 48 : index
    %c0_43 = arith.constant 0 : index
    %161 = vector.load %arg11[%c48, %c0_43] : memref<96x128xf32, #tpu.memory_space<vmem>>, vector<8x128xf32>
    tpu.vector_store %arg11[%c48, %c0_43], %160 {strides = array<i32>} : memref<96x128xf32, #tpu.memory_space<vmem>>, vector<8x128xf32>,
    %c0_44 = arith.constant 0 : index
    %c896 = arith.constant 896 : index
    %162 = vector.load %arg1[%c0_44, %c896] : memref<8x1536xbf16, #tpu.memory_space<vmem>>, vector<8x128xbf16>
    %cst_45 = arith.constant dense<0.000000e+00> : vector<8x1024xf32>
    %163 = tpu.matmul %162, %0, %cst_45 {dimension_numbers = #tpu.dot_dimension_numbers<[1], [0], [0], [1], [0, 0, 1, 1], [], []>} : vector<8x128xbf16>, vector<128x1024xbf16>, vector<8x1024xf32> -> vector<8x1024xf32>
    %164 = vector.extract_strided_slice %163 {offsets = [0, 0], sizes = [8, 128], strides = [1, 1]} : vector<8x1024xf32> to vector<8x128xf32>
    %165 = vector.extract_strided_slice %163 {offsets = [0, 128], sizes = [8, 128], strides = [1, 1]} : vector<8x1024xf32> to vector<8x128xf32>
    %166 = arith.maximumf %164, %165 : vector<8x128xf32>
    %167 = vector.extract_strided_slice %163 {offsets = [0, 256], sizes = [8, 128], strides = [1, 1]} : vector<8x1024xf32> to vector<8x128xf32>
    %168 = arith.maximumf %166, %167 : vector<8x128xf32>
    %169 = vector.extract_strided_slice %163 {offsets = [0, 384], sizes = [8, 128], strides = [1, 1]} : vector<8x1024xf32> to vector<8x128xf32>
    %170 = arith.maximumf %168, %169 : vector<8x128xf32>
    %171 = vector.extract_strided_slice %163 {offsets = [0, 512], sizes = [8, 128], strides = [1, 1]} : vector<8x1024xf32> to vector<8x128xf32>
    %172 = arith.maximumf %170, %171 : vector<8x128xf32>
    %173 = vector.extract_strided_slice %163 {offsets = [0, 640], sizes = [8, 128], strides = [1, 1]} : vector<8x1024xf32> to vector<8x128xf32>
    %174 = arith.maximumf %172, %173 : vector<8x128xf32>
    %175 = vector.extract_strided_slice %163 {offsets = [0, 768], sizes = [8, 128], strides = [1, 1]} : vector<8x1024xf32> to vector<8x128xf32>
    %176 = arith.maximumf %174, %175 : vector<8x128xf32>
    %177 = vector.extract_strided_slice %163 {offsets = [0, 896], sizes = [8, 128], strides = [1, 1]} : vector<8x1024xf32> to vector<8x128xf32>
    %178 = arith.maximumf %176, %177 : vector<8x128xf32>
    %179 = vector.broadcast %1 : vector<1x128xf32> to vector<8x128xf32>
    %180 = arith.addf %178, %179 : vector<8x128xf32>
    %cst_46 = arith.constant 0.000000e+00 : f32
    %181 = vector.broadcast %cst_46 : f32 to vector<8x128xf32>
    %182 = arith.maximumf %180, %181 : vector<8x128xf32>
    %c56 = arith.constant 56 : index
    %c0_47 = arith.constant 0 : index
    %183 = vector.load %arg11[%c56, %c0_47] : memref<96x128xf32, #tpu.memory_space<vmem>>, vector<8x128xf32>
    tpu.vector_store %arg11[%c56, %c0_47], %182 {strides = array<i32>} : memref<96x128xf32, #tpu.memory_space<vmem>>, vector<8x128xf32>,
    %c0_48 = arith.constant 0 : index
    %c1024 = arith.constant 1024 : index
    %184 = vector.load %arg1[%c0_48, %c1024] : memref<8x1536xbf16, #tpu.memory_space<vmem>>, vector<8x128xbf16>
    %cst_49 = arith.constant dense<0.000000e+00> : vector<8x1024xf32>
    %185 = tpu.matmul %184, %0, %cst_49 {dimension_numbers = #tpu.dot_dimension_numbers<[1], [0], [0], [1], [0, 0, 1, 1], [], []>} : vector<8x128xbf16>, vector<128x1024xbf16>, vector<8x1024xf32> -> vector<8x1024xf32>
    %186 = vector.extract_strided_slice %185 {offsets = [0, 0], sizes = [8, 128], strides = [1, 1]} : vector<8x1024xf32> to vector<8x128xf32>
    %187 = vector.extract_strided_slice %185 {offsets = [0, 128], sizes = [8, 128], strides = [1, 1]} : vector<8x1024xf32> to vector<8x128xf32>
    %188 = arith.maximumf %186, %187 : vector<8x128xf32>
    %189 = vector.extract_strided_slice %185 {offsets = [0, 256], sizes = [8, 128], strides = [1, 1]} : vector<8x1024xf32> to vector<8x128xf32>
    %190 = arith.maximumf %188, %189 : vector<8x128xf32>
    %191 = vector.extract_strided_slice %185 {offsets = [0, 384], sizes = [8, 128], strides = [1, 1]} : vector<8x1024xf32> to vector<8x128xf32>
    %192 = arith.maximumf %190, %191 : vector<8x128xf32>
    %193 = vector.extract_strided_slice %185 {offsets = [0, 512], sizes = [8, 128], strides = [1, 1]} : vector<8x1024xf32> to vector<8x128xf32>
    %194 = arith.maximumf %192, %193 : vector<8x128xf32>
    %195 = vector.extract_strided_slice %185 {offsets = [0, 640], sizes = [8, 128], strides = [1, 1]} : vector<8x1024xf32> to vector<8x128xf32>
    %196 = arith.maximumf %194, %195 : vector<8x128xf32>
    %197 = vector.extract_strided_slice %185 {offsets = [0, 768], sizes = [8, 128], strides = [1, 1]} : vector<8x1024xf32> to vector<8x128xf32>
    %198 = arith.maximumf %196, %197 : vector<8x128xf32>
    %199 = vector.extract_strided_slice %185 {offsets = [0, 896], sizes = [8, 128], strides = [1, 1]} : vector<8x1024xf32> to vector<8x128xf32>
    %200 = arith.maximumf %198, %199 : vector<8x128xf32>
    %201 = vector.broadcast %1 : vector<1x128xf32> to vector<8x128xf32>
    %202 = arith.addf %200, %201 : vector<8x128xf32>
    %cst_50 = arith.constant 0.000000e+00 : f32
    %203 = vector.broadcast %cst_50 : f32 to vector<8x128xf32>
    %204 = arith.maximumf %202, %203 : vector<8x128xf32>
    %c64 = arith.constant 64 : index
    %c0_51 = arith.constant 0 : index
    %205 = vector.load %arg11[%c64, %c0_51] : memref<96x128xf32, #tpu.memory_space<vmem>>, vector<8x128xf32>
    tpu.vector_store %arg11[%c64, %c0_51], %204 {strides = array<i32>} : memref<96x128xf32, #tpu.memory_space<vmem>>, vector<8x128xf32>,
    %c0_52 = arith.constant 0 : index
    %c1152 = arith.constant 1152 : index
    %206 = vector.load %arg1[%c0_52, %c1152] : memref<8x1536xbf16, #tpu.memory_space<vmem>>, vector<8x128xbf16>
    %cst_53 = arith.constant dense<0.000000e+00> : vector<8x1024xf32>
    %207 = tpu.matmul %206, %0, %cst_53 {dimension_numbers = #tpu.dot_dimension_numbers<[1], [0], [0], [1], [0, 0, 1, 1], [], []>} : vector<8x128xbf16>, vector<128x1024xbf16>, vector<8x1024xf32> -> vector<8x1024xf32>
    %208 = vector.extract_strided_slice %207 {offsets = [0, 0], sizes = [8, 128], strides = [1, 1]} : vector<8x1024xf32> to vector<8x128xf32>
    %209 = vector.extract_strided_slice %207 {offsets = [0, 128], sizes = [8, 128], strides = [1, 1]} : vector<8x1024xf32> to vector<8x128xf32>
    %210 = arith.maximumf %208, %209 : vector<8x128xf32>
    %211 = vector.extract_strided_slice %207 {offsets = [0, 256], sizes = [8, 128], strides = [1, 1]} : vector<8x1024xf32> to vector<8x128xf32>
    %212 = arith.maximumf %210, %211 : vector<8x128xf32>
    %213 = vector.extract_strided_slice %207 {offsets = [0, 384], sizes = [8, 128], strides = [1, 1]} : vector<8x1024xf32> to vector<8x128xf32>
    %214 = arith.maximumf %212, %213 : vector<8x128xf32>
    %215 = vector.extract_strided_slice %207 {offsets = [0, 512], sizes = [8, 128], strides = [1, 1]} : vector<8x1024xf32> to vector<8x128xf32>
    %216 = arith.maximumf %214, %215 : vector<8x128xf32>
    %217 = vector.extract_strided_slice %207 {offsets = [0, 640], sizes = [8, 128], strides = [1, 1]} : vector<8x1024xf32> to vector<8x128xf32>
    %218 = arith.maximumf %216, %217 : vector<8x128xf32>
    %219 = vector.extract_strided_slice %207 {offsets = [0, 768], sizes = [8, 128], strides = [1, 1]} : vector<8x1024xf32> to vector<8x128xf32>
    %220 = arith.maximumf %218, %219 : vector<8x128xf32>
    %221 = vector.extract_strided_slice %207 {offsets = [0, 896], sizes = [8, 128], strides = [1, 1]} : vector<8x1024xf32> to vector<8x128xf32>
    %222 = arith.maximumf %220, %221 : vector<8x128xf32>
    %223 = vector.broadcast %1 : vector<1x128xf32> to vector<8x128xf32>
    %224 = arith.addf %222, %223 : vector<8x128xf32>
    %cst_54 = arith.constant 0.000000e+00 : f32
    %225 = vector.broadcast %cst_54 : f32 to vector<8x128xf32>
    %226 = arith.maximumf %224, %225 : vector<8x128xf32>
    %c72 = arith.constant 72 : index
    %c0_55 = arith.constant 0 : index
    %227 = vector.load %arg11[%c72, %c0_55] : memref<96x128xf32, #tpu.memory_space<vmem>>, vector<8x128xf32>
    tpu.vector_store %arg11[%c72, %c0_55], %226 {strides = array<i32>} : memref<96x128xf32, #tpu.memory_space<vmem>>, vector<8x128xf32>,
    %c0_56 = arith.constant 0 : index
    %c1280 = arith.constant 1280 : index
    %228 = vector.load %arg1[%c0_56, %c1280] : memref<8x1536xbf16, #tpu.memory_space<vmem>>, vector<8x128xbf16>
    %cst_57 = arith.constant dense<0.000000e+00> : vector<8x1024xf32>
    %229 = tpu.matmul %228, %0, %cst_57 {dimension_numbers = #tpu.dot_dimension_numbers<[1], [0], [0], [1], [0, 0, 1, 1], [], []>} : vector<8x128xbf16>, vector<128x1024xbf16>, vector<8x1024xf32> -> vector<8x1024xf32>
    %230 = vector.extract_strided_slice %229 {offsets = [0, 0], sizes = [8, 128], strides = [1, 1]} : vector<8x1024xf32> to vector<8x128xf32>
    %231 = vector.extract_strided_slice %229 {offsets = [0, 128], sizes = [8, 128], strides = [1, 1]} : vector<8x1024xf32> to vector<8x128xf32>
    %232 = arith.maximumf %230, %231 : vector<8x128xf32>
    %233 = vector.extract_strided_slice %229 {offsets = [0, 256], sizes = [8, 128], strides = [1, 1]} : vector<8x1024xf32> to vector<8x128xf32>
    %234 = arith.maximumf %232, %233 : vector<8x128xf32>
    %235 = vector.extract_strided_slice %229 {offsets = [0, 384], sizes = [8, 128], strides = [1, 1]} : vector<8x1024xf32> to vector<8x128xf32>
    %236 = arith.maximumf %234, %235 : vector<8x128xf32>
    %237 = vector.extract_strided_slice %229 {offsets = [0, 512], sizes = [8, 128], strides = [1, 1]} : vector<8x1024xf32> to vector<8x128xf32>
    %238 = arith.maximumf %236, %237 : vector<8x128xf32>
    %239 = vector.extract_strided_slice %229 {offsets = [0, 640], sizes = [8, 128], strides = [1, 1]} : vector<8x1024xf32> to vector<8x128xf32>
    %240 = arith.maximumf %238, %239 : vector<8x128xf32>
    %241 = vector.extract_strided_slice %229 {offsets = [0, 768], sizes = [8, 128], strides = [1, 1]} : vector<8x1024xf32> to vector<8x128xf32>
    %242 = arith.maximumf %240, %241 : vector<8x128xf32>
    %243 = vector.extract_strided_slice %229 {offsets = [0, 896], sizes = [8, 128], strides = [1, 1]} : vector<8x1024xf32> to vector<8x128xf32>
    %244 = arith.maximumf %242, %243 : vector<8x128xf32>
    %245 = vector.broadcast %1 : vector<1x128xf32> to vector<8x128xf32>
    %246 = arith.addf %244, %245 : vector<8x128xf32>
    %cst_58 = arith.constant 0.000000e+00 : f32
    %247 = vector.broadcast %cst_58 : f32 to vector<8x128xf32>
    %248 = arith.maximumf %246, %247 : vector<8x128xf32>
    %c80 = arith.constant 80 : index
    %c0_59 = arith.constant 0 : index
    %249 = vector.load %arg11[%c80, %c0_59] : memref<96x128xf32, #tpu.memory_space<vmem>>, vector<8x128xf32>
    tpu.vector_store %arg11[%c80, %c0_59], %248 {strides = array<i32>} : memref<96x128xf32, #tpu.memory_space<vmem>>, vector<8x128xf32>,
    %c0_60 = arith.constant 0 : index
    %c1408 = arith.constant 1408 : index
    %250 = vector.load %arg1[%c0_60, %c1408] : memref<8x1536xbf16, #tpu.memory_space<vmem>>, vector<8x128xbf16>
    %cst_61 = arith.constant dense<0.000000e+00> : vector<8x1024xf32>
    %251 = tpu.matmul %250, %0, %cst_61 {dimension_numbers = #tpu.dot_dimension_numbers<[1], [0], [0], [1], [0, 0, 1, 1], [], []>} : vector<8x128xbf16>, vector<128x1024xbf16>, vector<8x1024xf32> -> vector<8x1024xf32>
    %252 = vector.extract_strided_slice %251 {offsets = [0, 0], sizes = [8, 128], strides = [1, 1]} : vector<8x1024xf32> to vector<8x128xf32>
    %253 = vector.extract_strided_slice %251 {offsets = [0, 128], sizes = [8, 128], strides = [1, 1]} : vector<8x1024xf32> to vector<8x128xf32>
    %254 = arith.maximumf %252, %253 : vector<8x128xf32>
    %255 = vector.extract_strided_slice %251 {offsets = [0, 256], sizes = [8, 128], strides = [1, 1]} : vector<8x1024xf32> to vector<8x128xf32>
    %256 = arith.maximumf %254, %255 : vector<8x128xf32>
    %257 = vector.extract_strided_slice %251 {offsets = [0, 384], sizes = [8, 128], strides = [1, 1]} : vector<8x1024xf32> to vector<8x128xf32>
    %258 = arith.maximumf %256, %257 : vector<8x128xf32>
    %259 = vector.extract_strided_slice %251 {offsets = [0, 512], sizes = [8, 128], strides = [1, 1]} : vector<8x1024xf32> to vector<8x128xf32>
    %260 = arith.maximumf %258, %259 : vector<8x128xf32>
    %261 = vector.extract_strided_slice %251 {offsets = [0, 640], sizes = [8, 128], strides = [1, 1]} : vector<8x1024xf32> to vector<8x128xf32>
    %262 = arith.maximumf %260, %261 : vector<8x128xf32>
    %263 = vector.extract_strided_slice %251 {offsets = [0, 768], sizes = [8, 128], strides = [1, 1]} : vector<8x1024xf32> to vector<8x128xf32>
    %264 = arith.maximumf %262, %263 : vector<8x128xf32>
    %265 = vector.extract_strided_slice %251 {offsets = [0, 896], sizes = [8, 128], strides = [1, 1]} : vector<8x1024xf32> to vector<8x128xf32>
    %266 = arith.maximumf %264, %265 : vector<8x128xf32>
    %267 = vector.broadcast %1 : vector<1x128xf32> to vector<8x128xf32>
    %268 = arith.addf %266, %267 : vector<8x128xf32>
    %cst_62 = arith.constant 0.000000e+00 : f32
    %269 = vector.broadcast %cst_62 : f32 to vector<8x128xf32>
    %270 = arith.maximumf %268, %269 : vector<8x128xf32>
    %c88 = arith.constant 88 : index
    %c0_63 = arith.constant 0 : index
    %271 = vector.load %arg11[%c88, %c0_63] : memref<96x128xf32, #tpu.memory_space<vmem>>, vector<8x128xf32>
    tpu.vector_store %arg11[%c88, %c0_63], %270 {strides = array<i32>} : memref<96x128xf32, #tpu.memory_space<vmem>>, vector<8x128xf32>,
    %c0_64 = arith.constant 0 : index
    %c0_65 = arith.constant 0 : index
    %272 = vector.load %arg11[%c0_64, %c0_65] : memref<96x128xf32, #tpu.memory_space<vmem>>, vector<96x128xf32>
    %cst_66 = arith.constant dense<0.000000e+00> : vector<96x8xf32>
    %273 = tpu.matmul %272, %2, %cst_66 {dimension_numbers = #tpu.dot_dimension_numbers<[1], [0], [0], [1], [0, 0, 1, 1], [], []>} : vector<96x128xf32>, vector<128x8xf32>, vector<96x8xf32> -> vector<96x8xf32>
    %274 = vector.broadcast %3 : vector<1x8xf32> to vector<96x8xf32>
    %275 = arith.addf %273, %274 : vector<96x8xf32>
    %cst_67 = arith.constant 0.000000e+00 : f32
    %276 = vector.broadcast %cst_67 : f32 to vector<96x8xf32>
    %277 = arith.maximumf %275, %276 : vector<96x8xf32>
    %cst_68 = arith.constant dense<0.000000e+00> : vector<96x8xf32>
    %278 = tpu.matmul %277, %4, %cst_68 {dimension_numbers = #tpu.dot_dimension_numbers<[1], [0], [0], [1], [0, 0, 1, 1], [], []>} : vector<96x8xf32>, vector<8x8xf32>, vector<96x8xf32> -> vector<96x8xf32>
    %279 = vector.broadcast %5 : vector<1x8xf32> to vector<96x8xf32>
    %280 = arith.addf %278, %279 : vector<96x8xf32>
    %cst_69 = arith.constant 0.000000e+00 : f32
    %281 = vector.broadcast %cst_69 : f32 to vector<96x8xf32>
    %282 = arith.maximumf %280, %281 : vector<96x8xf32>
    %cst_70 = arith.constant dense<0.000000e+00> : vector<96x8xf32>
    %283 = tpu.matmul %282, %6, %cst_70 {dimension_numbers = #tpu.dot_dimension_numbers<[1], [0], [0], [1], [0, 0, 1, 1], [], []>} : vector<96x8xf32>, vector<8x8xf32>, vector<96x8xf32> -> vector<96x8xf32>
    %284 = vector.broadcast %7 : vector<1x8xf32> to vector<96x8xf32>
    %285 = arith.addf %283, %284 : vector<96x8xf32>
    %cst_71 = arith.constant 0.000000e+00 : f32
    %286 = vector.broadcast %cst_71 : f32 to vector<96x8xf32>
    %287 = arith.maximumf %285, %286 : vector<96x8xf32>
    %288 = vector.extract_strided_slice %287 {offsets = [0, 0], sizes = [8, 8], strides = [1, 1]} : vector<96x8xf32> to vector<8x8xf32>
    %289 = vector.extract_strided_slice %287 {offsets = [8, 0], sizes = [8, 8], strides = [1, 1]} : vector<96x8xf32> to vector<8x8xf32>
    %290 = arith.maximumf %288, %289 : vector<8x8xf32>
    %291 = vector.extract_strided_slice %287 {offsets = [16, 0], sizes = [8, 8], strides = [1, 1]} : vector<96x8xf32> to vector<8x8xf32>
    %292 = arith.maximumf %290, %291 : vector<8x8xf32>
    %293 = vector.extract_strided_slice %287 {offsets = [24, 0], sizes = [8, 8], strides = [1, 1]} : vector<96x8xf32> to vector<8x8xf32>
    %294 = arith.maximumf %292, %293 : vector<8x8xf32>
    %295 = vector.extract_strided_slice %287 {offsets = [32, 0], sizes = [8, 8], strides = [1, 1]} : vector<96x8xf32> to vector<8x8xf32>
    %296 = vector.extract_strided_slice %287 {offsets = [40, 0], sizes = [8, 8], strides = [1, 1]} : vector<96x8xf32> to vector<8x8xf32>
    %297 = arith.maximumf %295, %296 : vector<8x8xf32>
    %298 = vector.extract_strided_slice %287 {offsets = [48, 0], sizes = [8, 8], strides = [1, 1]} : vector<96x8xf32> to vector<8x8xf32>
    %299 = arith.maximumf %297, %298 : vector<8x8xf32>
    %300 = vector.extract_strided_slice %287 {offsets = [56, 0], sizes = [8, 8], strides = [1, 1]} : vector<96x8xf32> to vector<8x8xf32>
    %301 = arith.maximumf %299, %300 : vector<8x8xf32>
    %302 = vector.extract_strided_slice %287 {offsets = [64, 0], sizes = [8, 8], strides = [1, 1]} : vector<96x8xf32> to vector<8x8xf32>
    %303 = vector.extract_strided_slice %287 {offsets = [72, 0], sizes = [8, 8], strides = [1, 1]} : vector<96x8xf32> to vector<8x8xf32>
    %304 = arith.maximumf %302, %303 : vector<8x8xf32>
    %305 = vector.extract_strided_slice %287 {offsets = [80, 0], sizes = [8, 8], strides = [1, 1]} : vector<96x8xf32> to vector<8x8xf32>
    %306 = arith.maximumf %304, %305 : vector<8x8xf32>
    %307 = vector.extract_strided_slice %287 {offsets = [88, 0], sizes = [8, 8], strides = [1, 1]} : vector<96x8xf32> to vector<8x8xf32>
    %308 = arith.maximumf %306, %307 : vector<8x8xf32>
    %309 = tpu.concatenate %294, %301, %308 in 1 : vector<8x8xf32>, vector<8x8xf32>, vector<8x8xf32> -> vector<8x24xf32>
    %c0_72 = arith.constant 0 : index
    %c0_73 = arith.constant 0 : index
    %310 = vector.load %arg10[%c0_72, %c0_73] : memref<8x24xf32, #tpu.memory_space<vmem>>, vector<8x24xf32>
    tpu.vector_store %arg10[%c0_72, %c0_73], %309 {strides = array<i32>} : memref<8x24xf32, #tpu.memory_space<vmem>>, vector<8x24xf32>,
    return
  }
  func.func @transform_0(%arg0: i32) -> (i32, i32) {
    %c0_i32 = arith.constant 0 : i32
    %c0_i32_0 = arith.constant 0 : i32
    return %arg0, %c0_i32 : i32, i32
  }
  func.func @transform_1(%arg0: i32) -> (i32, i32) {
    %c0_i32 = arith.constant 0 : i32
    %c0_i32_0 = arith.constant 0 : i32
    %c0_i32_1 = arith.constant 0 : i32
    return %c0_i32, %c0_i32_0 : i32, i32
  }
  func.func @transform_2(%arg0: i32) -> (i32, i32) {
    %c0_i32 = arith.constant 0 : i32
    %c0_i32_0 = arith.constant 0 : i32
    %c0_i32_1 = arith.constant 0 : i32
    return %c0_i32, %c0_i32_0 : i32, i32
  }
  func.func @transform_3(%arg0: i32) -> (i32, i32) {
    %c0_i32 = arith.constant 0 : i32
    %c0_i32_0 = arith.constant 0 : i32
    %c0_i32_1 = arith.constant 0 : i32
    return %c0_i32, %c0_i32_0 : i32, i32
  }
  func.func @transform_4(%arg0: i32) -> (i32, i32) {
    %c0_i32 = arith.constant 0 : i32
    %c0_i32_0 = arith.constant 0 : i32
    %c0_i32_1 = arith.constant 0 : i32
    return %c0_i32, %c0_i32_0 : i32, i32
  }
  func.func @transform_5(%arg0: i32) -> (i32, i32) {
    %c0_i32 = arith.constant 0 : i32
    %c0_i32_0 = arith.constant 0 : i32
    %c0_i32_1 = arith.constant 0 : i32
    return %c0_i32, %c0_i32_0 : i32, i32
  }
  func.func @transform_6(%arg0: i32) -> (i32, i32) {
    %c0_i32 = arith.constant 0 : i32
    %c0_i32_0 = arith.constant 0 : i32
    %c0_i32_1 = arith.constant 0 : i32
    return %c0_i32, %c0_i32_0 : i32, i32
  }
  func.func @transform_7(%arg0: i32) -> (i32, i32) {
    %c0_i32 = arith.constant 0 : i32
    %c0_i32_0 = arith.constant 0 : i32
    %c0_i32_1 = arith.constant 0 : i32
    return %c0_i32, %c0_i32_0 : i32, i32
  }
  func.func @transform_8(%arg0: i32) -> (i32, i32) {
    %c0_i32 = arith.constant 0 : i32
    %c0_i32_0 = arith.constant 0 : i32
    %c0_i32_1 = arith.constant 0 : i32
    return %c0_i32, %c0_i32_0 : i32, i32
  }
  func.func @transform_9(%arg0: i32) -> (i32, i32) {
    %c0_i32 = arith.constant 0 : i32
    %c0_i32_0 = arith.constant 0 : i32
    return %arg0, %c0_i32 : i32, i32
  }
}

</mosaic_0001>

<bundles_post_ra>
// kernel: tinysleepnet_cnn_forward.1
= control target key start
LH: loop header
LB: loop body
LE: loop exit
PB: predicated region body
PF: predicated region fallthrough
CT: control target
= control target key end

     0   :  { %s3751_s30 = smov 0   ;;  %s5124_s0 = inlined_call_operand.vmem [shape: bf16[16,1536], index: 0, kind: input, shape index: {}]   ;;  %s5125_s1 = inlined_call_operand.vmem [shape: bf16[128,1024], index: 1, kind: input, shape index: {}]   ;;  %s5126_s2 = inlined_call_operand.vmem [shape: f32[1,128], index: 2, kind: input, shape index: {}]   ;;  %s5127_s3 = inlined_call_operand.vmem [shape: f32[128,8], index: 3, kind: input, shape index: {}]   ;;  %s5128_s4 = inlined_call_operand.vmem [shape: f32[1,8], index: 4, kind: input, shape index: {}]   ;;  %s5129_s5 = inlined_call_operand.vmem [shape: f32[8,8], index: 5, kind: input, shape index: {}]   ;;  %s5130_s6 = inlined_call_operand.vmem [shape: f32[1,8], index: 6, kind: input, shape index: {}]   ;;  %s5131_s7 = inlined_call_operand.vmem [shape: f32[8,8], index: 7, kind: input, shape index: {}]   ;;  %s5132_s8 = inlined_call_operand.vmem [shape: f32[1,8], index: 8, kind: input, shape index: {}]   ;;  %s5133_s9 = inlined_call_operand.vmem [shape: f32[16,24], index: 9, kind: output, shape index: {}]  }
   0x1 LB: > { %s3433_s10 = sadd.s32 4294967295, %s3696_s30   ;;  %p3437_p0 = scmp.ge.s32.totalorder %s3696_s30, 1  ;;  %s3696_s30 = sphi %s3751_s30, %s19_s30  }
   0x2   : > { %p287_p1 = scmp.lt.s32.totalorder %s3696_s30, 3 }
   0x4   : > { %p288_p2 = pnand %p3437_p0, %p287_p1 }
   0x6   : > { %291 = sbr.rel (%p288_p2) target bundleno = 1708 (0x6ac), region = 56 }
   0xb   : > { %v388_v0 = vld [vmem:[%s5125_s1 + $0x1c0] sm:$0xff]  ;;  %v389_v2 = vld [vmem:[%s5125_s1 + $0x1c8] sm:$0xff]  ;;  %v5134_v8 = vmov 0   ;;  %p322_p3 = scmp.lt.s32.totalorder %s3433_s10, 1  ;;  %v390_v63 = vld [vmem:[%s5125_s1 + $0x1d0] sm:$0xff]  ;;  %vm3005_vm0 = vcmask 64512  }
   0xc   : > { %v392_v1 = vld [vmem:[%s5125_s1 + $0x1e0] sm:$0xff]  ;;  %v393_v4 = vld [vmem:[%s5125_s1 + $0x1e8] sm:$0xff]  ;;  %771 = vmatprep.mubr.bf16.mxu0 %v5134_v8  ;;  %812 = vmatprep.mubr.bf16.mxu1 %v5134_v8  ;;  %s3700_s19 = smov 16   ;;  %vm3376_vm1 = vcmask 130048   ;;  %vm3378_vm2 = vcmask 195584  }
   0xd   : > { %v3768_v3 = vcombine.high %v388_v0, %v392_v1  ;;  %v3773_v5 = vcombine.low %v388_v0, %v392_v1  ;;  %v380_v6 = vld [vmem:[%s5125_s1 + $0x180] sm:$0xff]  ;;  %v3783_v9 = vcombine.high %v389_v2, %v393_v4  ;;  %v3785_v10 = vcombine.low %v389_v2, %v393_v4  ;;  %v381_v12 = vld [vmem:[%s5125_s1 + $0x188] sm:$0xff]  ;;  %s5374_s10 = smov (!%p322_p3, %s3433_s10), 1  ;;  %v394_v0 = vld [vmem:[%s5125_s1 + $0x1f0] sm:$0xff] }
   0xe   : > { %v384_v7 = vld [vmem:[%s5125_s1 + $0x1a0] sm:$0xff]  ;;  %v385_v13 = vld [vmem:[%s5125_s1 + $0x1a8] sm:$0xff]  ;;  %s3678_s18 = smul.u32 48, %s5374_s10  ;;  %v391_v1 = vld [vmem:[%s5125_s1 + $0x1d8] sm:$0xff]  ;;  %s3439_s20 = sshll.u32 %s5374_s10, 3 }
   0xf   : > { %v3787_v11 = vcombine.high %v380_v6, %v384_v7  ;;  %v372_v14 = vld [vmem:[%s5125_s1 + $0x140] sm:$0xff]  ;;  %739 = vmatprep.subr.bf16.mxu0 %v3768_v3  ;;  %v3799_v15 = vcombine.high %v381_v12, %v385_v13  ;;  %v373_v17 = vld [vmem:[%s5125_s1 + $0x148] sm:$0xff]  ;;  %780 = vmatprep.subr.bf16.mxu1 %v3783_v9  ;;  %v3812_v19 = vcombine.low %v380_v6, %v384_v7  ;;  %v395_v2 = vld [vmem:[%s5125_s1 + $0x1f8] sm:$0xff]  ;;  %s330_s23 = scalar_lea.vmem %s5133_s9, %s3439_s20 }
  0x10   : > { %v376_v16 = vld [vmem:[%s5125_s1 + $0x160] sm:$0xff]  ;;  %v377_v18 = vld [vmem:[%s5125_s1 + $0x168] sm:$0xff]  ;;  %740 = vmatpush1.bf16.msra.mxu0 %v3773_v5  ;;  %781 = vmatpush1.bf16.msra.mxu1 %v3785_v10  ;;  %v3816_v20 = vcombine.low %v381_v12, %v385_v13  ;;  %s3972_s29 = scalar_lea.vmem %s5124_s0, %s3678_s18  ;;  %v3974_v7 = vcombine.high %v390_v63, %v394_v0  ;;  %v3977_v12 = vcombine.high %v391_v1, %v395_v2  ;;  %v382_v13 = vld [vmem:[%s5125_s1 + $0x190] sm:$0xff]  ;;  %s3699_s18 = smov 8  }
  0x11   : > { %741 = vmatprep.subr.bf16.mxu0 %v3787_v11  ;;  %v3818_v21 = vcombine.high %v372_v14, %v376_v16  ;;  %782 = vmatprep.subr.bf16.mxu1 %v3799_v15  ;;  %v3821_v22 = vcombine.high %v373_v17, %v377_v18  ;;  %v364_v23 = vld [vmem:[%s5125_s1 + $0x100] sm:$0xff]  ;;  %v365_v25 = vld [vmem:[%s5125_s1 + $0x108] sm:$0xff]  ;;  %v3836_v27 = vcombine.low %v372_v14, %v376_v16  ;;  %v386_v14 = vld [vmem:[%s5125_s1 + $0x1b0] sm:$0xff] }
  0x12   : > { %v368_v24 = vld [vmem:[%s5125_s1 + $0x120] sm:$0xff]  ;;  %v369_v26 = vld [vmem:[%s5125_s1 + $0x128] sm:$0xff]  ;;  %v3840_v28 = vcombine.low %v373_v17, %v377_v18  ;;  %5208 = vst [vmem:[#allocation13_spill] sm:$0xff] %v3974_v7  ;;  %5209 = vst [vmem:[#allocation14_spill] sm:$0xff] %v3977_v12 }
  0x13   : > { %v3842_v29 = vcombine.high %v364_v23, %v368_v24  ;;  %v3845_v30 = vcombine.high %v365_v25, %v369_v26  ;;  %v356_v31 = vld [vmem:[%s5125_s1 + $0xc0] sm:$0xff]  ;;  %v357_v33 = vld [vmem:[%s5125_s1 + $0xc8] sm:$0xff]  ;;  %v3860_v35 = vcombine.low %v364_v23, %v368_v24  ;;  %v3864_v36 = vcombine.low %v365_v25, %v369_v26  ;;  %v383_v16 = vld [vmem:[%s5125_s1 + $0x198] sm:$0xff] }
  0x14   : > { %742 = vmatpush1.bf16.msra.mxu0 %v3812_v19  ;;  %783 = vmatpush1.bf16.msra.mxu1 %v3816_v20  ;;  %v360_v32 = vld [vmem:[%s5125_s1 + $0xe0] sm:$0xff]  ;;  %v361_v34 = vld [vmem:[%s5125_s1 + $0xe8] sm:$0xff]  ;;  %v387_v17 = vld [vmem:[%s5125_s1 + $0x1b8] sm:$0xff]  ;;  %v3995_v23 = vcombine.low %v390_v63, %v394_v0  ;;  %v3999_v24 = vcombine.low %v391_v1, %v395_v2  ;;  %v4001_v25 = vcombine.high %v382_v13, %v386_v14 }
  0x15   : > { %743 = vmatprep.subr.bf16.mxu0 %v3818_v21  ;;  %784 = vmatprep.subr.bf16.mxu1 %v3821_v22  ;;  %v3866_v37 = vcombine.high %v356_v31, %v360_v32  ;;  %v3869_v38 = vcombine.high %v357_v33, %v361_v34  ;;  %v348_v39 = vld [vmem:[%s5125_s1 + $0x80] sm:$0xff]  ;;  %v349_v41 = vld [vmem:[%s5125_s1 + $0x88] sm:$0xff]  ;;  %v3884_v43 = vcombine.low %v356_v31, %v360_v32  ;;  %v374_v31 = vld [vmem:[%s5125_s1 + $0x150] sm:$0xff] }
  0x16   : > { %v352_v40 = vld [vmem:[%s5125_s1 + $0xa0] sm:$0xff]  ;;  %v353_v42 = vld [vmem:[%s5125_s1 + $0xa8] sm:$0xff]  ;;  %v3888_v44 = vcombine.low %v357_v33, %v361_v34  ;;  %5210 = vst [vmem:[#allocation15_spill] sm:$0xff] %v3995_v23  ;;  %5211 = vst [vmem:[#allocation16_spill] sm:$0xff] %v3999_v24  ;;  %v4004_v26 = vcombine.high %v383_v16, %v387_v17 }
  0x17   : > { %v3890_v45 = vcombine.high %v348_v39, %v352_v40  ;;  %v3895_v46 = vcombine.high %v349_v41, %v353_v42  ;;  %v340_v47 = vld [vmem:[%s5125_s1 + $0x40] sm:$0xff]  ;;  %v341_v49 = vld [vmem:[%s5125_s1 + $0x48] sm:$0xff]  ;;  %v3910_v51 = vcombine.low %v348_v39, %v352_v40  ;;  %v3914_v52 = vcombine.low %v349_v41, %v353_v42  ;;  %5212 = vst [vmem:[#allocation17_spill] sm:$0xff] %v4001_v25  ;;  %v378_v32 = vld [vmem:[%s5125_s1 + $0x170] sm:$0xff] }
  0x18   : > { %744 = vmatpush1.bf16.msra.mxu0 %v3836_v27  ;;  %785 = vmatpush1.bf16.msra.mxu1 %v3840_v28  ;;  %v344_v48 = vld [vmem:[%s5125_s1 + $0x60] sm:$0xff]  ;;  %v345_v50 = vld [vmem:[%s5125_s1 + $0x68] sm:$0xff]  ;;  %v375_v33 = vld [vmem:[%s5125_s1 + $0x158] sm:$0xff]  ;;  %v4021_v39 = vcombine.low %v382_v13, %v386_v14  ;;  %v4025_v40 = vcombine.low %v383_v16, %v387_v17  ;;  %v4027_v41 = vcombine.high %v374_v31, %v378_v32 }
  0x19   : > { %745 = vmatprep.subr.bf16.mxu0 %v3842_v29  ;;  %786 = vmatprep.subr.bf16.mxu1 %v3845_v30  ;;  %5198 = vst [vmem:[#allocation3_spill] sm:$0xff] %v3910_v51  ;;  %5199 = vst [vmem:[#allocation4_spill] sm:$0xff] %v3914_v52  ;;  %v3916_v53 = vcombine.high %v340_v47, %v344_v48  ;;  %v3923_v54 = vcombine.high %v341_v49, %v345_v50  ;;  %v332_v55 = vld [vmem:[%s5125_s1] sm:$0xff]  ;;  %v333_v57 = vld [vmem:[%s5125_s1 + $0x8] sm:$0xff] }
  0x1a   : > { %v336_v56 = vld [vmem:[%s5125_s1 + $0x20] sm:$0xff]  ;;  %v337_v58 = vld [vmem:[%s5125_s1 + $0x28] sm:$0xff]  ;;  %v3938_v59 = vcombine.low %v340_v47, %v344_v48  ;;  %v3942_v60 = vcombine.low %v341_v49, %v345_v50  ;;  %v379_v34 = vld [vmem:[%s5125_s1 + $0x178] sm:$0xff] }
  0x1b   : > { %5200 = vst [vmem:[#allocation5_spill] sm:$0xff] %v3916_v53  ;;  %5201 = vst [vmem:[#allocation6_spill] sm:$0xff] %v3923_v54  ;;  %v3944_v61 = vcombine.high %v332_v55, %v336_v56  ;;  %v3948_v62 = vcombine.high %v333_v57, %v337_v58  ;;  %v3963_v4 = vcombine.low %v332_v55, %v336_v56  ;;  %v3993_v18 = vld [vmem:[%s3972_s29] sm:$0xf]  ;;  %v366_v47 = vld [vmem:[%s5125_s1 + $0x110] sm:$0xff] }
  0x1c   : > { %746 = vmatpush1.bf16.msra.mxu0 %v3860_v35  ;;  %787 = vmatpush1.bf16.msra.mxu1 %v3864_v36  ;;  %5202 = vst [vmem:[#allocation7_spill] sm:$0xff] %v3938_v59  ;;  %5203 = vst [vmem:[#allocation8_spill] sm:$0xff] %v3942_v60  ;;  %v3967_v6 = vcombine.low %v333_v57, %v337_v58  ;;  %v4030_v42 = vcombine.high %v375_v33, %v379_v34  ;;  %v370_v48 = vld [vmem:[%s5125_s1 + $0x130] sm:$0xff]  ;;  %v367_v49 = vld [vmem:[%s5125_s1 + $0x118] sm:$0xff] }
  0x1d   : > { %747 = vmatprep.subr.bf16.mxu0 %v3866_v37  ;;  %788 = vmatprep.subr.bf16.mxu1 %v3869_v38  ;;  %5204 = vst [vmem:[#allocation9_spill] sm:$0xff] %v3944_v61  ;;  %5205 = vst [vmem:[#allocation10_spill] sm:$0xff] %v3948_v62  ;;  %v371_v50 = vld [vmem:[%s5125_s1 + $0x138] sm:$0xff]  ;;  %v4047_v55 = vcombine.low %v374_v31, %v378_v32  ;;  %v4051_v56 = vcombine.low %v375_v33, %v379_v34  ;;  %v358_v63 = vld [vmem:[%s5125_s1 + $0xd0] sm:$0xff] }
  0x1e   : > { %5206 = vst [vmem:[#allocation11_spill] sm:$0xff] %v3963_v4  ;;  %5207 = vst [vmem:[#allocation12_spill] sm:$0xff] %v3967_v6  ;;  %v4053_v57 = vcombine.high %v366_v47, %v370_v48  ;;  %v4056_v58 = vcombine.high %v367_v49, %v371_v50  ;;  %v362_v0 = vld [vmem:[%s5125_s1 + $0xf0] sm:$0xff]  ;;  %v359_v1 = vld [vmem:[%s5125_s1 + $0xd8] sm:$0xff]  ;;  %v4071_v13 = vcombine.low %v366_v47, %v370_v48 }
  0x1f   : > { %5213 = vst [vmem:[#allocation18_spill] sm:$0xff] %v4030_v42  ;;  %5214 = vst [vmem:[#allocation19_spill] sm:$0xff] %v4047_v55  ;;  %v363_v2 = vld [vmem:[%s5125_s1 + $0xf8] sm:$0xff]  ;;  %v4075_v14 = vcombine.low %v367_v49, %v371_v50  ;;  %v4077_v16 = vcombine.high %v358_v63, %v362_v0  ;;  %v350_v31 = vld [vmem:[%s5125_s1 + $0x90] sm:$0xff]  ;;  %v4095_v47 = vcombine.low %v358_v63, %v362_v0 }
  0x20   : > { %748 = vmatpush1.bf16.msra.mxu0 %v3884_v43  ;;  %789 = vmatpush1.bf16.msra.mxu1 %v3888_v44  ;;  %5215 = vst [vmem:[#allocation20_spill] sm:$0xff] %v4071_v13  ;;  %v4080_v17 = vcombine.high %v359_v1, %v363_v2  ;;  %v354_v32 = vld [vmem:[%s5125_s1 + $0xb0] sm:$0xff]  ;;  %v351_v33 = vld [vmem:[%s5125_s1 + $0x98] sm:$0xff]  ;;  %v4099_v48 = vcombine.low %v359_v1, %v363_v2 }
  0x21   : > { %749 = vmatprep.subr.bf16.mxu0 %v3890_v45  ;;  %790 = vmatprep.subr.bf16.mxu1 %v3895_v46  ;;  %5216 = vst [vmem:[#allocation21_spill] sm:$0xff] %v4075_v14  ;;  %5217 = vst [vmem:[#allocation22_spill] sm:$0xff] %v4077_v16  ;;  %v355_v34 = vld [vmem:[%s5125_s1 + $0xb8] sm:$0xff]  ;;  %v4101_v49 = vcombine.high %v350_v31, %v354_v32  ;;  %v346_v63 = vld [vmem:[%s5125_s1 + $0x70] sm:$0xff]  ;;  %v4119_v2 = vcombine.low %v350_v31, %v354_v32 }
  0x22   : > { %5218 = vst [vmem:[#allocation23_spill] sm:$0xff] %v4080_v17  ;;  %5219 = vst [vmem:[#allocation24_spill] sm:$0xff] %v4095_v47  ;;  %v4104_v50 = vcombine.high %v351_v33, %v355_v34  ;;  %v343_v0 = vld [vmem:[%s5125_s1 + $0x58] sm:$0xff]  ;;  %v338_v31 = vld [vmem:[%s5125_s1 + $0x30] sm:$0xff] }
  0x23   : > { %5220 = vst [vmem:[#allocation25_spill] sm:$0xff] %v4099_v48  ;;  %5221 = vst [vmem:[#allocation26_spill] sm:$0xff] %v4101_v49  ;;  %v347_v1 = vld [vmem:[%s5125_s1 + $0x78] sm:$0xff] }
  0x24   : > { %750 = vmatpush1.bf16.msra.mxu0 %v3910_v51  ;;  %791 = vmatpush1.bf16.msra.mxu1 %v3914_v52  ;;  %5222 = vst [vmem:[#allocation27_spill] sm:$0xff] %v4104_v50  ;;  %v335_v32 = vld [vmem:[%s5125_s1 + $0x18] sm:$0xff] }
  0x25   : > { %751 = vmatprep.subr.bf16.mxu0 %v3916_v53  ;;  %792 = vmatprep.subr.bf16.mxu1 %v3923_v54 }
  0x28   : > { %752 = vmatpush1.bf16.msra.mxu0 %v3938_v59  ;;  %793 = vmatpush1.bf16.msra.mxu1 %v3942_v60 }
  0x29   : > { %753 = vmatprep.subr.bf16.mxu0 %v3944_v61  ;;  %794 = vmatprep.subr.bf16.mxu1 %v3948_v62 }
  0x2c   : > { %754 = vmatpush1.bf16.msra.mxu0 %v3963_v4  ;;  %795 = vmatpush1.bf16.msra.mxu1 %v3967_v6 }
  0x2d   : > { %821 = vmatprep.subr.bf16.mxu0 %v3974_v7  ;;  %862 = vmatprep.subr.bf16.mxu1 %v3977_v12 }
  0x2f   : > { %772 = vmatmul.mubr.bf16.vlgmr.msra.gmra.mxu0 %v3993_v18  ;;  %813 = vmatmul.mubr.bf16.vlgmr.msra.gmra.mxu1 %v3993_v18 }
  0x30   : > { %822 = vmatpush1.bf16.msra.mxu0 %v3995_v23  ;;  %863 = vmatpush1.bf16.msra.mxu1 %v3999_v24 }
  0x31   : > { %823 = vmatprep.subr.bf16.mxu0 %v4001_v25  ;;  %864 = vmatprep.subr.bf16.mxu1 %v4004_v26 }
  0x32   : > { %853 = vmatprep.mubr.bf16.mxu0 %v5134_v8  ;;  %894 = vmatprep.mubr.bf16.mxu1 %v5134_v8  ;;  %v342_v8 = vld [vmem:[%s5125_s1 + $0x50] sm:$0xff] }
  0x34   : > { %824 = vmatpush1.bf16.msra.mxu0 %v4021_v39  ;;  %865 = vmatpush1.bf16.msra.mxu1 %v4025_v40 }
  0x35   : > { %825 = vmatprep.subr.bf16.mxu0 %v4027_v41  ;;  %866 = vmatprep.subr.bf16.mxu1 %v4030_v42 }
  0x38   : > { %826 = vmatpush1.bf16.msra.mxu0 %v4047_v55  ;;  %867 = vmatpush1.bf16.msra.mxu1 %v4051_v56 }
  0x39   : > { %827 = vmatprep.subr.bf16.mxu0 %v4053_v57  ;;  %868 = vmatprep.subr.bf16.mxu1 %v4056_v58 }
  0x3c   : > { %828 = vmatpush1.bf16.msra.mxu0 %v4071_v13  ;;  %869 = vmatpush1.bf16.msra.mxu1 %v4075_v14  ;;  %v4128_v14 = vcombine.high %v343_v0, %v347_v1  ;;  %v334_v13 = vld [vmem:[%s5125_s1 + $0x10] sm:$0xff] }
  0x3d   : > { %829 = vmatprep.subr.bf16.mxu0 %v4077_v16  ;;  %870 = vmatprep.subr.bf16.mxu1 %v4080_v17  ;;  %v4123_v17 = vcombine.low %v351_v33, %v355_v34  ;;  %v4125_v16 = vcombine.high %v342_v8, %v346_v63  ;;  %v339_v33 = vld [vmem:[%s5125_s1 + $0x38] sm:$0xff]  ;;  %v4143_v34 = vcombine.low %v342_v8, %v346_v63  ;;  %v5224_v63 = vld [vmem:[#allocation20_spill] sm:$0xff] }
  0x3e   : > { %v4159_v8 = vcombine.low %v335_v32, %v339_v33 }
  0x40   : > { %830 = vmatpush1.bf16.msra.mxu0 %v4095_v47  ;;  %871 = vmatpush1.bf16.msra.mxu1 %v4099_v48  ;;  %v4152_v48 = vcombine.high %v335_v32, %v339_v33  ;;  %v4155_v47 = vcombine.low %v334_v13, %v338_v31  ;;  %v5228_v32 = vld [vmem:[#allocation24_spill] sm:$0xff]  ;;  %v5229_v33 = vld [vmem:[#allocation25_spill] sm:$0xff] }
  0x41   : > { %831 = vmatprep.subr.bf16.mxu0 %v4101_v49  ;;  %872 = vmatprep.subr.bf16.mxu1 %v4104_v50  ;;  %v4147_v50 = vcombine.low %v343_v0, %v347_v1  ;;  %v4149_v49 = vcombine.high %v334_v13, %v338_v31  ;;  %v5223_v13 = vmov 0   ;;  %v5225_v0 = vld [vmem:[#allocation21_spill] sm:$0xff]  ;;  %v5226_v1 = vld [vmem:[#allocation22_spill] sm:$0xff]  ;;  %v5227_v31 = vld [vmem:[#allocation23_spill] sm:$0xff] }
  0x44   : > { %832 = vmatpush1.bf16.msra.mxu0 %v4119_v2  ;;  %873 = vmatpush1.bf16.msra.mxu1 %v4123_v17 }
  0x45   : > { %833 = vmatprep.subr.bf16.mxu0 %v4125_v16  ;;  %874 = vmatprep.subr.bf16.mxu1 %v4128_v14 }
  0x48   : > { %834 = vmatpush1.bf16.msra.mxu0 %v4143_v34  ;;  %875 = vmatpush1.bf16.msra.mxu1 %v4147_v50 }
  0x49   : > { %835 = vmatprep.subr.bf16.mxu0 %v4149_v49  ;;  %876 = vmatprep.subr.bf16.mxu1 %v4152_v48 }
  0x4c   : > { %836 = vmatpush1.bf16.msra.mxu0 %v4155_v47  ;;  %877 = vmatpush1.bf16.msra.mxu1 %v4159_v8 }
  0x4d   : > { %920 = vmatprep.subr.bf16.mxu0 %v3768_v3  ;;  %961 = vmatprep.subr.bf16.mxu1 %v3783_v9 }
  0x4f   : > { %854 = vmatmul.mubr.bf16.vlgmr.msra.gmra.mxu0 %v3993_v18  ;;  %895 = vmatmul.mubr.bf16.vlgmr.msra.gmra.mxu1 %v3993_v18  ;;  %v919_v18 = vld [vmem:[%s3972_s29 + $0x4] sm:$0xf] }
  0x50   : > { %921 = vmatpush1.bf16.msra.mxu0 %v3773_v5  ;;  %962 = vmatpush1.bf16.msra.mxu1 %v3785_v10 }
  0x51   : > { %922 = vmatprep.subr.bf16.mxu0 %v3787_v11  ;;  %963 = vmatprep.subr.bf16.mxu1 %v3799_v15 }
  0x52   : > { %952 = vmatprep.mubr.bf16.mxu0 %v5223_v13  ;;  %993 = vmatprep.mubr.bf16.mxu1 %v5223_v13 }
  0x54   : > { %923 = vmatpush1.bf16.msra.mxu0 %v3812_v19  ;;  %964 = vmatpush1.bf16.msra.mxu1 %v3816_v20 }
  0x55   : > { %924 = vmatprep.subr.bf16.mxu0 %v3818_v21  ;;  %965 = vmatprep.subr.bf16.mxu1 %v3821_v22 }
  0x58   : > { %925 = vmatpush1.bf16.msra.mxu0 %v3836_v27  ;;  %966 = vmatpush1.bf16.msra.mxu1 %v3840_v28 }
  0x59   : > { %926 = vmatprep.subr.bf16.mxu0 %v3842_v29  ;;  %967 = vmatprep.subr.bf16.mxu1 %v3845_v30 }
  0x5c   : > { %927 = vmatpush1.bf16.msra.mxu0 %v3860_v35  ;;  %968 = vmatpush1.bf16.msra.mxu1 %v3864_v36 }
  0x5d   : > { %928 = vmatprep.subr.bf16.mxu0 %v3866_v37  ;;  %969 = vmatprep.subr.bf16.mxu1 %v3869_v38 }
  0x60   : > { %929 = vmatpush1.bf16.msra.mxu0 %v3884_v43  ;;  %970 = vmatpush1.bf16.msra.mxu1 %v3888_v44 }
  0x61   : > { %930 = vmatprep.subr.bf16.mxu0 %v3890_v45  ;;  %971 = vmatprep.subr.bf16.mxu1 %v3895_v46 }
  0x64   : > { %931 = vmatpush1.bf16.msra.mxu0 %v3910_v51  ;;  %972 = vmatpush1.bf16.msra.mxu1 %v3914_v52 }
  0x65   : > { %932 = vmatprep.subr.bf16.mxu0 %v3916_v53  ;;  %973 = vmatprep.subr.bf16.mxu1 %v3923_v54 }
  0x68   : > { %933 = vmatpush1.bf16.msra.mxu0 %v3938_v59  ;;  %974 = vmatpush1.bf16.msra.mxu1 %v3942_v60 }
  0x69   : > { %934 = vmatprep.subr.bf16.mxu0 %v3944_v61  ;;  %975 = vmatprep.subr.bf16.mxu1 %v3948_v62 }
  0x6c   : > { %935 = vmatpush1.bf16.msra.mxu0 %v3963_v4  ;;  %976 = vmatpush1.bf16.msra.mxu1 %v3967_v6 }
  0x6d   : > { %1002 = vmatprep.subr.bf16.mxu0 %v3974_v7  ;;  %1043 = vmatprep.subr.bf16.mxu1 %v3977_v12 }
  0x6f   : > { %953 = vmatmul.mubr.bf16.vlgmr.msra.gmra.mxu0 %v919_v18  ;;  %994 = vmatmul.mubr.bf16.vlgmr.msra.gmra.mxu1 %v919_v18 }
  0x70   : > { %1003 = vmatpush1.bf16.msra.mxu0 %v3995_v23  ;;  %1044 = vmatpush1.bf16.msra.mxu1 %v3999_v24 }
  0x71   : > { %1004 = vmatprep.subr.bf16.mxu0 %v4001_v25  ;;  %1045 = vmatprep.subr.bf16.mxu1 %v4004_v26 }
  0x72   : > { %1034 = vmatprep.mubr.bf16.mxu0 %v5223_v13  ;;  %1075 = vmatprep.mubr.bf16.mxu1 %v5223_v13 }
  0x74   : > { %1005 = vmatpush1.bf16.msra.mxu0 %v4021_v39  ;;  %1046 = vmatpush1.bf16.msra.mxu1 %v4025_v40 }
  0x75   : > { %1006 = vmatprep.subr.bf16.mxu0 %v4027_v41  ;;  %1047 = vmatprep.subr.bf16.mxu1 %v4030_v42  ;;  %v5230_v42 = vld [vmem:[#allocation26_spill] sm:$0xff] }
  0x78   : > { %1007 = vmatpush1.bf16.msra.mxu0 %v4047_v55  ;;  %1048 = vmatpush1.bf16.msra.mxu1 %v4051_v56  ;;  %v5231_v55 = vld [vmem:[#allocation27_spill] sm:$0xff] }
  0x79   : > { %1008 = vmatprep.subr.bf16.mxu0 %v4053_v57  ;;  %1049 = vmatprep.subr.bf16.mxu1 %v4056_v58 }
  0x7c   : > { %1009 = vmatpush1.bf16.msra.mxu0 %v5224_v63  ;;  %1050 = vmatpush1.bf16.msra.mxu1 %v5225_v0 }
  0x7d   : > { %1010 = vmatprep.subr.bf16.mxu0 %v5226_v1  ;;  %1051 = vmatprep.subr.bf16.mxu1 %v5227_v31 }
  0x80   : > { %1011 = vmatpush1.bf16.msra.mxu0 %v5228_v32  ;;  %1052 = vmatpush1.bf16.msra.mxu1 %v5229_v33 }
  0x81   : > { %1012 = vmatprep.subr.bf16.mxu0 %v5230_v42  ;;  %1053 = vmatprep.subr.bf16.mxu1 %v5231_v55 }
  0x84   : > { %1013 = vmatpush1.bf16.msra.mxu0 %v4119_v2  ;;  %1054 = vmatpush1.bf16.msra.mxu1 %v4123_v17 }
  0x85   : > { %1014 = vmatprep.subr.bf16.mxu0 %v4125_v16  ;;  %1055 = vmatprep.subr.bf16.mxu1 %v4128_v14 }
  0x88   : > { %1015 = vmatpush1.bf16.msra.mxu0 %v4143_v34  ;;  %1056 = vmatpush1.bf16.msra.mxu1 %v4147_v50 }
  0x89   : > { %1016 = vmatprep.subr.bf16.mxu0 %v4149_v49  ;;  %1057 = vmatprep.subr.bf16.mxu1 %v4152_v48 }
  0x8c   : > { %1017 = vmatpush1.bf16.msra.mxu0 %v4155_v47  ;;  %1058 = vmatpush1.bf16.msra.mxu1 %v4159_v8 }
  0x8d   : > { %1095 = vmatprep.subr.bf16.mxu0 %v3768_v3  ;;  %1136 = vmatprep.subr.bf16.mxu1 %v3783_v9 }
  0x8f   : > { %1035 = vmatmul.mubr.bf16.vlgmr.msra.gmra.mxu0 %v919_v18  ;;  %1076 = vmatmul.mubr.bf16.vlgmr.msra.gmra.mxu1 %v919_v18  ;;  %v1094_v18 = vld [vmem:[%s3972_s29 + $0x8] sm:$0xf] }
  0x90   : > { %1096 = vmatpush1.bf16.msra.mxu0 %v3773_v5  ;;  %1137 = vmatpush1.bf16.msra.mxu1 %v3785_v10 }
  0x91   : > { %1097 = vmatprep.subr.bf16.mxu0 %v3787_v11  ;;  %1138 = vmatprep.subr.bf16.mxu1 %v3799_v15 }
  0x92   : > { %1127 = vmatprep.mubr.bf16.mxu0 %v5223_v13  ;;  %1168 = vmatprep.mubr.bf16.mxu1 %v5223_v13 }
  0x94   : > { %1098 = vmatpush1.bf16.msra.mxu0 %v3812_v19  ;;  %1139 = vmatpush1.bf16.msra.mxu1 %v3816_v20 }
  0x95   : > { %1099 = vmatprep.subr.bf16.mxu0 %v3818_v21  ;;  %1140 = vmatprep.subr.bf16.mxu1 %v3821_v22 }
  0x98   : > { %1100 = vmatpush1.bf16.msra.mxu0 %v3836_v27  ;;  %1141 = vmatpush1.bf16.msra.mxu1 %v3840_v28 }
  0x99   : > { %1101 = vmatprep.subr.bf16.mxu0 %v3842_v29  ;;  %1142 = vmatprep.subr.bf16.mxu1 %v3845_v30 }
  0x9c   : > { %1102 = vmatpush1.bf16.msra.mxu0 %v3860_v35  ;;  %1143 = vmatpush1.bf16.msra.mxu1 %v3864_v36 }
  0x9d   : > { %1103 = vmatprep.subr.bf16.mxu0 %v3866_v37  ;;  %1144 = vmatprep.subr.bf16.mxu1 %v3869_v38 }
  0xa0   : > { %1104 = vmatpush1.bf16.msra.mxu0 %v3884_v43  ;;  %1145 = vmatpush1.bf16.msra.mxu1 %v3888_v44 }
  0xa1   : > { %1105 = vmatprep.subr.bf16.mxu0 %v3890_v45  ;;  %1146 = vmatprep.subr.bf16.mxu1 %v3895_v46 }
  0xa4   : > { %1106 = vmatpush1.bf16.msra.mxu0 %v3910_v51  ;;  %1147 = vmatpush1.bf16.msra.mxu1 %v3914_v52 }
  0xa5   : > { %1107 = vmatprep.subr.bf16.mxu0 %v3916_v53  ;;  %1148 = vmatprep.subr.bf16.mxu1 %v3923_v54 }
  0xa8   : > { %1108 = vmatpush1.bf16.msra.mxu0 %v3938_v59  ;;  %1149 = vmatpush1.bf16.msra.mxu1 %v3942_v60 }
  0xa9   : > { %1109 = vmatprep.subr.bf16.mxu0 %v3944_v61  ;;  %1150 = vmatprep.subr.bf16.mxu1 %v3948_v62 }
  0xac   : > { %1110 = vmatpush1.bf16.msra.mxu0 %v3963_v4  ;;  %1151 = vmatpush1.bf16.msra.mxu1 %v3967_v6 }
  0xad   : > { %1177 = vmatprep.subr.bf16.mxu0 %v3974_v7  ;;  %1218 = vmatprep.subr.bf16.mxu1 %v3977_v12  ;;  %v5232_v12 = vld [vmem:[#allocation18_spill] sm:$0xff]  ;;  %v5233_v7 = vld [vmem:[#allocation19_spill] sm:$0xff] }
  0xaf   : > { %1128 = vmatmul.mubr.bf16.vlgmr.msra.gmra.mxu0 %v1094_v18  ;;  %1169 = vmatmul.mubr.bf16.vlgmr.msra.gmra.mxu1 %v1094_v18 }
  0xb0   : > { %1178 = vmatpush1.bf16.msra.mxu0 %v3995_v23  ;;  %1219 = vmatpush1.bf16.msra.mxu1 %v3999_v24 }
  0xb1   : > { %1179 = vmatprep.subr.bf16.mxu0 %v4001_v25  ;;  %1220 = vmatprep.subr.bf16.mxu1 %v4004_v26 }
  0xb2   : > { %1209 = vmatprep.mubr.bf16.mxu0 %v5223_v13  ;;  %1250 = vmatprep.mubr.bf16.mxu1 %v5223_v13 }
  0xb4   : > { %1180 = vmatpush1.bf16.msra.mxu0 %v4021_v39  ;;  %1221 = vmatpush1.bf16.msra.mxu1 %v4025_v40 }
  0xb5   : > { %1181 = vmatprep.subr.bf16.mxu0 %v4027_v41  ;;  %1222 = vmatprep.subr.bf16.mxu1 %v5232_v12 }
  0xb8   : > { %1182 = vmatpush1.bf16.msra.mxu0 %v5233_v7  ;;  %1223 = vmatpush1.bf16.msra.mxu1 %v4051_v56 }
  0xb9   : > { %1183 = vmatprep.subr.bf16.mxu0 %v4053_v57  ;;  %1224 = vmatprep.subr.bf16.mxu1 %v4056_v58 }
  0xbc   : > { %1184 = vmatpush1.bf16.msra.mxu0 %v5224_v63  ;;  %1225 = vmatpush1.bf16.msra.mxu1 %v5225_v0 }
  0xbd   : > { %1185 = vmatprep.subr.bf16.mxu0 %v5226_v1  ;;  %1226 = vmatprep.subr.bf16.mxu1 %v5227_v31 }
  0xc0   : > { %1186 = vmatpush1.bf16.msra.mxu0 %v5228_v32  ;;  %1227 = vmatpush1.bf16.msra.mxu1 %v5229_v33 }
  0xc1   : > { %1187 = vmatprep.subr.bf16.mxu0 %v5230_v42  ;;  %1228 = vmatprep.subr.bf16.mxu1 %v5231_v55 }
  0xc4   : > { %1188 = vmatpush1.bf16.msra.mxu0 %v4119_v2  ;;  %1229 = vmatpush1.bf16.msra.mxu1 %v4123_v17 }
  0xc5   : > { %1189 = vmatprep.subr.bf16.mxu0 %v4125_v16  ;;  %1230 = vmatprep.subr.bf16.mxu1 %v4128_v14 }
  0xc8   : > { %1190 = vmatpush1.bf16.msra.mxu0 %v4143_v34  ;;  %1231 = vmatpush1.bf16.msra.mxu1 %v4147_v50 }
  0xc9   : > { %1191 = vmatprep.subr.bf16.mxu0 %v4149_v49  ;;  %1232 = vmatprep.subr.bf16.mxu1 %v4152_v48 }
  0xcc   : > { %1192 = vmatpush1.bf16.msra.mxu0 %v4155_v47  ;;  %1233 = vmatpush1.bf16.msra.mxu1 %v4159_v8 }
  0xcd   : > { %1270 = vmatprep.subr.bf16.mxu0 %v3768_v3  ;;  %1311 = vmatprep.subr.bf16.mxu1 %v3783_v9 }
  0xcf   : > { %1210 = vmatmul.mubr.bf16.vlgmr.msra.gmra.mxu0 %v1094_v18  ;;  %1251 = vmatmul.mubr.bf16.vlgmr.msra.gmra.mxu1 %v1094_v18  ;;  %v1269_v18 = vld [vmem:[%s3972_s29 + $0xc] sm:$0xf] }
  0xd0   : > { %1271 = vmatpush1.bf16.msra.mxu0 %v3773_v5  ;;  %1312 = vmatpush1.bf16.msra.mxu1 %v3785_v10 }
  0xd1   : > { %1272 = vmatprep.subr.bf16.mxu0 %v3787_v11  ;;  %1313 = vmatprep.subr.bf16.mxu1 %v3799_v15 }
  0xd2   : > { %1302 = vmatprep.mubr.bf16.mxu0 %v5223_v13  ;;  %1343 = vmatprep.mubr.bf16.mxu1 %v5223_v13 }
  0xd4   : > { %1273 = vmatpush1.bf16.msra.mxu0 %v3812_v19  ;;  %1314 = vmatpush1.bf16.msra.mxu1 %v3816_v20 }
  0xd5   : > { %1274 = vmatprep.subr.bf16.mxu0 %v3818_v21  ;;  %1315 = vmatprep.subr.bf16.mxu1 %v3821_v22 }
  0xd8   : > { %1275 = vmatpush1.bf16.msra.mxu0 %v3836_v27  ;;  %1316 = vmatpush1.bf16.msra.mxu1 %v3840_v28 }
  0xd9   : > { %1276 = vmatprep.subr.bf16.mxu0 %v3842_v29  ;;  %1317 = vmatprep.subr.bf16.mxu1 %v3845_v30 }
  0xdc   : > { %1277 = vmatpush1.bf16.msra.mxu0 %v3860_v35  ;;  %1318 = vmatpush1.bf16.msra.mxu1 %v3864_v36 }
  0xdd   : > { %1278 = vmatprep.subr.bf16.mxu0 %v3866_v37  ;;  %1319 = vmatprep.subr.bf16.mxu1 %v3869_v38 }
  0xe0   : > { %1279 = vmatpush1.bf16.msra.mxu0 %v3884_v43  ;;  %1320 = vmatpush1.bf16.msra.mxu1 %v3888_v44 }
  0xe1   : > { %1280 = vmatprep.subr.bf16.mxu0 %v3890_v45  ;;  %1321 = vmatprep.subr.bf16.mxu1 %v3895_v46 }
  0xe4   : > { %1281 = vmatpush1.bf16.msra.mxu0 %v3910_v51  ;;  %1322 = vmatpush1.bf16.msra.mxu1 %v3914_v52  ;;  %v5234_v51 = vld [vmem:[#allocation13_spill] sm:$0xff]  ;;  %v5235_v52 = vld [vmem:[#allocation14_spill] sm:$0xff] }
  0xe5   : > { %1282 = vmatprep.subr.bf16.mxu0 %v3916_v53  ;;  %1323 = vmatprep.subr.bf16.mxu1 %v3923_v54 }
  0xe8   : > { %1283 = vmatpush1.bf16.msra.mxu0 %v3938_v59  ;;  %1324 = vmatpush1.bf16.msra.mxu1 %v3942_v60 }
  0xe9   : > { %1284 = vmatprep.subr.bf16.mxu0 %v3944_v61  ;;  %1325 = vmatprep.subr.bf16.mxu1 %v3948_v62 }
  0xec   : > { %1285 = vmatpush1.bf16.msra.mxu0 %v3963_v4  ;;  %1326 = vmatpush1.bf16.msra.mxu1 %v3967_v6 }
  0xed   : > { %1352 = vmatprep.subr.bf16.mxu0 %v5234_v51  ;;  %1393 = vmatprep.subr.bf16.mxu1 %v5235_v52 }
  0xef   : > { %v773_v53 = vpop.f32.mrf.mxu0  ;;  %1303 = vmatmul.mubr.bf16.vlgmr.msra.gmra.mxu0 %v1269_v18  ;;  %v814_v54 = vpop.f32.mrf.mxu1  ;;  %1344 = vmatmul.mubr.bf16.vlgmr.msra.gmra.mxu1 %v1269_v18 }
  0xf0   : > { %1353 = vmatpush1.bf16.msra.mxu0 %v3995_v23  ;;  %1394 = vmatpush1.bf16.msra.mxu1 %v3999_v24 }
  0xf1   : > { %v775_v61 = vpop.f32.mrf.mxu0  ;;  %1354 = vmatprep.subr.bf16.mxu0 %v4001_v25  ;;  %v816_v4 = vpop.f32.mrf.mxu1  ;;  %1395 = vmatprep.subr.bf16.mxu1 %v4004_v26 }
  0xf2   : > { %v903_v62 = vmax.f32 %v773_v53, %v775_v61  ;;  %1384 = vmatprep.mubr.bf16.mxu0 %v5223_v13  ;;  %1425 = vmatprep.mubr.bf16.mxu1 %v5223_v13 }
  0xf3   : > { %v777_v51 = vpop.f32.mrf.mxu0  ;;  %v818_v6 = vpop.f32.mrf.mxu1 }
  0xf4   : > { %v904_v52 = vmax.f32 %v903_v62, %v814_v54  ;;  %1355 = vmatpush1.bf16.msra.mxu0 %v4021_v39  ;;  %1396 = vmatpush1.bf16.msra.mxu1 %v4025_v40 }
  0xf5   : > { %v778_v23 = vpop.f32.mrf.mxu0  ;;  %1356 = vmatprep.subr.bf16.mxu0 %v4027_v41  ;;  %v819_v24 = vpop.f32.mrf.mxu1  ;;  %1397 = vmatprep.subr.bf16.mxu1 %v5232_v12 }
  0xf6   : > { %v905_v51 = vmax.f32 %v904_v52, %v816_v4 }
  0xf8   : > { %1357 = vmatpush1.bf16.msra.mxu0 %v5233_v7  ;;  %1398 = vmatpush1.bf16.msra.mxu1 %v4051_v56 }
  0xf9   : > { %1358 = vmatprep.subr.bf16.mxu0 %v4053_v57  ;;  %1399 = vmatprep.subr.bf16.mxu1 %v4056_v58 }
  0xfc   : > { %1359 = vmatpush1.bf16.msra.mxu0 %v5224_v63  ;;  %1400 = vmatpush1.bf16.msra.mxu1 %v5225_v0 }
  0xfd   : > { %1360 = vmatprep.subr.bf16.mxu0 %v5226_v1  ;;  %1401 = vmatprep.subr.bf16.mxu1 %v5227_v31 }
 0x100   : > { %1361 = vmatpush1.bf16.msra.mxu0 %v5228_v32  ;;  %1402 = vmatpush1.bf16.msra.mxu1 %v5229_v33 }
 0x101   : > { %1362 = vmatprep.subr.bf16.mxu0 %v5230_v42  ;;  %1403 = vmatprep.subr.bf16.mxu1 %v5231_v55 }
 0x104   : > { %1363 = vmatpush1.bf16.msra.mxu0 %v4119_v2  ;;  %1404 = vmatpush1.bf16.msra.mxu1 %v4123_v17 }
 0x105   : > { %1364 = vmatprep.subr.bf16.mxu0 %v4125_v16  ;;  %1405 = vmatprep.subr.bf16.mxu1 %v4128_v14 }
 0x108   : > { %1365 = vmatpush1.bf16.msra.mxu0 %v4143_v34  ;;  %1406 = vmatpush1.bf16.msra.mxu1 %v4147_v50 }
 0x109   : > { %1366 = vmatprep.subr.bf16.mxu0 %v4149_v49  ;;  %1407 = vmatprep.subr.bf16.mxu1 %v4152_v48 }
 0x10c   : > { %1367 = vmatpush1.bf16.msra.mxu0 %v4155_v47  ;;  %1408 = vmatpush1.bf16.msra.mxu1 %v4159_v8 }
 0x10d   : > { %1445 = vmatprep.subr.bf16.mxu0 %v3768_v3  ;;  %1486 = vmatprep.subr.bf16.mxu1 %v3783_v9 }
 0x10f   : > { %v855_v53 = vpop.f32.mrf.mxu0  ;;  %1385 = vmatmul.mubr.bf16.vlgmr.msra.gmra.mxu0 %v1269_v18  ;;  %v896_v61 = vpop.f32.mrf.mxu1  ;;  %1426 = vmatmul.mubr.bf16.vlgmr.msra.gmra.mxu1 %v1269_v18 }
 0x110   : > { %v906_v54 = vmax.f32 %v905_v51, %v855_v53  ;;  %1446 = vmatpush1.bf16.msra.mxu0 %v3773_v5  ;;  %1487 = vmatpush1.bf16.msra.mxu1 %v3785_v10  ;;  %v5238_v53 = vld [vmem:[#allocation3_spill] sm:$0xff] }
 0x111   : > { %v857_v62 = vpop.f32.mrf.mxu0  ;;  %1447 = vmatprep.subr.bf16.mxu0 %v3787_v11  ;;  %v4378_v23 = vpop.f32.mrf.mxu1  ;;  %1488 = vmatprep.subr.bf16.mxu1 %v3799_v15 }
 0x112   : > { %v907_v6 = vmax.f32 %v906_v54, %v857_v62  ;;  %5236 = vst [vmem:[#allocation20_spill] sm:$0xff] %v4378_v23  ;;  %1477 = vmatprep.mubr.bf16.mxu0 %v5223_v13  ;;  %1518 = vmatprep.mubr.bf16.mxu1 %v5223_v13  ;;  %v5239_v54 = vld [vmem:[#allocation4_spill] sm:$0xff]  ;;  %v5241_v62 = vld [vmem:[#allocation6_spill] sm:$0xff] }
 0x113   : > { %v859_v52 = vpop.f32.mrf.mxu0  ;;  %v900_v24 = vpop.f32.mrf.mxu1  ;;  %v5247_v23 = vld [vmem:[#allocation14_spill] sm:$0xff] }
 0x114   : > { %v4383_v4 = vmax.f32 %v907_v6, %v896_v61  ;;  %1448 = vmatpush1.bf16.msra.mxu0 %v3812_v19  ;;  %1489 = vmatpush1.bf16.msra.mxu1 %v3816_v20  ;;  %v5240_v61 = vld [vmem:[#allocation5_spill] sm:$0xff]  ;;  %v5243_v52 = vld [vmem:[#allocation10_spill] sm:$0xff]  ;;  %v5244_v24 = vld [vmem:[#allocation11_spill] sm:$0xff] }
 0x115   : > { %v860_v18 = vpop.f32.mrf.mxu0  ;;  %1449 = vmatprep.subr.bf16.mxu0 %v3818_v21  ;;  %v901_v51 = vpop.f32.mrf.mxu1  ;;  %1490 = vmatprep.subr.bf16.mxu1 %v3821_v22  ;;  %v5242_v6 = vld [vmem:[#allocation9_spill] sm:$0xff] }
 0x116   : > { %5237 = vst [vmem:[#allocation21_spill] sm:$0xff] %v4383_v4  ;;  %v1444_v18 = vld [vmem:[%s3972_s29 + $0x10] sm:$0xf]  ;;  %v5245_v51 = vld [vmem:[#allocation12_spill] sm:$0xff] }
 0x117   : > { %v5246_v4 = vld [vmem:[#allocation13_spill] sm:$0xff] }
 0x118   : > { %1450 = vmatpush1.bf16.msra.mxu0 %v3836_v27  ;;  %1491 = vmatpush1.bf16.msra.mxu1 %v3840_v28 }
 0x119   : > { %1451 = vmatprep.subr.bf16.mxu0 %v3842_v29  ;;  %1492 = vmatprep.subr.bf16.mxu1 %v3845_v30 }
 0x11c   : > { %1452 = vmatpush1.bf16.msra.mxu0 %v3860_v35  ;;  %1493 = vmatpush1.bf16.msra.mxu1 %v3864_v36 }
 0x11d   : > { %1453 = vmatprep.subr.bf16.mxu0 %v3866_v37  ;;  %1494 = vmatprep.subr.bf16.mxu1 %v3869_v38 }
 0x120   : > { %1454 = vmatpush1.bf16.msra.mxu0 %v3884_v43  ;;  %1495 = vmatpush1.bf16.msra.mxu1 %v3888_v44 }
 0x121   : > { %1455 = vmatprep.subr.bf16.mxu0 %v3890_v45  ;;  %1496 = vmatprep.subr.bf16.mxu1 %v3895_v46 }
 0x124   : > { %1456 = vmatpush1.bf16.msra.mxu0 %v5238_v53  ;;  %1497 = vmatpush1.bf16.msra.mxu1 %v5239_v54 }
 0x125   : > { %1457 = vmatprep.subr.bf16.mxu0 %v5240_v61  ;;  %1498 = vmatprep.subr.bf16.mxu1 %v5241_v62 }
 0x128   : > { %1458 = vmatpush1.bf16.msra.mxu0 %v3938_v59  ;;  %1499 = vmatpush1.bf16.msra.mxu1 %v3942_v60  ;;  %v5248_v59 = vld [vmem:[#allocation15_spill] sm:$0xff]  ;;  %v5249_v60 = vld [vmem:[#allocation16_spill] sm:$0xff] }
 0x129   : > { %1459 = vmatprep.subr.bf16.mxu0 %v5242_v6  ;;  %1500 = vmatprep.subr.bf16.mxu1 %v5243_v52 }
 0x12c   : > { %1460 = vmatpush1.bf16.msra.mxu0 %v5244_v24  ;;  %1501 = vmatpush1.bf16.msra.mxu1 %v5245_v51 }
 0x12d   : > { %1527 = vmatprep.subr.bf16.mxu0 %v5246_v4  ;;  %1568 = vmatprep.subr.bf16.mxu1 %v5247_v23 }
 0x12f   : > { %v954_v61 = vpop.f32.mrf.mxu0  ;;  %1478 = vmatmul.mubr.bf16.vlgmr.msra.gmra.mxu0 %v1444_v18  ;;  %v995_v62 = vpop.f32.mrf.mxu1  ;;  %1519 = vmatmul.mubr.bf16.vlgmr.msra.gmra.mxu1 %v1444_v18 }
 0x130   : > { %1528 = vmatpush1.bf16.msra.mxu0 %v5248_v59  ;;  %1569 = vmatpush1.bf16.msra.mxu1 %v5249_v60 }
 0x131   : > { %v956_v6 = vpop.f32.mrf.mxu0  ;;  %1529 = vmatprep.subr.bf16.mxu0 %v4001_v25  ;;  %v997_v24 = vpop.f32.mrf.mxu1  ;;  %1570 = vmatprep.subr.bf16.mxu1 %v4004_v26 }
 0x132   : > { %v1084_v52 = vmax.f32 %v954_v61, %v956_v6  ;;  %1559 = vmatprep.mubr.bf16.mxu0 %v5223_v13  ;;  %1600 = vmatprep.mubr.bf16.mxu1 %v5223_v13 }
 0x133   : > { %v958_v4 = vpop.f32.mrf.mxu0  ;;  %v999_v51 = vpop.f32.mrf.mxu1 }
 0x134   : > { %v1085_v23 = vmax.f32 %v1084_v52, %v995_v62  ;;  %1530 = vmatpush1.bf16.msra.mxu0 %v4021_v39  ;;  %1571 = vmatpush1.bf16.msra.mxu1 %v4025_v40 }
 0x135   : > { %v959_v59 = vpop.f32.mrf.mxu0  ;;  %1531 = vmatprep.subr.bf16.mxu0 %v4027_v41  ;;  %v1000_v25 = vpop.f32.mrf.mxu1  ;;  %1572 = vmatprep.subr.bf16.mxu1 %v5232_v12 }
 0x136   : > { %v1086_v60 = vmax.f32 %v1085_v23, %v997_v24 }
 0x138   : > { %1532 = vmatpush1.bf16.msra.mxu0 %v5233_v7  ;;  %1573 = vmatpush1.bf16.msra.mxu1 %v4051_v56 }
 0x139   : > { %1533 = vmatprep.subr.bf16.mxu0 %v4053_v57  ;;  %1574 = vmatprep.subr.bf16.mxu1 %v4056_v58 }
 0x13c   : > { %1534 = vmatpush1.bf16.msra.mxu0 %v5224_v63  ;;  %1575 = vmatpush1.bf16.msra.mxu1 %v5225_v0 }
 0x13d   : > { %1535 = vmatprep.subr.bf16.mxu0 %v5226_v1  ;;  %1576 = vmatprep.subr.bf16.mxu1 %v5227_v31 }
 0x140   : > { %1536 = vmatpush1.bf16.msra.mxu0 %v5228_v32  ;;  %1577 = vmatpush1.bf16.msra.mxu1 %v5229_v33 }
 0x141   : > { %1537 = vmatprep.subr.bf16.mxu0 %v5230_v42  ;;  %1578 = vmatprep.subr.bf16.mxu1 %v5231_v55 }
 0x144   : > { %1538 = vmatpush1.bf16.msra.mxu0 %v4119_v2  ;;  %1579 = vmatpush1.bf16.msra.mxu1 %v4123_v17 }
 0x145   : > { %1539 = vmatprep.subr.bf16.mxu0 %v4125_v16  ;;  %1580 = vmatprep.subr.bf16.mxu1 %v4128_v14 }
 0x148   : > { %1540 = vmatpush1.bf16.msra.mxu0 %v4143_v34  ;;  %1581 = vmatpush1.bf16.msra.mxu1 %v4147_v50 }
 0x149   : > { %1541 = vmatprep.subr.bf16.mxu0 %v4149_v49  ;;  %1582 = vmatprep.subr.bf16.mxu1 %v4152_v48 }
 0x14c   : > { %1542 = vmatpush1.bf16.msra.mxu0 %v4155_v47  ;;  %1583 = vmatpush1.bf16.msra.mxu1 %v4159_v8 }
 0x14d   : > { %1620 = vmatprep.subr.bf16.mxu0 %v3768_v3  ;;  %1661 = vmatprep.subr.bf16.mxu1 %v3783_v9 }
 0x14f   : > { %v1036_v59 = vpop.f32.mrf.mxu0  ;;  %1560 = vmatmul.mubr.bf16.vlgmr.msra.gmra.mxu0 %v1444_v18  ;;  %v1077_v23 = vpop.f32.mrf.mxu1  ;;  %1601 = vmatmul.mubr.bf16.vlgmr.msra.gmra.mxu1 %v1444_v18  ;;  %v5260_v18 = vld [vmem:[#allocation13_spill] sm:$0xff] }
 0x150   : > { %v1087_v25 = vmax.f32 %v1086_v60, %v1036_v59  ;;  %1621 = vmatpush1.bf16.msra.mxu0 %v3773_v5  ;;  %1662 = vmatpush1.bf16.msra.mxu1 %v3785_v10  ;;  %v5252_v59 = vld [vmem:[#allocation5_spill] sm:$0xff] }
 0x151   : > { %v1038_v4 = vpop.f32.mrf.mxu0  ;;  %1622 = vmatprep.subr.bf16.mxu0 %v3787_v11  ;;  %v4451_v62 = vpop.f32.mrf.mxu1  ;;  %1663 = vmatprep.subr.bf16.mxu1 %v3799_v15 }
 0x152   : > { %v1088_v61 = vmax.f32 %v1087_v25, %v1038_v4  ;;  %5250 = vst [vmem:[#allocation22_spill] sm:$0xff] %v4451_v62  ;;  %1652 = vmatprep.mubr.bf16.mxu0 %v5223_v13  ;;  %1693 = vmatprep.mubr.bf16.mxu1 %v5223_v13  ;;  %v5253_v25 = vld [vmem:[#allocation6_spill] sm:$0xff]  ;;  %v5255_v4 = vld [vmem:[#allocation8_spill] sm:$0xff] }
 0x153   : > { %v1040_v6 = vpop.f32.mrf.mxu0  ;;  %v1081_v52 = vpop.f32.mrf.mxu1  ;;  %v5261_v62 = vld [vmem:[#allocation14_spill] sm:$0xff] }
 0x154   : > { %v4456_v60 = vmax.f32 %v1088_v61, %v1077_v23  ;;  %1623 = vmatpush1.bf16.msra.mxu0 %v3812_v19  ;;  %1664 = vmatpush1.bf16.msra.mxu1 %v3816_v20  ;;  %v5254_v23 = vld [vmem:[#allocation7_spill] sm:$0xff]  ;;  %v5256_v61 = vld [vmem:[#allocation9_spill] sm:$0xff]  ;;  %v5257_v6 = vld [vmem:[#allocation10_spill] sm:$0xff] }
 0x155   : > { %v1041_v24 = vpop.f32.mrf.mxu0  ;;  %1624 = vmatprep.subr.bf16.mxu0 %v3818_v21  ;;  %v1082_v51 = vpop.f32.mrf.mxu1  ;;  %1665 = vmatprep.subr.bf16.mxu1 %v3821_v22  ;;  %v5258_v52 = vld [vmem:[#allocation11_spill] sm:$0xff] }
 0x156   : > { %5251 = vst [vmem:[#allocation23_spill] sm:$0xff] %v4456_v60  ;;  %v1619_v24 = vld [vmem:[%s3972_s29 + $0x14] sm:$0xf]  ;;  %v5259_v51 = vld [vmem:[#allocation12_spill] sm:$0xff] }
 0x158   : > { %1625 = vmatpush1.bf16.msra.mxu0 %v3836_v27  ;;  %1666 = vmatpush1.bf16.msra.mxu1 %v3840_v28 }
 0x159   : > { %1626 = vmatprep.subr.bf16.mxu0 %v3842_v29  ;;  %1667 = vmatprep.subr.bf16.mxu1 %v3845_v30 }
 0x15c   : > { %1627 = vmatpush1.bf16.msra.mxu0 %v3860_v35  ;;  %1668 = vmatpush1.bf16.msra.mxu1 %v3864_v36 }
 0x15d   : > { %1628 = vmatprep.subr.bf16.mxu0 %v3866_v37  ;;  %1669 = vmatprep.subr.bf16.mxu1 %v3869_v38 }
 0x160   : > { %1629 = vmatpush1.bf16.msra.mxu0 %v3884_v43  ;;  %1670 = vmatpush1.bf16.msra.mxu1 %v3888_v44 }
 0x161   : > { %1630 = vmatprep.subr.bf16.mxu0 %v3890_v45  ;;  %1671 = vmatprep.subr.bf16.mxu1 %v3895_v46 }
 0x164   : > { %1631 = vmatpush1.bf16.msra.mxu0 %v5238_v53  ;;  %1672 = vmatpush1.bf16.msra.mxu1 %v5239_v54 }
 0x165   : > { %1632 = vmatprep.subr.bf16.mxu0 %v5252_v59  ;;  %1673 = vmatprep.subr.bf16.mxu1 %v5253_v25  ;;  %v5264_v59 = vld [vmem:[#allocation17_spill] sm:$0xff] }
 0x168   : > { %1633 = vmatpush1.bf16.msra.mxu0 %v5254_v23  ;;  %1674 = vmatpush1.bf16.msra.mxu1 %v5255_v4  ;;  %v5262_v23 = vld [vmem:[#allocation15_spill] sm:$0xff]  ;;  %v5263_v4 = vld [vmem:[#allocation16_spill] sm:$0xff] }
 0x169   : > { %1634 = vmatprep.subr.bf16.mxu0 %v5256_v61  ;;  %1675 = vmatprep.subr.bf16.mxu1 %v5257_v6 }
 0x16c   : > { %1635 = vmatpush1.bf16.msra.mxu0 %v5258_v52  ;;  %1676 = vmatpush1.bf16.msra.mxu1 %v5259_v51 }
 0x16d   : > { %1702 = vmatprep.subr.bf16.mxu0 %v5260_v18  ;;  %1743 = vmatprep.subr.bf16.mxu1 %v5261_v62 }
 0x16f   : > { %v1129_v60 = vpop.f32.mrf.mxu0  ;;  %1653 = vmatmul.mubr.bf16.vlgmr.msra.gmra.mxu0 %v1619_v24  ;;  %v1170_v25 = vpop.f32.mrf.mxu1  ;;  %1694 = vmatmul.mubr.bf16.vlgmr.msra.gmra.mxu1 %v1619_v24 }
 0x170   : > { %1703 = vmatpush1.bf16.msra.mxu0 %v5262_v23  ;;  %1744 = vmatpush1.bf16.msra.mxu1 %v5263_v4 }
 0x171   : > { %v1131_v61 = vpop.f32.mrf.mxu0  ;;  %1704 = vmatprep.subr.bf16.mxu0 %v5264_v59  ;;  %v1172_v52 = vpop.f32.mrf.mxu1  ;;  %1745 = vmatprep.subr.bf16.mxu1 %v4004_v26 }
 0x172   : > { %v1259_v6 = vmax.f32 %v1129_v60, %v1131_v61  ;;  %1734 = vmatprep.mubr.bf16.mxu0 %v5223_v13  ;;  %1775 = vmatprep.mubr.bf16.mxu1 %v5223_v13 }
 0x173   : > { %v1133_v18 = vpop.f32.mrf.mxu0  ;;  %v1174_v51 = vpop.f32.mrf.mxu1 }
 0x174   : > { %v1260_v62 = vmax.f32 %v1259_v6, %v1170_v25  ;;  %1705 = vmatpush1.bf16.msra.mxu0 %v4021_v39  ;;  %1746 = vmatpush1.bf16.msra.mxu1 %v4025_v40 }
 0x175   : > { %v1134_v23 = vpop.f32.mrf.mxu0  ;;  %1706 = vmatprep.subr.bf16.mxu0 %v4027_v41  ;;  %v1175_v59 = vpop.f32.mrf.mxu1  ;;  %1747 = vmatprep.subr.bf16.mxu1 %v5232_v12 }
 0x176   : > { %v1261_v4 = vmax.f32 %v1260_v62, %v1172_v52 }
 0x178   : > { %1707 = vmatpush1.bf16.msra.mxu0 %v5233_v7  ;;  %1748 = vmatpush1.bf16.msra.mxu1 %v4051_v56 }
 0x179   : > { %1708 = vmatprep.subr.bf16.mxu0 %v4053_v57  ;;  %1749 = vmatprep.subr.bf16.mxu1 %v4056_v58 }
 0x17c   : > { %1709 = vmatpush1.bf16.msra.mxu0 %v5224_v63  ;;  %1750 = vmatpush1.bf16.msra.mxu1 %v5225_v0 }
 0x17d   : > { %1710 = vmatprep.subr.bf16.mxu0 %v5226_v1  ;;  %1751 = vmatprep.subr.bf16.mxu1 %v5227_v31 }
 0x180   : > { %1711 = vmatpush1.bf16.msra.mxu0 %v5228_v32  ;;  %1752 = vmatpush1.bf16.msra.mxu1 %v5229_v33 }
 0x181   : > { %1712 = vmatprep.subr.bf16.mxu0 %v5230_v42  ;;  %1753 = vmatprep.subr.bf16.mxu1 %v5231_v55 }
 0x184   : > { %1713 = vmatpush1.bf16.msra.mxu0 %v4119_v2  ;;  %1754 = vmatpush1.bf16.msra.mxu1 %v4123_v17 }
 0x185   : > { %1714 = vmatprep.subr.bf16.mxu0 %v4125_v16  ;;  %1755 = vmatprep.subr.bf16.mxu1 %v4128_v14 }
 0x188   : > { %1715 = vmatpush1.bf16.msra.mxu0 %v4143_v34  ;;  %1756 = vmatpush1.bf16.msra.mxu1 %v4147_v50 }
 0x189   : > { %1716 = vmatprep.subr.bf16.mxu0 %v4149_v49  ;;  %1757 = vmatprep.subr.bf16.mxu1 %v4152_v48 }
 0x18c   : > { %1717 = vmatpush1.bf16.msra.mxu0 %v4155_v47  ;;  %1758 = vmatpush1.bf16.msra.mxu1 %v4159_v8 }
 0x18d   : > { %1795 = vmatprep.subr.bf16.mxu0 %v3768_v3  ;;  %1836 = vmatprep.subr.bf16.mxu1 %v3783_v9 }
 0x18f   : > { %v1211_v62 = vpop.f32.mrf.mxu0  ;;  %1735 = vmatmul.mubr.bf16.vlgmr.msra.gmra.mxu0 %v1619_v24  ;;  %v1252_v18 = vpop.f32.mrf.mxu1  ;;  %1776 = vmatmul.mubr.bf16.vlgmr.msra.gmra.mxu1 %v1619_v24  ;;  %v5275_v24 = vld [vmem:[#allocation13_spill] sm:$0xff] }
 0x190   : > { %v1262_v60 = vmax.f32 %v1261_v4, %v1211_v62  ;;  %1796 = vmatpush1.bf16.msra.mxu0 %v3773_v5  ;;  %1837 = vmatpush1.bf16.msra.mxu1 %v3785_v10  ;;  %v5267_v62 = vld [vmem:[#allocation5_spill] sm:$0xff] }
 0x191   : > { %v1213_v59 = vpop.f32.mrf.mxu0  ;;  %1797 = vmatprep.subr.bf16.mxu0 %v3787_v11  ;;  %v4526_v23 = vpop.f32.mrf.mxu1  ;;  %1838 = vmatprep.subr.bf16.mxu1 %v3799_v15 }
 0x192   : > { %v1263_v25 = vmax.f32 %v1262_v60, %v1213_v59  ;;  %5265 = vst [vmem:[#allocation24_spill] sm:$0xff] %v4526_v23  ;;  %1827 = vmatprep.mubr.bf16.mxu0 %v5223_v13  ;;  %1868 = vmatprep.mubr.bf16.mxu1 %v5223_v13  ;;  %v5268_v60 = vld [vmem:[#allocation6_spill] sm:$0xff]  ;;  %v5270_v59 = vld [vmem:[#allocation8_spill] sm:$0xff] }
 0x193   : > { %v1215_v61 = vpop.f32.mrf.mxu0  ;;  %v1256_v6 = vpop.f32.mrf.mxu1  ;;  %v5276_v23 = vld [vmem:[#allocation14_spill] sm:$0xff] }
 0x194   : > { %v4531_v4 = vmax.f32 %v1263_v25, %v1252_v18  ;;  %1798 = vmatpush1.bf16.msra.mxu0 %v3812_v19  ;;  %1839 = vmatpush1.bf16.msra.mxu1 %v3816_v20  ;;  %v5269_v18 = vld [vmem:[#allocation7_spill] sm:$0xff]  ;;  %v5271_v25 = vld [vmem:[#allocation9_spill] sm:$0xff]  ;;  %v5272_v61 = vld [vmem:[#allocation10_spill] sm:$0xff] }
 0x195   : > { %v1216_v52 = vpop.f32.mrf.mxu0  ;;  %1799 = vmatprep.subr.bf16.mxu0 %v3818_v21  ;;  %v1257_v51 = vpop.f32.mrf.mxu1  ;;  %1840 = vmatprep.subr.bf16.mxu1 %v3821_v22  ;;  %v5273_v6 = vld [vmem:[#allocation11_spill] sm:$0xff] }
 0x196   : > { %5266 = vst [vmem:[#allocation25_spill] sm:$0xff] %v4531_v4  ;;  %v1794_v52 = vld [vmem:[%s3972_s29 + $0x18] sm:$0xf]  ;;  %v5274_v51 = vld [vmem:[#allocation12_spill] sm:$0xff] }
 0x198   : > { %1800 = vmatpush1.bf16.msra.mxu0 %v3836_v27  ;;  %1841 = vmatpush1.bf16.msra.mxu1 %v3840_v28 }
 0x199   : > { %1801 = vmatprep.subr.bf16.mxu0 %v3842_v29  ;;  %1842 = vmatprep.subr.bf16.mxu1 %v3845_v30 }
 0x19c   : > { %1802 = vmatpush1.bf16.msra.mxu0 %v3860_v35  ;;  %1843 = vmatpush1.bf16.msra.mxu1 %v3864_v36 }
 0x19d   : > { %1803 = vmatprep.subr.bf16.mxu0 %v3866_v37  ;;  %1844 = vmatprep.subr.bf16.mxu1 %v3869_v38 }
 0x1a0   : > { %1804 = vmatpush1.bf16.msra.mxu0 %v3884_v43  ;;  %1845 = vmatpush1.bf16.msra.mxu1 %v3888_v44 }
 0x1a1   : > { %1805 = vmatprep.subr.bf16.mxu0 %v3890_v45  ;;  %1846 = vmatprep.subr.bf16.mxu1 %v3895_v46 }
 0x1a4   : > { %1806 = vmatpush1.bf16.msra.mxu0 %v5238_v53  ;;  %1847 = vmatpush1.bf16.msra.mxu1 %v5239_v54 }
 0x1a5   : > { %1807 = vmatprep.subr.bf16.mxu0 %v5267_v62  ;;  %1848 = vmatprep.subr.bf16.mxu1 %v5268_v60  ;;  %v5279_v62 = vld [vmem:[#allocation17_spill] sm:$0xff] }
 0x1a8   : > { %1808 = vmatpush1.bf16.msra.mxu0 %v5269_v18  ;;  %1849 = vmatpush1.bf16.msra.mxu1 %v5270_v59  ;;  %v5277_v18 = vld [vmem:[#allocation15_spill] sm:$0xff]  ;;  %v5278_v59 = vld [vmem:[#allocation16_spill] sm:$0xff] }
 0x1a9   : > { %1809 = vmatprep.subr.bf16.mxu0 %v5271_v25  ;;  %1850 = vmatprep.subr.bf16.mxu1 %v5272_v61 }
 0x1ac   : > { %1810 = vmatpush1.bf16.msra.mxu0 %v5273_v6  ;;  %1851 = vmatpush1.bf16.msra.mxu1 %v5274_v51 }
 0x1ad   : > { %1877 = vmatprep.subr.bf16.mxu0 %v5275_v24  ;;  %1918 = vmatprep.subr.bf16.mxu1 %v5276_v23 }
 0x1af   : > { %v1304_v4 = vpop.f32.mrf.mxu0  ;;  %1828 = vmatmul.mubr.bf16.vlgmr.msra.gmra.mxu0 %v1794_v52  ;;  %v1345_v60 = vpop.f32.mrf.mxu1  ;;  %1869 = vmatmul.mubr.bf16.vlgmr.msra.gmra.mxu1 %v1794_v52 }
 0x1b0   : > { %1878 = vmatpush1.bf16.msra.mxu0 %v5277_v18  ;;  %1919 = vmatpush1.bf16.msra.mxu1 %v5278_v59 }
 0x1b1   : > { %v1306_v25 = vpop.f32.mrf.mxu0  ;;  %1879 = vmatprep.subr.bf16.mxu0 %v5279_v62  ;;  %v1347_v6 = vpop.f32.mrf.mxu1  ;;  %1920 = vmatprep.subr.bf16.mxu1 %v4004_v26 }
 0x1b2   : > { %v1434_v61 = vmax.f32 %v1304_v4, %v1306_v25  ;;  %1909 = vmatprep.mubr.bf16.mxu0 %v5223_v13  ;;  %1950 = vmatprep.mubr.bf16.mxu1 %v5223_v13 }
 0x1b3   : > { %v1308_v24 = vpop.f32.mrf.mxu0  ;;  %v1349_v51 = vpop.f32.mrf.mxu1 }
 0x1b4   : > { %v1435_v23 = vmax.f32 %v1434_v61, %v1345_v60  ;;  %1880 = vmatpush1.bf16.msra.mxu0 %v4021_v39  ;;  %1921 = vmatpush1.bf16.msra.mxu1 %v4025_v40 }
 0x1b5   : > { %v1309_v18 = vpop.f32.mrf.mxu0  ;;  %1881 = vmatprep.subr.bf16.mxu0 %v4027_v41  ;;  %v1350_v62 = vpop.f32.mrf.mxu1  ;;  %1922 = vmatprep.subr.bf16.mxu1 %v5232_v12 }
 0x1b6   : > { %v1436_v59 = vmax.f32 %v1435_v23, %v1347_v6 }
 0x1b8   : > { %1882 = vmatpush1.bf16.msra.mxu0 %v5233_v7  ;;  %1923 = vmatpush1.bf16.msra.mxu1 %v4051_v56 }
 0x1b9   : > { %1883 = vmatprep.subr.bf16.mxu0 %v4053_v57  ;;  %1924 = vmatprep.subr.bf16.mxu1 %v4056_v58 }
 0x1bc   : > { %1884 = vmatpush1.bf16.msra.mxu0 %v5224_v63  ;;  %1925 = vmatpush1.bf16.msra.mxu1 %v5225_v0 }
 0x1bd   : > { %1885 = vmatprep.subr.bf16.mxu0 %v5226_v1  ;;  %1926 = vmatprep.subr.bf16.mxu1 %v5227_v31 }
 0x1c0   : > { %1886 = vmatpush1.bf16.msra.mxu0 %v5228_v32  ;;  %1927 = vmatpush1.bf16.msra.mxu1 %v5229_v33 }
 0x1c1   : > { %1887 = vmatprep.subr.bf16.mxu0 %v5230_v42  ;;  %1928 = vmatprep.subr.bf16.mxu1 %v5231_v55 }
 0x1c4   : > { %1888 = vmatpush1.bf16.msra.mxu0 %v4119_v2  ;;  %1929 = vmatpush1.bf16.msra.mxu1 %v4123_v17 }
 0x1c5   : > { %1889 = vmatprep.subr.bf16.mxu0 %v4125_v16  ;;  %1930 = vmatprep.subr.bf16.mxu1 %v4128_v14 }
 0x1c8   : > { %1890 = vmatpush1.bf16.msra.mxu0 %v4143_v34  ;;  %1931 = vmatpush1.bf16.msra.mxu1 %v4147_v50 }
 0x1c9   : > { %1891 = vmatprep.subr.bf16.mxu0 %v4149_v49  ;;  %1932 = vmatprep.subr.bf16.mxu1 %v4152_v48 }
 0x1cc   : > { %1892 = vmatpush1.bf16.msra.mxu0 %v4155_v47  ;;  %1933 = vmatpush1.bf16.msra.mxu1 %v4159_v8 }
 0x1cd   : > { %1970 = vmatprep.subr.bf16.mxu0 %v3768_v3  ;;  %2011 = vmatprep.subr.bf16.mxu1 %v3783_v9 }
 0x1cf   : > { %v1386_v23 = vpop.f32.mrf.mxu0  ;;  %1910 = vmatmul.mubr.bf16.vlgmr.msra.gmra.mxu0 %v1794_v52  ;;  %v1427_v24 = vpop.f32.mrf.mxu1  ;;  %1951 = vmatmul.mubr.bf16.vlgmr.msra.gmra.mxu1 %v1794_v52  ;;  %v5290_v52 = vld [vmem:[#allocation13_spill] sm:$0xff] }
 0x1d0   : > { %v1437_v4 = vmax.f32 %v1436_v59, %v1386_v23  ;;  %1971 = vmatpush1.bf16.msra.mxu0 %v3773_v5  ;;  %2012 = vmatpush1.bf16.msra.mxu1 %v3785_v10  ;;  %v5282_v23 = vld [vmem:[#allocation5_spill] sm:$0xff] }
 0x1d1   : > { %v1388_v62 = vpop.f32.mrf.mxu0  ;;  %1972 = vmatprep.subr.bf16.mxu0 %v3787_v11  ;;  %v4601_v18 = vpop.f32.mrf.mxu1  ;;  %2013 = vmatprep.subr.bf16.mxu1 %v3799_v15 }
 0x1d2   : > { %v1438_v60 = vmax.f32 %v1437_v4, %v1388_v62  ;;  %5280 = vst [vmem:[#allocation26_spill] sm:$0xff] %v4601_v18  ;;  %2002 = vmatprep.mubr.bf16.mxu0 %v5223_v13  ;;  %2043 = vmatprep.mubr.bf16.mxu1 %v5223_v13  ;;  %v5283_v4 = vld [vmem:[#allocation6_spill] sm:$0xff]  ;;  %v5285_v62 = vld [vmem:[#allocation8_spill] sm:$0xff] }
 0x1d3   : > { %v1390_v25 = vpop.f32.mrf.mxu0  ;;  %v1431_v61 = vpop.f32.mrf.mxu1  ;;  %v5291_v18 = vld [vmem:[#allocation14_spill] sm:$0xff] }
 0x1d4   : > { %v4606_v59 = vmax.f32 %v1438_v60, %v1427_v24  ;;  %1973 = vmatpush1.bf16.msra.mxu0 %v3812_v19  ;;  %2014 = vmatpush1.bf16.msra.mxu1 %v3816_v20  ;;  %v5284_v24 = vld [vmem:[#allocation7_spill] sm:$0xff]  ;;  %v5286_v60 = vld [vmem:[#allocation9_spill] sm:$0xff]  ;;  %v5287_v25 = vld [vmem:[#allocation10_spill] sm:$0xff] }
 0x1d5   : > { %v1391_v6 = vpop.f32.mrf.mxu0  ;;  %1974 = vmatprep.subr.bf16.mxu0 %v3818_v21  ;;  %v1432_v51 = vpop.f32.mrf.mxu1  ;;  %2015 = vmatprep.subr.bf16.mxu1 %v3821_v22  ;;  %v5288_v61 = vld [vmem:[#allocation11_spill] sm:$0xff] }
 0x1d6   : > { %5281 = vst [vmem:[#allocation27_spill] sm:$0xff] %v4606_v59  ;;  %v1969_v6 = vld [vmem:[%s3972_s29 + $0x1c] sm:$0xf]  ;;  %v5289_v51 = vld [vmem:[#allocation12_spill] sm:$0xff] }
 0x1d8   : > { %1975 = vmatpush1.bf16.msra.mxu0 %v3836_v27  ;;  %2016 = vmatpush1.bf16.msra.mxu1 %v3840_v28 }
 0x1d9   : > { %1976 = vmatprep.subr.bf16.mxu0 %v3842_v29  ;;  %2017 = vmatprep.subr.bf16.mxu1 %v3845_v30 }
 0x1dc   : > { %1977 = vmatpush1.bf16.msra.mxu0 %v3860_v35  ;;  %2018 = vmatpush1.bf16.msra.mxu1 %v3864_v36 }
 0x1dd   : > { %1978 = vmatprep.subr.bf16.mxu0 %v3866_v37  ;;  %2019 = vmatprep.subr.bf16.mxu1 %v3869_v38 }
 0x1e0   : > { %1979 = vmatpush1.bf16.msra.mxu0 %v3884_v43  ;;  %2020 = vmatpush1.bf16.msra.mxu1 %v3888_v44 }
 0x1e1   : > { %1980 = vmatprep.subr.bf16.mxu0 %v3890_v45  ;;  %2021 = vmatprep.subr.bf16.mxu1 %v3895_v46 }
 0x1e4   : > { %1981 = vmatpush1.bf16.msra.mxu0 %v5238_v53  ;;  %2022 = vmatpush1.bf16.msra.mxu1 %v5239_v54 }
 0x1e5   : > { %1982 = vmatprep.subr.bf16.mxu0 %v5282_v23  ;;  %2023 = vmatprep.subr.bf16.mxu1 %v5283_v4  ;;  %v5294_v23 = vld [vmem:[#allocation17_spill] sm:$0xff] }
 0x1e8   : > { %1983 = vmatpush1.bf16.msra.mxu0 %v5284_v24  ;;  %2024 = vmatpush1.bf16.msra.mxu1 %v5285_v62  ;;  %v5292_v24 = vld [vmem:[#allocation15_spill] sm:$0xff]  ;;  %v5293_v62 = vld [vmem:[#allocation16_spill] sm:$0xff] }
 0x1e9   : > { %1984 = vmatprep.subr.bf16.mxu0 %v5286_v60  ;;  %2025 = vmatprep.subr.bf16.mxu1 %v5287_v25 }
 0x1ec   : > { %1985 = vmatpush1.bf16.msra.mxu0 %v5288_v61  ;;  %2026 = vmatpush1.bf16.msra.mxu1 %v5289_v51 }
 0x1ed   : > { %2052 = vmatprep.subr.bf16.mxu0 %v5290_v52  ;;  %2093 = vmatprep.subr.bf16.mxu1 %v5291_v18 }
 0x1ef   : > { %v1479_v59 = vpop.f32.mrf.mxu0  ;;  %2003 = vmatmul.mubr.bf16.vlgmr.msra.gmra.mxu0 %v1969_v6  ;;  %v1520_v4 = vpop.f32.mrf.mxu1  ;;  %2044 = vmatmul.mubr.bf16.vlgmr.msra.gmra.mxu1 %v1969_v6 }
 0x1f0   : > { %2053 = vmatpush1.bf16.msra.mxu0 %v5292_v24  ;;  %2094 = vmatpush1.bf16.msra.mxu1 %v5293_v62 }
 0x1f1   : > { %v1481_v60 = vpop.f32.mrf.mxu0  ;;  %2054 = vmatprep.subr.bf16.mxu0 %v5294_v23  ;;  %v1522_v61 = vpop.f32.mrf.mxu1  ;;  %2095 = vmatprep.subr.bf16.mxu1 %v4004_v26 }
 0x1f2   : > { %v1609_v25 = vmax.f32 %v1479_v59, %v1481_v60  ;;  %2084 = vmatprep.mubr.bf16.mxu0 %v5223_v13  ;;  %2125 = vmatprep.mubr.bf16.mxu1 %v5223_v13 }
 0x1f3   : > { %v1483_v52 = vpop.f32.mrf.mxu0  ;;  %v1524_v51 = vpop.f32.mrf.mxu1 }
 0x1f4   : > { %v1610_v18 = vmax.f32 %v1609_v25, %v1520_v4  ;;  %2055 = vmatpush1.bf16.msra.mxu0 %v4021_v39  ;;  %2096 = vmatpush1.bf16.msra.mxu1 %v4025_v40 }
 0x1f5   : > { %v1484_v24 = vpop.f32.mrf.mxu0  ;;  %2056 = vmatprep.subr.bf16.mxu0 %v4027_v41  ;;  %v1525_v23 = vpop.f32.mrf.mxu1  ;;  %2097 = vmatprep.subr.bf16.mxu1 %v5232_v12 }
 0x1f6   : > { %v1611_v62 = vmax.f32 %v1610_v18, %v1522_v61 }
 0x1f8   : > { %2057 = vmatpush1.bf16.msra.mxu0 %v5233_v7  ;;  %2098 = vmatpush1.bf16.msra.mxu1 %v4051_v56 }
 0x1f9   : > { %2058 = vmatprep.subr.bf16.mxu0 %v4053_v57  ;;  %2099 = vmatprep.subr.bf16.mxu1 %v4056_v58 }
 0x1fc   : > { %2059 = vmatpush1.bf16.msra.mxu0 %v5224_v63  ;;  %2100 = vmatpush1.bf16.msra.mxu1 %v5225_v0 }
 0x1fd   : > { %2060 = vmatprep.subr.bf16.mxu0 %v5226_v1  ;;  %2101 = vmatprep.subr.bf16.mxu1 %v5227_v31 }
 0x200   : > { %2061 = vmatpush1.bf16.msra.mxu0 %v5228_v32  ;;  %2102 = vmatpush1.bf16.msra.mxu1 %v5229_v33 }
 0x201   : > { %2062 = vmatprep.subr.bf16.mxu0 %v5230_v42  ;;  %2103 = vmatprep.subr.bf16.mxu1 %v5231_v55 }
 0x204   : > { %2063 = vmatpush1.bf16.msra.mxu0 %v4119_v2  ;;  %2104 = vmatpush1.bf16.msra.mxu1 %v4123_v17 }
 0x205   : > { %2064 = vmatprep.subr.bf16.mxu0 %v4125_v16  ;;  %2105 = vmatprep.subr.bf16.mxu1 %v4128_v14 }
 0x208   : > { %2065 = vmatpush1.bf16.msra.mxu0 %v4143_v34  ;;  %2106 = vmatpush1.bf16.msra.mxu1 %v4147_v50 }
 0x209   : > { %2066 = vmatprep.subr.bf16.mxu0 %v4149_v49  ;;  %2107 = vmatprep.subr.bf16.mxu1 %v4152_v48 }
 0x20c   : > { %2067 = vmatpush1.bf16.msra.mxu0 %v4155_v47  ;;  %2108 = vmatpush1.bf16.msra.mxu1 %v4159_v8 }
 0x20d   : > { %2145 = vmatprep.subr.bf16.mxu0 %v3768_v3  ;;  %2186 = vmatprep.subr.bf16.mxu1 %v3783_v9 }
 0x20f   : > { %v1561_v18 = vpop.f32.mrf.mxu0  ;;  %2085 = vmatmul.mubr.bf16.vlgmr.msra.gmra.mxu0 %v1969_v6  ;;  %v1602_v52 = vpop.f32.mrf.mxu1  ;;  %2126 = vmatmul.mubr.bf16.vlgmr.msra.gmra.mxu1 %v1969_v6  ;;  %v5305_v6 = vld [vmem:[#allocation13_spill] sm:$0xff] }
 0x210   : > { %v1612_v59 = vmax.f32 %v1611_v62, %v1561_v18  ;;  %2146 = vmatpush1.bf16.msra.mxu0 %v3773_v5  ;;  %2187 = vmatpush1.bf16.msra.mxu1 %v3785_v10  ;;  %v5297_v18 = vld [vmem:[#allocation5_spill] sm:$0xff] }
 0x211   : > { %v1563_v23 = vpop.f32.mrf.mxu0  ;;  %2147 = vmatprep.subr.bf16.mxu0 %v3787_v11  ;;  %v4676_v24 = vpop.f32.mrf.mxu1  ;;  %2188 = vmatprep.subr.bf16.mxu1 %v3799_v15 }
 0x212   : > { %v1613_v4 = vmax.f32 %v1612_v59, %v1563_v23  ;;  %5295 = vst [vmem:[#allocation18_spill] sm:$0xff] %v4676_v24  ;;  %2177 = vmatprep.mubr.bf16.mxu0 %v5223_v13  ;;  %2218 = vmatprep.mubr.bf16.mxu1 %v5223_v13  ;;  %v5298_v59 = vld [vmem:[#allocation6_spill] sm:$0xff]  ;;  %v5300_v23 = vld [vmem:[#allocation8_spill] sm:$0xff] }
 0x213   : > { %v1565_v60 = vpop.f32.mrf.mxu0  ;;  %v1606_v25 = vpop.f32.mrf.mxu1  ;;  %v5306_v24 = vld [vmem:[#allocation14_spill] sm:$0xff] }
 0x214   : > { %v4681_v62 = vmax.f32 %v1613_v4, %v1602_v52  ;;  %2148 = vmatpush1.bf16.msra.mxu0 %v3812_v19  ;;  %2189 = vmatpush1.bf16.msra.mxu1 %v3816_v20  ;;  %v5299_v52 = vld [vmem:[#allocation7_spill] sm:$0xff]  ;;  %v5301_v4 = vld [vmem:[#allocation9_spill] sm:$0xff]  ;;  %v5302_v60 = vld [vmem:[#allocation10_spill] sm:$0xff] }
 0x215   : > { %v1566_v61 = vpop.f32.mrf.mxu0  ;;  %2149 = vmatprep.subr.bf16.mxu0 %v3818_v21  ;;  %v1607_v51 = vpop.f32.mrf.mxu1  ;;  %2190 = vmatprep.subr.bf16.mxu1 %v3821_v22  ;;  %v5303_v25 = vld [vmem:[#allocation11_spill] sm:$0xff] }
 0x216   : > { %5296 = vst [vmem:[#allocation19_spill] sm:$0xff] %v4681_v62  ;;  %v2144_v61 = vld [vmem:[%s3972_s29 + $0x20] sm:$0xf]  ;;  %v5304_v51 = vld [vmem:[#allocation12_spill] sm:$0xff] }
 0x218   : > { %2150 = vmatpush1.bf16.msra.mxu0 %v3836_v27  ;;  %2191 = vmatpush1.bf16.msra.mxu1 %v3840_v28 }
 0x219   : > { %2151 = vmatprep.subr.bf16.mxu0 %v3842_v29  ;;  %2192 = vmatprep.subr.bf16.mxu1 %v3845_v30 }
 0x21c   : > { %2152 = vmatpush1.bf16.msra.mxu0 %v3860_v35  ;;  %2193 = vmatpush1.bf16.msra.mxu1 %v3864_v36 }
 0x21d   : > { %2153 = vmatprep.subr.bf16.mxu0 %v3866_v37  ;;  %2194 = vmatprep.subr.bf16.mxu1 %v3869_v38 }
 0x220   : > { %2154 = vmatpush1.bf16.msra.mxu0 %v3884_v43  ;;  %2195 = vmatpush1.bf16.msra.mxu1 %v3888_v44 }
 0x221   : > { %2155 = vmatprep.subr.bf16.mxu0 %v3890_v45  ;;  %2196 = vmatprep.subr.bf16.mxu1 %v3895_v46 }
 0x224   : > { %2156 = vmatpush1.bf16.msra.mxu0 %v5238_v53  ;;  %2197 = vmatpush1.bf16.msra.mxu1 %v5239_v54 }
 0x225   : > { %2157 = vmatprep.subr.bf16.mxu0 %v5297_v18  ;;  %2198 = vmatprep.subr.bf16.mxu1 %v5298_v59  ;;  %v5309_v18 = vld [vmem:[#allocation17_spill] sm:$0xff] }
 0x228   : > { %2158 = vmatpush1.bf16.msra.mxu0 %v5299_v52  ;;  %2199 = vmatpush1.bf16.msra.mxu1 %v5300_v23  ;;  %v5307_v52 = vld [vmem:[#allocation15_spill] sm:$0xff]  ;;  %v5308_v23 = vld [vmem:[#allocation16_spill] sm:$0xff] }
 0x229   : > { %2159 = vmatprep.subr.bf16.mxu0 %v5301_v4  ;;  %2200 = vmatprep.subr.bf16.mxu1 %v5302_v60 }
 0x22c   : > { %2160 = vmatpush1.bf16.msra.mxu0 %v5303_v25  ;;  %2201 = vmatpush1.bf16.msra.mxu1 %v5304_v51 }
 0x22d   : > { %2227 = vmatprep.subr.bf16.mxu0 %v5305_v6  ;;  %2268 = vmatprep.subr.bf16.mxu1 %v5306_v24 }
 0x22f   : > { %v1654_v62 = vpop.f32.mrf.mxu0  ;;  %2178 = vmatmul.mubr.bf16.vlgmr.msra.gmra.mxu0 %v2144_v61  ;;  %v1695_v59 = vpop.f32.mrf.mxu1  ;;  %2219 = vmatmul.mubr.bf16.vlgmr.msra.gmra.mxu1 %v2144_v61 }
 0x230   : > { %2228 = vmatpush1.bf16.msra.mxu0 %v5307_v52  ;;  %2269 = vmatpush1.bf16.msra.mxu1 %v5308_v23 }
 0x231   : > { %v1656_v4 = vpop.f32.mrf.mxu0  ;;  %2229 = vmatprep.subr.bf16.mxu0 %v5309_v18  ;;  %v1697_v25 = vpop.f32.mrf.mxu1  ;;  %2270 = vmatprep.subr.bf16.mxu1 %v4004_v26 }
 0x232   : > { %v1784_v60 = vmax.f32 %v1654_v62, %v1656_v4  ;;  %2259 = vmatprep.mubr.bf16.mxu0 %v5223_v13  ;;  %2300 = vmatprep.mubr.bf16.mxu1 %v5223_v13 }
 0x233   : > { %v1658_v6 = vpop.f32.mrf.mxu0  ;;  %v1699_v51 = vpop.f32.mrf.mxu1 }
 0x234   : > { %v1785_v24 = vmax.f32 %v1784_v60, %v1695_v59  ;;  %2230 = vmatpush1.bf16.msra.mxu0 %v4021_v39  ;;  %2271 = vmatpush1.bf16.msra.mxu1 %v4025_v40 }
 0x235   : > { %v1659_v52 = vpop.f32.mrf.mxu0  ;;  %2231 = vmatprep.subr.bf16.mxu0 %v4027_v41  ;;  %v1700_v18 = vpop.f32.mrf.mxu1  ;;  %2272 = vmatprep.subr.bf16.mxu1 %v5232_v12 }
 0x236   : > { %v1786_v23 = vmax.f32 %v1785_v24, %v1697_v25 }
 0x238   : > { %2232 = vmatpush1.bf16.msra.mxu0 %v5233_v7  ;;  %2273 = vmatpush1.bf16.msra.mxu1 %v4051_v56 }
 0x239   : > { %2233 = vmatprep.subr.bf16.mxu0 %v4053_v57  ;;  %2274 = vmatprep.subr.bf16.mxu1 %v4056_v58 }
 0x23c   : > { %2234 = vmatpush1.bf16.msra.mxu0 %v5224_v63  ;;  %2275 = vmatpush1.bf16.msra.mxu1 %v5225_v0 }
 0x23d   : > { %2235 = vmatprep.subr.bf16.mxu0 %v5226_v1  ;;  %2276 = vmatprep.subr.bf16.mxu1 %v5227_v31 }
 0x240   : > { %2236 = vmatpush1.bf16.msra.mxu0 %v5228_v32  ;;  %2277 = vmatpush1.bf16.msra.mxu1 %v5229_v33 }
 0x241   : > { %2237 = vmatprep.subr.bf16.mxu0 %v5230_v42  ;;  %2278 = vmatprep.subr.bf16.mxu1 %v5231_v55 }
 0x244   : > { %2238 = vmatpush1.bf16.msra.mxu0 %v4119_v2  ;;  %2279 = vmatpush1.bf16.msra.mxu1 %v4123_v17 }
 0x245   : > { %2239 = vmatprep.subr.bf16.mxu0 %v4125_v16  ;;  %2280 = vmatprep.subr.bf16.mxu1 %v4128_v14 }
 0x248   : > { %2240 = vmatpush1.bf16.msra.mxu0 %v4143_v34  ;;  %2281 = vmatpush1.bf16.msra.mxu1 %v4147_v50 }
 0x249   : > { %2241 = vmatprep.subr.bf16.mxu0 %v4149_v49  ;;  %2282 = vmatprep.subr.bf16.mxu1 %v4152_v48 }
 0x24c   : > { %2242 = vmatpush1.bf16.msra.mxu0 %v4155_v47  ;;  %2283 = vmatpush1.bf16.msra.mxu1 %v4159_v8 }
 0x24d   : > { %2320 = vmatprep.subr.bf16.mxu0 %v3768_v3  ;;  %2361 = vmatprep.subr.bf16.mxu1 %v3783_v9 }
 0x24f   : > { %v1736_v24 = vpop.f32.mrf.mxu0  ;;  %2260 = vmatmul.mubr.bf16.vlgmr.msra.gmra.mxu0 %v2144_v61  ;;  %v1777_v6 = vpop.f32.mrf.mxu1  ;;  %2301 = vmatmul.mubr.bf16.vlgmr.msra.gmra.mxu1 %v2144_v61  ;;  %v5320_v61 = vld [vmem:[#allocation13_spill] sm:$0xff] }
 0x250   : > { %v1787_v62 = vmax.f32 %v1786_v23, %v1736_v24  ;;  %2321 = vmatpush1.bf16.msra.mxu0 %v3773_v5  ;;  %2362 = vmatpush1.bf16.msra.mxu1 %v3785_v10  ;;  %v5312_v24 = vld [vmem:[#allocation5_spill] sm:$0xff] }
 0x251   : > { %v1738_v18 = vpop.f32.mrf.mxu0  ;;  %2322 = vmatprep.subr.bf16.mxu0 %v3787_v11  ;;  %v4751_v52 = vpop.f32.mrf.mxu1  ;;  %2363 = vmatprep.subr.bf16.mxu1 %v3799_v15 }
 0x252   : > { %v1788_v59 = vmax.f32 %v1787_v62, %v1738_v18  ;;  %5310 = vst [vmem:[#allocation3_spill] sm:$0xff] %v4751_v52  ;;  %2352 = vmatprep.mubr.bf16.mxu0 %v5223_v13  ;;  %2393 = vmatprep.mubr.bf16.mxu1 %v5223_v13  ;;  %v5313_v62 = vld [vmem:[#allocation6_spill] sm:$0xff]  ;;  %v5315_v18 = vld [vmem:[#allocation8_spill] sm:$0xff] }
 0x253   : > { %v1740_v4 = vpop.f32.mrf.mxu0  ;;  %v1781_v60 = vpop.f32.mrf.mxu1  ;;  %v5321_v52 = vld [vmem:[#allocation14_spill] sm:$0xff] }
 0x254   : > { %v4756_v23 = vmax.f32 %v1788_v59, %v1777_v6  ;;  %2323 = vmatpush1.bf16.msra.mxu0 %v3812_v19  ;;  %2364 = vmatpush1.bf16.msra.mxu1 %v3816_v20  ;;  %v5314_v6 = vld [vmem:[#allocation7_spill] sm:$0xff]  ;;  %v5316_v59 = vld [vmem:[#allocation9_spill] sm:$0xff]  ;;  %v5317_v4 = vld [vmem:[#allocation10_spill] sm:$0xff] }
 0x255   : > { %v1741_v25 = vpop.f32.mrf.mxu0  ;;  %2324 = vmatprep.subr.bf16.mxu0 %v3818_v21  ;;  %v1782_v51 = vpop.f32.mrf.mxu1  ;;  %2365 = vmatprep.subr.bf16.mxu1 %v3821_v22  ;;  %v5318_v60 = vld [vmem:[#allocation11_spill] sm:$0xff] }
 0x256   : > { %5311 = vst [vmem:[#allocation4_spill] sm:$0xff] %v4756_v23  ;;  %v2319_v25 = vld [vmem:[%s3972_s29 + $0x24] sm:$0xf]  ;;  %v5319_v51 = vld [vmem:[#allocation12_spill] sm:$0xff] }
 0x258   : > { %2325 = vmatpush1.bf16.msra.mxu0 %v3836_v27  ;;  %2366 = vmatpush1.bf16.msra.mxu1 %v3840_v28 }
 0x259   : > { %2326 = vmatprep.subr.bf16.mxu0 %v3842_v29  ;;  %2367 = vmatprep.subr.bf16.mxu1 %v3845_v30 }
 0x25c   : > { %2327 = vmatpush1.bf16.msra.mxu0 %v3860_v35  ;;  %2368 = vmatpush1.bf16.msra.mxu1 %v3864_v36 }
 0x25d   : > { %2328 = vmatprep.subr.bf16.mxu0 %v3866_v37  ;;  %2369 = vmatprep.subr.bf16.mxu1 %v3869_v38 }
 0x260   : > { %2329 = vmatpush1.bf16.msra.mxu0 %v3884_v43  ;;  %2370 = vmatpush1.bf16.msra.mxu1 %v3888_v44 }
 0x261   : > { %2330 = vmatprep.subr.bf16.mxu0 %v3890_v45  ;;  %2371 = vmatprep.subr.bf16.mxu1 %v3895_v46 }
 0x264   : > { %2331 = vmatpush1.bf16.msra.mxu0 %v5238_v53  ;;  %2372 = vmatpush1.bf16.msra.mxu1 %v5239_v54 }
 0x265   : > { %2332 = vmatprep.subr.bf16.mxu0 %v5312_v24  ;;  %2373 = vmatprep.subr.bf16.mxu1 %v5313_v62  ;;  %v5324_v24 = vld [vmem:[#allocation17_spill] sm:$0xff] }
 0x268   : > { %2333 = vmatpush1.bf16.msra.mxu0 %v5314_v6  ;;  %2374 = vmatpush1.bf16.msra.mxu1 %v5315_v18  ;;  %v5322_v6 = vld [vmem:[#allocation15_spill] sm:$0xff]  ;;  %v5323_v18 = vld [vmem:[#allocation16_spill] sm:$0xff] }
 0x269   : > { %2334 = vmatprep.subr.bf16.mxu0 %v5316_v59  ;;  %2375 = vmatprep.subr.bf16.mxu1 %v5317_v4 }
 0x26c   : > { %2335 = vmatpush1.bf16.msra.mxu0 %v5318_v60  ;;  %2376 = vmatpush1.bf16.msra.mxu1 %v5319_v51 }
 0x26d   : > { %2402 = vmatprep.subr.bf16.mxu0 %v5320_v61  ;;  %2443 = vmatprep.subr.bf16.mxu1 %v5321_v52 }
 0x26f   : > { %v1829_v23 = vpop.f32.mrf.mxu0  ;;  %2353 = vmatmul.mubr.bf16.vlgmr.msra.gmra.mxu0 %v2319_v25  ;;  %v1870_v62 = vpop.f32.mrf.mxu1  ;;  %2394 = vmatmul.mubr.bf16.vlgmr.msra.gmra.mxu1 %v2319_v25 }
 0x270   : > { %2403 = vmatpush1.bf16.msra.mxu0 %v5322_v6  ;;  %2444 = vmatpush1.bf16.msra.mxu1 %v5323_v18 }
 0x271   : > { %v1831_v59 = vpop.f32.mrf.mxu0  ;;  %2404 = vmatprep.subr.bf16.mxu0 %v5324_v24  ;;  %v1872_v60 = vpop.f32.mrf.mxu1  ;;  %2445 = vmatprep.subr.bf16.mxu1 %v4004_v26 }
 0x272   : > { %v1959_v4 = vmax.f32 %v1829_v23, %v1831_v59  ;;  %2434 = vmatprep.mubr.bf16.mxu0 %v5223_v13  ;;  %2475 = vmatprep.mubr.bf16.mxu1 %v5223_v13 }
 0x273   : > { %v1833_v61 = vpop.f32.mrf.mxu0  ;;  %v1874_v51 = vpop.f32.mrf.mxu1 }
 0x274   : > { %v1960_v52 = vmax.f32 %v1959_v4, %v1870_v62  ;;  %2405 = vmatpush1.bf16.msra.mxu0 %v4021_v39  ;;  %2446 = vmatpush1.bf16.msra.mxu1 %v4025_v40 }
 0x275   : > { %v1834_v6 = vpop.f32.mrf.mxu0  ;;  %2406 = vmatprep.subr.bf16.mxu0 %v4027_v41  ;;  %v1875_v24 = vpop.f32.mrf.mxu1  ;;  %2447 = vmatprep.subr.bf16.mxu1 %v5232_v12 }
 0x276   : > { %v1961_v18 = vmax.f32 %v1960_v52, %v1872_v60 }
 0x278   : > { %2407 = vmatpush1.bf16.msra.mxu0 %v5233_v7  ;;  %2448 = vmatpush1.bf16.msra.mxu1 %v4051_v56 }
 0x279   : > { %2408 = vmatprep.subr.bf16.mxu0 %v4053_v57  ;;  %2449 = vmatprep.subr.bf16.mxu1 %v4056_v58 }
 0x27c   : > { %2409 = vmatpush1.bf16.msra.mxu0 %v5224_v63  ;;  %2450 = vmatpush1.bf16.msra.mxu1 %v5225_v0 }
 0x27d   : > { %2410 = vmatprep.subr.bf16.mxu0 %v5226_v1  ;;  %2451 = vmatprep.subr.bf16.mxu1 %v5227_v31 }
 0x280   : > { %2411 = vmatpush1.bf16.msra.mxu0 %v5228_v32  ;;  %2452 = vmatpush1.bf16.msra.mxu1 %v5229_v33 }
 0x281   : > { %2412 = vmatprep.subr.bf16.mxu0 %v5230_v42  ;;  %2453 = vmatprep.subr.bf16.mxu1 %v5231_v55 }
 0x284   : > { %2413 = vmatpush1.bf16.msra.mxu0 %v4119_v2  ;;  %2454 = vmatpush1.bf16.msra.mxu1 %v4123_v17 }
 0x285   : > { %2414 = vmatprep.subr.bf16.mxu0 %v4125_v16  ;;  %2455 = vmatprep.subr.bf16.mxu1 %v4128_v14 }
 0x288   : > { %2415 = vmatpush1.bf16.msra.mxu0 %v4143_v34  ;;  %2456 = vmatpush1.bf16.msra.mxu1 %v4147_v50 }
 0x289   : > { %2416 = vmatprep.subr.bf16.mxu0 %v4149_v49  ;;  %2457 = vmatprep.subr.bf16.mxu1 %v4152_v48 }
 0x28c   : > { %2417 = vmatpush1.bf16.msra.mxu0 %v4155_v47  ;;  %2458 = vmatpush1.bf16.msra.mxu1 %v4159_v8 }
 0x28d   : > { %2495 = vmatprep.subr.bf16.mxu0 %v3768_v3  ;;  %2536 = vmatprep.subr.bf16.mxu1 %v3783_v9 }
 0x28f   : > { %v1911_v52 = vpop.f32.mrf.mxu0  ;;  %2435 = vmatmul.mubr.bf16.vlgmr.msra.gmra.mxu0 %v2319_v25  ;;  %v1952_v61 = vpop.f32.mrf.mxu1  ;;  %2476 = vmatmul.mubr.bf16.vlgmr.msra.gmra.mxu1 %v2319_v25  ;;  %v5335_v25 = vld [vmem:[#allocation13_spill] sm:$0xff] }
 0x290   : > { %v1962_v23 = vmax.f32 %v1961_v18, %v1911_v52  ;;  %2496 = vmatpush1.bf16.msra.mxu0 %v3773_v5  ;;  %2537 = vmatpush1.bf16.msra.mxu1 %v3785_v10  ;;  %v5327_v52 = vld [vmem:[#allocation5_spill] sm:$0xff] }
 0x291   : > { %v1913_v24 = vpop.f32.mrf.mxu0  ;;  %2497 = vmatprep.subr.bf16.mxu0 %v3787_v11  ;;  %v4826_v6 = vpop.f32.mrf.mxu1  ;;  %2538 = vmatprep.subr.bf16.mxu1 %v3799_v15 }
 0x292   : > { %v1963_v62 = vmax.f32 %v1962_v23, %v1913_v24  ;;  %5325 = vst [vmem:[#allocation28_spill] sm:$0xff] %v4826_v6  ;;  %2527 = vmatprep.mubr.bf16.mxu0 %v5223_v13  ;;  %2568 = vmatprep.mubr.bf16.mxu1 %v5223_v13  ;;  %v5328_v23 = vld [vmem:[#allocation6_spill] sm:$0xff]  ;;  %v5330_v24 = vld [vmem:[#allocation8_spill] sm:$0xff] }
 0x293   : > { %v1915_v59 = vpop.f32.mrf.mxu0  ;;  %v1956_v4 = vpop.f32.mrf.mxu1  ;;  %v5336_v6 = vld [vmem:[#allocation14_spill] sm:$0xff] }
 0x294   : > { %v4831_v18 = vmax.f32 %v1963_v62, %v1952_v61  ;;  %2498 = vmatpush1.bf16.msra.mxu0 %v3812_v19  ;;  %2539 = vmatpush1.bf16.msra.mxu1 %v3816_v20  ;;  %v5329_v61 = vld [vmem:[#allocation7_spill] sm:$0xff]  ;;  %v5331_v62 = vld [vmem:[#allocation9_spill] sm:$0xff]  ;;  %v5332_v59 = vld [vmem:[#allocation10_spill] sm:$0xff] }
 0x295   : > { %v1916_v60 = vpop.f32.mrf.mxu0  ;;  %2499 = vmatprep.subr.bf16.mxu0 %v3818_v21  ;;  %v1957_v51 = vpop.f32.mrf.mxu1  ;;  %2540 = vmatprep.subr.bf16.mxu1 %v3821_v22  ;;  %v5333_v4 = vld [vmem:[#allocation11_spill] sm:$0xff] }
 0x296   : > { %5326 = vst [vmem:[#allocation29_spill] sm:$0xff] %v4831_v18  ;;  %v2494_v60 = vld [vmem:[%s3972_s29 + $0x28] sm:$0xf] }
 0x297   : > { %v5334_v51 = vld [vmem:[#allocation12_spill] sm:$0xff] }
 0x298   : > { %2500 = vmatpush1.bf16.msra.mxu0 %v3836_v27  ;;  %2541 = vmatpush1.bf16.msra.mxu1 %v3840_v28 }
 0x299   : > { %2501 = vmatprep.subr.bf16.mxu0 %v3842_v29  ;;  %2542 = vmatprep.subr.bf16.mxu1 %v3845_v30 }
 0x29c   : > { %2502 = vmatpush1.bf16.msra.mxu0 %v3860_v35  ;;  %2543 = vmatpush1.bf16.msra.mxu1 %v3864_v36 }
 0x29d   : > { %2503 = vmatprep.subr.bf16.mxu0 %v3866_v37  ;;  %2544 = vmatprep.subr.bf16.mxu1 %v3869_v38 }
 0x2a0   : > { %2504 = vmatpush1.bf16.msra.mxu0 %v3884_v43  ;;  %2545 = vmatpush1.bf16.msra.mxu1 %v3888_v44 }
 0x2a1   : > { %2505 = vmatprep.subr.bf16.mxu0 %v3890_v45  ;;  %2546 = vmatprep.subr.bf16.mxu1 %v3895_v46 }
 0x2a4   : > { %2506 = vmatpush1.bf16.msra.mxu0 %v5238_v53  ;;  %2547 = vmatpush1.bf16.msra.mxu1 %v5239_v54 }
 0x2a5   : > { %2507 = vmatprep.subr.bf16.mxu0 %v5327_v52  ;;  %2548 = vmatprep.subr.bf16.mxu1 %v5328_v23  ;;  %v5339_v52 = vld [vmem:[#allocation17_spill] sm:$0xff] }
 0x2a8   : > { %2508 = vmatpush1.bf16.msra.mxu0 %v5329_v61  ;;  %2549 = vmatpush1.bf16.msra.mxu1 %v5330_v24  ;;  %v5337_v61 = vld [vmem:[#allocation15_spill] sm:$0xff]  ;;  %v5338_v24 = vld [vmem:[#allocation16_spill] sm:$0xff] }
 0x2a9   : > { %2509 = vmatprep.subr.bf16.mxu0 %v5331_v62  ;;  %2550 = vmatprep.subr.bf16.mxu1 %v5332_v59 }
 0x2ac   : > { %2510 = vmatpush1.bf16.msra.mxu0 %v5333_v4  ;;  %2551 = vmatpush1.bf16.msra.mxu1 %v5334_v51 }
 0x2ad   : > { %2577 = vmatprep.subr.bf16.mxu0 %v5335_v25  ;;  %2618 = vmatprep.subr.bf16.mxu1 %v5336_v6 }
 0x2af   : > { %v2004_v18 = vpop.f32.mrf.mxu0  ;;  %2528 = vmatmul.mubr.bf16.vlgmr.msra.gmra.mxu0 %v2494_v60  ;;  %v2045_v23 = vpop.f32.mrf.mxu1  ;;  %2569 = vmatmul.mubr.bf16.vlgmr.msra.gmra.mxu1 %v2494_v60 }
 0x2b0   : > { %2578 = vmatpush1.bf16.msra.mxu0 %v5337_v61  ;;  %2619 = vmatpush1.bf16.msra.mxu1 %v5338_v24 }
 0x2b1   : > { %v2006_v62 = vpop.f32.mrf.mxu0  ;;  %2579 = vmatprep.subr.bf16.mxu0 %v5339_v52  ;;  %v2047_v4 = vpop.f32.mrf.mxu1  ;;  %2620 = vmatprep.subr.bf16.mxu1 %v4004_v26 }
 0x2b2   : > { %v2134_v59 = vmax.f32 %v2004_v18, %v2006_v62  ;;  %2609 = vmatprep.mubr.bf16.mxu0 %v5223_v13  ;;  %2650 = vmatprep.mubr.bf16.mxu1 %v5223_v13 }
 0x2b3   : > { %v2008_v25 = vpop.f32.mrf.mxu0  ;;  %v2049_v51 = vpop.f32.mrf.mxu1 }
 0x2b4   : > { %v2135_v6 = vmax.f32 %v2134_v59, %v2045_v23  ;;  %2580 = vmatpush1.bf16.msra.mxu0 %v4021_v39  ;;  %2621 = vmatpush1.bf16.msra.mxu1 %v4025_v40  ;;  %v400_v51 = vld [vmem:[%s5127_s3 + $0x18] sm:$0xff] }
 0x2b5   : > { %v2009_v61 = vpop.f32.mrf.mxu0  ;;  %2581 = vmatprep.subr.bf16.mxu0 %v4027_v41  ;;  %v2050_v52 = vpop.f32.mrf.mxu1  ;;  %2622 = vmatprep.subr.bf16.mxu1 %v5232_v12 }
 0x2b6   : > { %v2136_v24 = vmax.f32 %v2135_v6, %v2047_v4 }
 0x2b8   : > { %2582 = vmatpush1.bf16.msra.mxu0 %v5233_v7  ;;  %2623 = vmatpush1.bf16.msra.mxu1 %v4051_v56 }
 0x2b9   : > { %2583 = vmatprep.subr.bf16.mxu0 %v4053_v57  ;;  %2624 = vmatprep.subr.bf16.mxu1 %v4056_v58 }
 0x2bc   : > { %2584 = vmatpush1.bf16.msra.mxu0 %v5224_v63  ;;  %2625 = vmatpush1.bf16.msra.mxu1 %v5225_v0 }
 0x2bd   : > { %2585 = vmatprep.subr.bf16.mxu0 %v5226_v1  ;;  %2626 = vmatprep.subr.bf16.mxu1 %v5227_v31 }
 0x2c0   : > { %2586 = vmatpush1.bf16.msra.mxu0 %v5228_v32  ;;  %2627 = vmatpush1.bf16.msra.mxu1 %v5229_v33 }
 0x2c1   : > { %2587 = vmatprep.subr.bf16.mxu0 %v5230_v42  ;;  %2628 = vmatprep.subr.bf16.mxu1 %v5231_v55 }
 0x2c4   : > { %2588 = vmatpush1.bf16.msra.mxu0 %v4119_v2  ;;  %2629 = vmatpush1.bf16.msra.mxu1 %v4123_v17 }
 0x2c5   : > { %2589 = vmatprep.subr.bf16.mxu0 %v4125_v16  ;;  %2630 = vmatprep.subr.bf16.mxu1 %v4128_v14 }
 0x2c8   : > { %2590 = vmatpush1.bf16.msra.mxu0 %v4143_v34  ;;  %2631 = vmatpush1.bf16.msra.mxu1 %v4147_v50 }
 0x2c9   : > { %2591 = vmatprep.subr.bf16.mxu0 %v4149_v49  ;;  %2632 = vmatprep.subr.bf16.mxu1 %v4152_v48 }
 0x2cc   : > { %2592 = vmatpush1.bf16.msra.mxu0 %v4155_v47  ;;  %2633 = vmatpush1.bf16.msra.mxu1 %v4159_v8 }
 0x2cd   : > { %2670 = vmatprep.subr.bf16.mxu0 %v3768_v3  ;;  %2711 = vmatprep.subr.bf16.mxu1 %v3783_v9 }
 0x2cf   : > { %v2086_v6 = vpop.f32.mrf.mxu0  ;;  %2610 = vmatmul.mubr.bf16.vlgmr.msra.gmra.mxu0 %v2494_v60  ;;  %v2127_v25 = vpop.f32.mrf.mxu1  ;;  %2651 = vmatmul.mubr.bf16.vlgmr.msra.gmra.mxu1 %v2494_v60 }
 0x2d0   : > { %v2137_v18 = vmax.f32 %v2136_v24, %v2086_v6  ;;  %2671 = vmatpush1.bf16.msra.mxu0 %v3773_v5  ;;  %2712 = vmatpush1.bf16.msra.mxu1 %v3785_v10 }
 0x2d1   : > { %v2088_v52 = vpop.f32.mrf.mxu0  ;;  %2672 = vmatprep.subr.bf16.mxu0 %v3787_v11  ;;  %v4901_v61 = vpop.f32.mrf.mxu1  ;;  %2713 = vmatprep.subr.bf16.mxu1 %v3799_v15  ;;  %v5340_v15 = vld [vmem:[#allocation5_spill] sm:$0xff] }
 0x2d2   : > { %v2138_v23 = vmax.f32 %v2137_v18, %v2088_v52  ;;  %2702 = vmatprep.mubr.bf16.mxu0 %v5223_v13  ;;  %2743 = vmatprep.mubr.bf16.mxu1 %v5223_v13  ;;  %v399_v18 = vld [vmem:[%s5127_s3 + $0x10] sm:$0xff]  ;;  %v5355_v52 = vld [vmem:[#allocation23_spill] sm:$0xff] }
 0x2d3   : > { %v2090_v3 = vpop.f32.mrf.mxu0  ;;  %v2131_v24 = vpop.f32.mrf.mxu1 }
 0x2d4   : > { %v4906_v9 = vmax.f32 %v2138_v23, %v2127_v25  ;;  %2673 = vmatpush1.bf16.msra.mxu0 %v3812_v19  ;;  %2714 = vmatpush1.bf16.msra.mxu1 %v3816_v20  ;;  %v5341_v19 = vld [vmem:[#allocation6_spill] sm:$0xff]  ;;  %v5342_v20 = vld [vmem:[#allocation7_spill] sm:$0xff]  ;;  %v398_v25 = vld [vmem:[%s5127_s3 + $0x8] sm:$0xff] }
 0x2d5   : > { %v2091_v5 = vpop.f32.mrf.mxu0  ;;  %2674 = vmatprep.subr.bf16.mxu0 %v3818_v21  ;;  %v2132_v11 = vpop.f32.mrf.mxu1  ;;  %2715 = vmatprep.subr.bf16.mxu1 %v3821_v22  ;;  %v5343_v21 = vld [vmem:[#allocation8_spill] sm:$0xff]  ;;  %v5344_v22 = vld [vmem:[#allocation9_spill] sm:$0xff]  ;;  %v5356_v23 = vld [vmem:[#allocation22_spill] sm:$0xff] }
 0x2d6   : > { %v2140_v10 = vmax.f32 %v4906_v9, %v4901_v61  ;;  %v5357_v3 = vmax.f32 %v5355_v52, %v5356_v23  ;;  %v5358_v5 = vld [vmem:[#allocation25_spill] sm:$0xff]  ;;  %v5359_v11 = vld [vmem:[#allocation24_spill] sm:$0xff] }
 0x2d8   : > { %2675 = vmatpush1.bf16.msra.mxu0 %v3836_v27  ;;  %2716 = vmatpush1.bf16.msra.mxu1 %v3840_v28  ;;  %v5345_v27 = vld [vmem:[#allocation10_spill] sm:$0xff]  ;;  %v5346_v28 = vld [vmem:[#allocation11_spill] sm:$0xff] }
 0x2d9   : > { %2676 = vmatprep.subr.bf16.mxu0 %v3842_v29  ;;  %2717 = vmatprep.subr.bf16.mxu1 %v3845_v30  ;;  %v2669_v29 = vld [vmem:[%s3972_s29 + $0x2c] sm:$0xf] }
 0x2da   : > { %v5347_v30 = vld [vmem:[#allocation12_spill] sm:$0xff] }
 0x2dc   : > { %2677 = vmatpush1.bf16.msra.mxu0 %v3860_v35  ;;  %2718 = vmatpush1.bf16.msra.mxu1 %v3864_v36  ;;  %v5348_v35 = vld [vmem:[#allocation13_spill] sm:$0xff]  ;;  %v5349_v36 = vld [vmem:[#allocation14_spill] sm:$0xff] }
 0x2dd   : > { %2678 = vmatprep.subr.bf16.mxu0 %v3866_v37  ;;  %2719 = vmatprep.subr.bf16.mxu1 %v3869_v38 }
 0x2e0   : > { %2679 = vmatpush1.bf16.msra.mxu0 %v3884_v43  ;;  %2720 = vmatpush1.bf16.msra.mxu1 %v3888_v44  ;;  %v5350_v43 = vld [vmem:[#allocation15_spill] sm:$0xff]  ;;  %v5351_v44 = vld [vmem:[#allocation16_spill] sm:$0xff] }
 0x2e1   : > { %2680 = vmatprep.subr.bf16.mxu0 %v3890_v45  ;;  %2721 = vmatprep.subr.bf16.mxu1 %v3895_v46  ;;  %v5352_v46 = vld [vmem:[#allocation17_spill] sm:$0xff] }
 0x2e4   : > { %2681 = vmatpush1.bf16.msra.mxu0 %v5238_v53  ;;  %2722 = vmatpush1.bf16.msra.mxu1 %v5239_v54 }
 0x2e5   : > { %2682 = vmatprep.subr.bf16.mxu0 %v5340_v15  ;;  %2723 = vmatprep.subr.bf16.mxu1 %v5341_v19  ;;  %v5360_v15 = vmax.f32 %v5358_v5, %v5359_v11 }
 0x2e8   : > { %2683 = vmatpush1.bf16.msra.mxu0 %v5342_v20  ;;  %2724 = vmatpush1.bf16.msra.mxu1 %v5343_v21  ;;  %v397_v21 = vld [vmem:[%s5127_s3] sm:$0xff] }
 0x2e9   : > { %2684 = vmatprep.subr.bf16.mxu0 %v5344_v22  ;;  %2725 = vmatprep.subr.bf16.mxu1 %v5345_v27  ;;  %v5361_v27 = vld [vmem:[#allocation27_spill] sm:$0xff] }
 0x2ec   : > { %2685 = vmatpush1.bf16.msra.mxu0 %v5346_v28  ;;  %2726 = vmatpush1.bf16.msra.mxu1 %v5347_v30  ;;  %v5362_v28 = vld [vmem:[#allocation26_spill] sm:$0xff] }
 0x2ed   : > { %2752 = vmatprep.subr.bf16.mxu0 %v5348_v35  ;;  %2793 = vmatprep.subr.bf16.mxu1 %v5349_v36  ;;  %v5364_v36 = vld [vmem:[#allocation19_spill] sm:$0xff] }
 0x2ef   : > { %v4939_v37 = vpop.f32.mrf.mxu0  ;;  %2703 = vmatmul.mubr.bf16.vlgmr.msra.gmra.mxu0 %v2669_v29  ;;  %v4941_v38 = vpop.f32.mrf.mxu1  ;;  %2744 = vmatmul.mubr.bf16.vlgmr.msra.gmra.mxu1 %v2669_v29 }
 0x2f0   : > { %2753 = vmatpush1.bf16.msra.mxu0 %v5350_v43  ;;  %2794 = vmatpush1.bf16.msra.mxu1 %v5351_v44 }
 0x2f1   : > { %v4945_v45 = vpop.f32.mrf.mxu0  ;;  %2754 = vmatprep.subr.bf16.mxu0 %v5352_v46  ;;  %v4948_v53 = vpop.f32.mrf.mxu1  ;;  %2795 = vmatprep.subr.bf16.mxu1 %v4004_v26 }
 0x2f2   : > { %2784 = vmatprep.mubr.bf16.mxu0 %v5223_v13  ;;  %2825 = vmatprep.mubr.bf16.mxu1 %v5223_v13  ;;  %v405_v13 = vld [vmem:[%s5127_s3 + $0x40] sm:$0xff] }
 0x2f3   : > { %v2183_v54 = vpop.f32.mrf.mxu0  ;;  %v2224_v62 = vpop.f32.mrf.mxu1 }
 0x2f4   : > { %2755 = vmatpush1.bf16.msra.mxu0 %v4021_v39  ;;  %2796 = vmatpush1.bf16.msra.mxu1 %v4025_v40  ;;  %v4978_v39 = vld [vmem:[%s5126_s2] ss:$0 sm:$0xff]  ;;  %v412_v40 = vld [vmem:[%s5127_s3 + $0x78] sm:$0xff]  ;;  %v5367_v54 = vld [vmem:[#allocation4_spill] sm:$0xff] }
 0x2f5   : > { %v2184_v59 = vpop.f32.mrf.mxu0  ;;  %2756 = vmatprep.subr.bf16.mxu0 %v4027_v41  ;;  %v2225_v4 = vpop.f32.mrf.mxu1  ;;  %2797 = vmatprep.subr.bf16.mxu1 %v5232_v12  ;;  %v5354_v12 = vld [vmem:[#allocation21_spill] sm:$0xff]  ;;  %v1091_v24 = vadd.f32 %v4978_v39, %v5357_v3  ;;  %v1266_v19 = vadd.f32 %v4978_v39, %v5360_v15  ;;  %v5368_v62 = vld [vmem:[#allocation3_spill] sm:$0xff] }
 0x2f6   : > { %v5369_v59 = vmax.f32 %v5367_v54, %v5368_v62 }
 0x2f7   : > { %v1092_v22 = vmax.f32 %v1091_v24, 0.0  ;;  %v1267_v35 = vmax.f32 %v1266_v19, 0.0  ;;  %v414_v19 = vld [vmem:[%s5129_s5] sm:$0xff] }
 0x2f8   : > { %2757 = vmatpush1.bf16.msra.mxu0 %v5233_v7  ;;  %2798 = vmatpush1.bf16.msra.mxu1 %v4051_v56  ;;  %v5353_v7 = vld [vmem:[#allocation20_spill] sm:$0xff]  ;;  %v1791_v4 = vadd.f32 %v4978_v39, %v5369_v59 }
 0x2f9   : > { %2758 = vmatprep.subr.bf16.mxu0 %v4053_v57  ;;  %2799 = vmatprep.subr.bf16.mxu1 %v4056_v58  ;;  %v909_v26 = vmax.f32 %v5354_v12, %v5353_v7  ;;  %v410_v58 = vld [vmem:[%s5127_s3 + $0x68] sm:$0xff] }
 0x2fb   : > { %v916_v41 = vadd.f32 %v4978_v39, %v909_v26  ;;  %v5370_v26 = vld [vmem:[#allocation29_spill] sm:$0xff] }
 0x2fc   : > { %2759 = vmatpush1.bf16.msra.mxu0 %v5224_v63  ;;  %2800 = vmatpush1.bf16.msra.mxu1 %v5225_v0  ;;  %v2309_v63 = vmax.f32 %v4939_v37, %v4945_v45  ;;  %v404_v0 = vld [vmem:[%s5127_s3 + $0x38] sm:$0xff] }
 0x2fd   : > { %2760 = vmatprep.subr.bf16.mxu0 %v5226_v1  ;;  %2801 = vmatprep.subr.bf16.mxu1 %v5227_v31  ;;  %v917_v56 = vmax.f32 %v916_v41, 0.0  ;;  %v403_v1 = vld [vmem:[%s5127_s3 + $0x30] sm:$0xff]  ;;  %v5365_v37 = vld [vmem:[#allocation18_spill] sm:$0xff] }
 0x2fe   : > { %v2310_v31 = vmax.f32 %v2309_v63, %v4941_v38  ;;  %v5366_v38 = vmax.f32 %v5364_v36, %v5365_v37 }
 0x300   : > { %2761 = vmatpush1.bf16.msra.mxu0 %v5228_v32  ;;  %2802 = vmatpush1.bf16.msra.mxu1 %v5229_v33  ;;  %v402_v32 = vld [vmem:[%s5127_s3 + $0x28] sm:$0xff]  ;;  %v401_v33 = vld [vmem:[%s5127_s3 + $0x20] sm:$0xff]  ;;  %v2311_v60 = vmax.f32 %v2310_v31, %v4948_v53  ;;  %v1616_v43 = vadd.f32 %v4978_v39, %v5366_v38 }
 0x301   : > { %2762 = vmatprep.subr.bf16.mxu0 %v5230_v42  ;;  %2803 = vmatprep.subr.bf16.mxu1 %v5231_v55  ;;  %v411_v42 = vld [vmem:[%s5127_s3 + $0x70] sm:$0xff] }
 0x302   : > { %v1617_v12 = vmax.f32 %v1616_v43, 0.0 }
 0x304   : > { %2763 = vmatpush1.bf16.msra.mxu0 %v4119_v2  ;;  %2804 = vmatpush1.bf16.msra.mxu1 %v4123_v17  ;;  %v409_v17 = vld [vmem:[%s5127_s3 + $0x60] sm:$0xff] }
 0x305   : > { %2764 = vmatprep.subr.bf16.mxu0 %v4125_v16  ;;  %2805 = vmatprep.subr.bf16.mxu1 %v4128_v14 }
 0x308   : > { %2765 = vmatpush1.bf16.msra.mxu0 %v4143_v34  ;;  %2806 = vmatpush1.bf16.msra.mxu1 %v4147_v50  ;;  %v407_v34 = vld [vmem:[%s5127_s3 + $0x50] sm:$0xff] }
 0x309   : > { %2766 = vmatprep.subr.bf16.mxu0 %v4149_v49  ;;  %2807 = vmatprep.subr.bf16.mxu1 %v4152_v48  ;;  %v408_v49 = vld [vmem:[%s5127_s3 + $0x58] sm:$0xff] }
 0x30c   : > { %2767 = vmatpush1.bf16.msra.mxu0 %v4155_v47  ;;  %2808 = vmatpush1.bf16.msra.mxu1 %v4159_v8  ;;  %v406_v8 = vld [vmem:[%s5127_s3 + $0x48] sm:$0xff] }
 0x30d   : > { %3588 = vmatprep.subr.mxu0 %v412_v40  ;;  %3638 = vmatprep.subr.mxu1 %v414_v19 }
 0x30f   : > { %v2261_v55 = vpop.f32.mrf.mxu0  ;;  %2785 = vmatmul.mubr.bf16.vlgmr.msra.gmra.mxu0 %v2669_v29  ;;  %v4993_v57 = vpop.f32.mrf.mxu1  ;;  %2826 = vmatmul.mubr.bf16.vlgmr.msra.gmra.mxu1 %v2669_v29  ;;  %v5363_v29 = vmax.f32 %v5361_v27, %v5362_v28 }
 0x310   : > { %3589 = vmatpush3.msra.mxu0 %v412_v40  ;;  %3620 = vmatprep.mubr.f32.mxu0 %v917_v56  ;;  %v2312_v6 = vmax.f32 %v2311_v60, %v2261_v55  ;;  %v5371_v40 = vld [vmem:[#allocation28_spill] sm:$0xff] }
 0x311   : > { %v2263_v14 = vpop.f32.mrf.mxu0  ;;  %3590 = vmatprep.subr.mxu0 %v411_v42  ;;  %v4998_v16 = vpop.f32.mrf.mxu1  ;;  %v1441_v30 = vadd.f32 %v4978_v39, %v5363_v29  ;;  %v5372_v41 = vmax.f32 %v5370_v26, %v5371_v40  ;;  %3639 = vmatpush3.msra.mxu1 %v414_v19 }
 0x312   : > { %3591 = vmatpush3.msra.mxu0 %v411_v42  ;;  %v2313_v20 = vmax.f32 %v2312_v6, %v2263_v14  ;;  %v1792_v14 = vmax.f32 %v1791_v4, 0.0 }
 0x313   : > { %v2265_v47 = vpop.f32.mrf.mxu0  ;;  %3592 = vmatprep.subr.mxu0 %v410_v58  ;;  %v2306_v48 = vpop.f32.mrf.mxu1  ;;  %v1442_v53 = vmax.f32 %v1441_v30, 0.0  ;;  %v1966_v42 = vadd.f32 %v4978_v39, %v5372_v41 }
 0x314   : > { %3593 = vmatpush3.msra.mxu0 %v410_v58  ;;  %v2314_v44 = vmax.f32 %v2313_v20, %v4993_v57 }
 0x315   : > { %v2266_v50 = vpop.f32.mrf.mxu0  ;;  %3594 = vmatprep.subr.mxu0 %v409_v17  ;;  %v2307_v2 = vpop.f32.mrf.mxu1  ;;  %v1967_v48 = vmax.f32 %v1966_v42, 0.0 }
 0x316   : > { %3595 = vmatpush3.msra.mxu0 %v409_v17  ;;  %v2315_v55 = vmax.f32 %v2314_v44, %v4998_v16  ;;  %v2141_v17 = vadd.f32 %v4978_v39, %v2140_v10 }
 0x317   : > { %3596 = vmatprep.subr.mxu0 %v408_v49 }
 0x318   : > { %3597 = vmatpush3.msra.mxu0 %v408_v49  ;;  %v2316_v49 = vadd.f32 %v4978_v39, %v2315_v55  ;;  %v2142_v2 = vmax.f32 %v2141_v17, 0.0 }
 0x319   : > { %3598 = vmatprep.subr.mxu0 %v407_v34 }
 0x31a   : > { %3599 = vmatpush3.msra.mxu0 %v407_v34  ;;  %v2317_v16 = vmax.f32 %v2316_v49, 0.0 }
 0x31b   : > { %3600 = vmatprep.subr.mxu0 %v406_v8 }
 0x31c   : > { %3601 = vmatpush3.msra.mxu0 %v406_v8 }
 0x31d   : > { %3602 = vmatprep.subr.mxu0 %v405_v13 }
 0x31e   : > { %3603 = vmatpush3.msra.mxu0 %v405_v13 }
 0x31f   : > { %3604 = vmatprep.subr.mxu0 %v404_v0 }
 0x320   : > { %3605 = vmatpush3.msra.mxu0 %v404_v0 }
 0x321   : > { %3606 = vmatprep.subr.mxu0 %v403_v1 }
 0x322   : > { %3607 = vmatpush3.msra.mxu0 %v403_v1 }
 0x323   : > { %3608 = vmatprep.subr.mxu0 %v402_v32 }
 0x324   : > { %3609 = vmatpush3.msra.mxu0 %v402_v32 }
 0x325   : > { %3610 = vmatprep.subr.mxu0 %v401_v33 }
 0x326   : > { %3611 = vmatpush3.msra.mxu0 %v401_v33 }
 0x327   : > { %3612 = vmatprep.subr.mxu0 %v400_v51 }
 0x328   : > { %3613 = vmatpush3.msra.mxu0 %v400_v51 }
 0x329   : > { %3614 = vmatprep.subr.mxu0 %v399_v18 }
 0x32a   : > { %3615 = vmatpush3.msra.mxu0 %v399_v18 }
 0x32b   : > { %3616 = vmatprep.subr.mxu0 %v398_v25 }
 0x32c   : > { %3617 = vmatpush3.msra.mxu0 %v398_v25 }
 0x32d   : > { %3618 = vmatprep.subr.mxu0 %v397_v21 }
 0x32e   : > { %3619 = vmatpush3.msra.mxu0 %v397_v21 }
 0x32f   : > { %v2354_v45 = vpop.f32.mrf.mxu0  ;;  %3621 = vmatmul.mubr.f32.vlgmr.msra.gmra.mxu0 %v1092_v22  ;;  %v2395_v46 = vpop.f32.mrf.mxu1 }
 0x330   : > { %3623 = vmatprep.mubr.f32.mxu0 %v1267_v35 }
 0x331   : > { %v2356_v7 = vpop.f32.mrf.mxu0  ;;  %v2397_v56 = vpop.f32.mrf.mxu1 }
 0x332   : > { %v2484_v34 = vmax.f32 %v2354_v45, %v2356_v7 }
 0x333   : > { %v2358_v57 = vpop.f32.mrf.mxu0  ;;  %3624 = vmatmul.mubr.f32.gmra.mxu0 %v1442_v53  ;;  %v2399_v58 = vpop.f32.mrf.mxu1 }
 0x334   : > { %3626 = vmatprep.mubr.f32.mxu0 %v1617_v12  ;;  %v2485_v8 = vmax.f32 %v2484_v34, %v2395_v46 }
 0x335   : > { %v2359_v47 = vpop.f32.mrf.mxu0  ;;  %v2400_v50 = vpop.f32.mrf.mxu1 }
 0x336   : > { %v2486_v13 = vmax.f32 %v2485_v8, %v2397_v56 }
 0x337   : > { %3627 = vmatmul.mubr.f32.gmra.mxu0 %v1792_v14 }
 0x338   : > { %3629 = vmatprep.mubr.f32.mxu0 %v1967_v48 }
 0x33b   : > { %3630 = vmatmul.mubr.f32.gmra.mxu0 %v2142_v2 }
 0x33c   : > { %3632 = vmatprep.mubr.f32.mxu0 %v2317_v16 }
 0x34f   : > { %v2436_v63 = vpop.f32.mrf.mxu0  ;;  %v2477_v1 = vpop.f32.mrf.mxu1 }
 0x350   : > { %v2487_v0 = vmax.f32 %v2486_v13, %v2436_v63 }
 0x351   : > { %v2438_v61 = vpop.f32.mrf.mxu0  ;;  %v2479_v10 = vpop.f32.mrf.mxu1 }
 0x352   : > { %v2488_v9 = vmax.f32 %v2487_v0, %v2438_v61 }
 0x353   : > { %v2440_v31 = vpop.f32.mrf.mxu0  ;;  %v2481_v33 = vpop.f32.mrf.mxu1 }
 0x354   : > { %v2489_v32 = vmax.f32 %v2488_v9, %v2477_v1  ;;  %v3505_v1 = vld [vmem:[%s5128_s4] ss:$0 sm:$0xff] }
 0x355   : > { %v2441_v60 = vpop.f32.mrf.mxu0  ;;  %v2482_v6 = vpop.f32.mrf.mxu1 }
 0x356   : > { %v2490_v51 = vmax.f32 %v2489_v32, %v2479_v10 }
 0x358   : > { %v2491_v18 = vadd.f32 %v4978_v39, %v2490_v51 }
 0x35a   : > { %v2492_v25 = vmax.f32 %v2491_v18, 0.0 }
 0x35c   : > { %3633 = vmatmul.mubr.f32.gmra.mxu0 %v2492_v25 }
 0x36f   : > { %v2529_v52 = vpop.f32.mrf.mxu0  ;;  %v2570_v23 = vpop.f32.mrf.mxu1 }
 0x371   : > { %v2531_v3 = vpop.f32.mrf.mxu0  ;;  %v2572_v24 = vpop.f32.mrf.mxu1 }
 0x372   : > { %v2659_v21 = vmax.f32 %v2529_v52, %v2531_v3 }
 0x373   : > { %v2533_v5 = vpop.f32.mrf.mxu0  ;;  %v2574_v11 = vpop.f32.mrf.mxu1 }
 0x374   : > { %v2660_v22 = vmax.f32 %v2659_v21, %v2570_v23 }
 0x375   : > { %v2534_v15 = vpop.f32.mrf.mxu0  ;;  %v2575_v20 = vpop.f32.mrf.mxu1 }
 0x376   : > { %v2661_v27 = vmax.f32 %v2660_v22, %v2572_v24 }
 0x38f   : > { %v2611_v28 = vpop.f32.mrf.mxu0  ;;  %v2652_v30 = vpop.f32.mrf.mxu1 }
 0x390   : > { %v2662_v29 = vmax.f32 %v2661_v27, %v2611_v28 }
 0x391   : > { %v2613_v35 = vpop.f32.mrf.mxu0  ;;  %v2654_v37 = vpop.f32.mrf.mxu1 }
 0x392   : > { %v2663_v36 = vmax.f32 %v2662_v29, %v2613_v35 }
 0x393   : > { %v2615_v38 = vpop.f32.mrf.mxu0  ;;  %v2656_v44 = vpop.f32.mrf.mxu1 }
 0x394   : > { %v2664_v43 = vmax.f32 %v2663_v36, %v2652_v30  ;;  %v416_v38 = vld [vmem:[%s5131_s7] sm:$0xff] }
 0x395   : > { %v2616_v45 = vpop.f32.mrf.mxu0  ;;  %v2657_v53 = vpop.f32.mrf.mxu1  ;;  %3658 = vmatprep.subr.mxu1 %v416_v38 }
 0x396   : > { %v2665_v46 = vmax.f32 %v2664_v43, %v2654_v37 }
 0x398   : > { %v2666_v54 = vadd.f32 %v4978_v39, %v2665_v46 }
 0x39a   : > { %v2667_v62 = vmax.f32 %v2666_v54, 0.0 }
 0x39c   : > { %3635 = vmatprep.mubr.f32.mxu0 %v2667_v62  ;;  %v3506_v62 = vld [vmem:[%s5130_s6] ss:$0 sm:$0xff] }
 0x3af   : > { %v2704_v59 = vpop.f32.mrf.mxu0  ;;  %v2745_v4 = vpop.f32.mrf.mxu1 }
 0x3b1   : > { %v2706_v7 = vpop.f32.mrf.mxu0  ;;  %v2747_v12 = vpop.f32.mrf.mxu1 }
 0x3b2   : > { %v2834_v55 = vmax.f32 %v2704_v59, %v2706_v7 }
 0x3b3   : > { %v2708_v26 = vpop.f32.mrf.mxu0  ;;  %v2749_v40 = vpop.f32.mrf.mxu1 }
 0x3b4   : > { %v2835_v56 = vmax.f32 %v2834_v55, %v2745_v4 }
 0x3b5   : > { %v2709_v41 = vpop.f32.mrf.mxu0  ;;  %v2750_v42 = vpop.f32.mrf.mxu1 }
 0x3b6   : > { %v2836_v57 = vmax.f32 %v2835_v56, %v2747_v12 }
 0x3cf   : > { %v2786_v58 = vpop.f32.mrf.mxu0  ;;  %v2827_v17 = vpop.f32.mrf.mxu1 }
 0x3d0   : > { %v2837_v14 = vmax.f32 %v2836_v57, %v2786_v58 }
 0x3d1   : > { %v2788_v47 = vpop.f32.mrf.mxu0  ;;  %v2829_v49 = vpop.f32.mrf.mxu1 }
 0x3d2   : > { %v2838_v48 = vmax.f32 %v2837_v14, %v2788_v47 }
 0x3d3   : > { %v2790_v50 = vpop.f32.mrf.mxu0  ;;  %v2831_v16 = vpop.f32.mrf.mxu1 }
 0x3d4   : > { %v2839_v2 = vmax.f32 %v2838_v48, %v2827_v17 }
 0x3d5   : > { %v2791_v34 = vpop.f32.mrf.mxu0  ;;  %v2832_v13 = vpop.f32.mrf.mxu1 }
 0x3d6   : > { %v2840_v8 = vmax.f32 %v2839_v2, %v2829_v49 }
 0x3d8   : > { %v2841_v63 = vadd.f32 %v4978_v39, %v2840_v8 }
 0x3da   : > { %v2842_v0 = vmax.f32 %v2841_v63, 0.0 }
 0x3dc   : > { %3636 = vmatmul.mubr.f32.gmra.mxu0 %v2842_v0 }
 0x3ef   : > { %v3622_v61 = vpop.f32.mrf.mxu0 }
 0x3f0   : > { %v2934_v9 = vadd.f32 %v3622_v61, %v3505_v1 }
 0x3f1   : > { %v2928_v10 = vpop.f32.mrf.mxu0 }
 0x3f2   : > { %v2929_v31 = vadd.f32 %v3505_v1, %v2928_v10  ;;  %v2988_v60 = vmax.f32 %v2934_v9, 0.0 }
 0x3f3   : > { %v3625_v32 = vpop.f32.mrf.mxu0 }
 0x3f4   : > { %v2987_v33 = vmax.f32 %v2929_v31, 0.0  ;;  %v2944_v51 = vadd.f32 %v3625_v32, %v3505_v1 }
 0x3f5   : > { %v2938_v6 = vpop.f32.mrf.mxu0 }
 0x3f6   : > { %v2939_v18 = vadd.f32 %v3505_v1, %v2938_v6  ;;  %3640 = vmatprep.mubr.msk.f32.mxu1 %vm3005_vm0, %v2987_v33  ;;  %v2990_v52 = vmax.f32 %v2944_v51, 0.0 }
 0x3f7   : > { %v3628_v39 = vpop.f32.mrf.mxu0  ;;  %3641 = vmatmul.mubr.msk.f32.vlgmr.msra.gmra.mxu1 %vm3005_vm0, %v2988_v60 }
 0x3f8   : > { %v2989_v25 = vmax.f32 %v2939_v18, 0.0  ;;  %v2954_v23 = vadd.f32 %v3628_v39, %v3505_v1  ;;  %3659 = vmatpush3.msra.mxu1 %v416_v38  ;;  %v3519_v39 = vld [vmem:[%s5132_s8] ss:$0 sm:$0xff] }
 0x3f9   : > { %v2948_v3 = vpop.f32.mrf.mxu0 }
 0x3fa   : > { %v2949_v24 = vadd.f32 %v3505_v1, %v2948_v3  ;;  %3643 = vmatprep.mubr.msk.f32.mxu1 %vm3005_vm0, %v2989_v25  ;;  %v2992_v15 = vmax.f32 %v2954_v23, 0.0 }
 0x3fb   : > { %v3631_v5 = vpop.f32.mrf.mxu0  ;;  %3644 = vmatmul.mubr.msk.f32.gmra.mxu1 %vm3005_vm0, %v2990_v52 }
 0x3fc   : > { %v2991_v11 = vmax.f32 %v2949_v24, 0.0  ;;  %v2964_v19 = vadd.f32 %v3631_v5, %v3505_v1 }
 0x3fd   : > { %v2958_v20 = vpop.f32.mrf.mxu0 }
 0x3fe   : > { %v2959_v21 = vadd.f32 %v3505_v1, %v2958_v20  ;;  %3646 = vmatprep.mubr.msk.f32.mxu1 %vm3005_vm0, %v2991_v11  ;;  %v2994_v27 = vmax.f32 %v2964_v19, 0.0 }
 0x3ff   : > { %3647 = vmatmul.mubr.msk.f32.gmra.mxu1 %vm3005_vm0, %v2992_v15 }
 0x400   : > { %v2993_v22 = vmax.f32 %v2959_v21, 0.0 }
 0x402   : > { %3649 = vmatprep.mubr.msk.f32.mxu1 %vm3005_vm0, %v2993_v22 }
 0x403   : > { %3650 = vmatmul.mubr.msk.f32.gmra.mxu1 %vm3005_vm0, %v2994_v27 }
 0x41c   : > { %v3634_v28 = vpop.f32.mrf.mxu0 }
 0x41d   : > { %v2974_v29 = vadd.f32 %v3634_v28, %v3505_v1 }
 0x41e   : > { %v2968_v30 = vpop.f32.mrf.mxu0 }
 0x41f   : > { %v2969_v35 = vadd.f32 %v3505_v1, %v2968_v30  ;;  %v2996_v37 = vmax.f32 %v2974_v29, 0.0 }
 0x421   : > { %v2995_v36 = vmax.f32 %v2969_v35, 0.0 }
 0x423   : > { %3652 = vmatprep.mubr.msk.f32.mxu1 %vm3005_vm0, %v2995_v36 }
 0x424   : > { %3653 = vmatmul.mubr.msk.f32.gmra.mxu1 %vm3005_vm0, %v2996_v37 }
 0x49c   : > { %v3637_v43 = vpop.f32.mrf.mxu0 }
 0x49d   : > { %v2984_v44 = vadd.f32 %v3637_v43, %v3505_v1 }
 0x49e   : > { %v2978_v45 = vpop.f32.mrf.mxu0 }
 0x49f   : > { %v2979_v46 = vadd.f32 %v3505_v1, %v2978_v45  ;;  %v2998_v54 = vmax.f32 %v2984_v44, 0.0 }
 0x4a1   : > { %v2997_v53 = vmax.f32 %v2979_v46, 0.0 }
 0x4a3   : > { %3655 = vmatprep.mubr.msk.f32.mxu1 %vm3005_vm0, %v2997_v53 }
 0x4a4   : > { %3656 = vmatmul.mubr.msk.f32.gmra.mxu1 %vm3005_vm0, %v2998_v54 }
 0x4b7   : > { %v3642_v59 = vpop.f32.mrf.mxu1 }
 0x4b8   : > { %v3114_v4 = vadd.f32 %v3642_v59, %v3506_v62 }
 0x4b9   : > { %v3108_v7 = vpop.f32.mrf.mxu1 }
 0x4ba   : > { %v3109_v12 = vadd.f32 %v3506_v62, %v3108_v7  ;;  %v3168_v41 = vmax.f32 %v3114_v4, 0.0 }
 0x4bb   : > { %v3645_v26 = vpop.f32.mrf.mxu1 }
 0x4bc   : > { %v3167_v40 = vmax.f32 %v3109_v12, 0.0  ;;  %v3124_v42 = vadd.f32 %v3645_v26, %v3506_v62 }
 0x4bd   : > { %v3118_v55 = vpop.f32.mrf.mxu1 }
 0x4be   : > { %v3119_v56 = vadd.f32 %v3506_v62, %v3118_v55  ;;  %3660 = vmatprep.mubr.msk.f32.mxu1 %vm3005_vm0, %v3167_v40  ;;  %v3170_v14 = vmax.f32 %v3124_v42, 0.0 }
 0x4bf   : > { %v3648_v57 = vpop.f32.mrf.mxu1  ;;  %3661 = vmatmul.mubr.msk.f32.vlgmr.msra.gmra.mxu1 %vm3005_vm0, %v3168_v41 }
 0x4c0   : > { %v3169_v58 = vmax.f32 %v3119_v56, 0.0  ;;  %v3134_v17 = vadd.f32 %v3648_v57, %v3506_v62 }
 0x4c1   : > { %v3128_v47 = vpop.f32.mrf.mxu1 }
 0x4c2   : > { %v3129_v48 = vadd.f32 %v3506_v62, %v3128_v47  ;;  %3663 = vmatprep.mubr.msk.f32.mxu1 %vm3005_vm0, %v3169_v58  ;;  %v3172_v2 = vmax.f32 %v3134_v17, 0.0 }
 0x4c3   : > { %v3651_v49 = vpop.f32.mrf.mxu1  ;;  %3664 = vmatmul.mubr.msk.f32.gmra.mxu1 %vm3005_vm0, %v3170_v14 }
 0x4c4   : > { %v3171_v50 = vmax.f32 %v3129_v48, 0.0  ;;  %v3144_v16 = vadd.f32 %v3651_v49, %v3506_v62 }
 0x4c5   : > { %v3138_v34 = vpop.f32.mrf.mxu1 }
 0x4c6   : > { %v3139_v8 = vadd.f32 %v3506_v62, %v3138_v34  ;;  %3666 = vmatprep.mubr.msk.f32.mxu1 %vm3005_vm0, %v3171_v50  ;;  %v3174_v63 = vmax.f32 %v3144_v16, 0.0 }
 0x4c7   : > { %3667 = vmatmul.mubr.msk.f32.gmra.mxu1 %vm3005_vm0, %v3172_v2 }
 0x4c8   : > { %v3173_v13 = vmax.f32 %v3139_v8, 0.0 }
 0x4ca   : > { %3669 = vmatprep.mubr.msk.f32.mxu1 %vm3005_vm0, %v3173_v13 }
 0x4cb   : > { %3670 = vmatmul.mubr.msk.f32.gmra.mxu1 %vm3005_vm0, %v3174_v63 }
 0x4e4   : > { %v3654_v0 = vpop.f32.mrf.mxu1 }
 0x4e5   : > { %v3154_v1 = vadd.f32 %v3654_v0, %v3506_v62 }
 0x4e6   : > { %v3148_v61 = vpop.f32.mrf.mxu1 }
 0x4e7   : > { %v3149_v9 = vadd.f32 %v3506_v62, %v3148_v61  ;;  %v3176_v31 = vmax.f32 %v3154_v1, 0.0 }
 0x4e9   : > { %v3175_v10 = vmax.f32 %v3149_v9, 0.0 }
 0x4eb   : > { %3672 = vmatprep.mubr.msk.f32.mxu1 %vm3005_vm0, %v3175_v10 }
 0x4ec   : > { %3673 = vmatmul.mubr.msk.f32.gmra.mxu1 %vm3005_vm0, %v3176_v31 }
 0x564   : > { %v3657_v32 = vpop.f32.mrf.mxu1 }
 0x565   : > { %v3164_v33 = vadd.f32 %v3657_v32, %v3506_v62 }
 0x566   : > { %v3158_v60 = vpop.f32.mrf.mxu1 }
 0x567   : > { %v3159_v51 = vadd.f32 %v3506_v62, %v3158_v60  ;;  %v3178_v18 = vmax.f32 %v3164_v33, 0.0 }
 0x569   : > { %v3177_v6 = vmax.f32 %v3159_v51, 0.0 }
 0x56b   : > { %3675 = vmatprep.mubr.msk.f32.mxu1 %vm3005_vm0, %v3177_v6 }
 0x56c   : > { %3676 = vmatmul.mubr.msk.f32.gmra.mxu1 %vm3005_vm0, %v3178_v18 }
 0x57f   : > { %v3662_v25 = vpop.f32.mrf.mxu1 }
 0x580   : > { %v3293_v52 = vadd.f32 %v3662_v25, %v3519_v39 }
 0x581   : > { %v3287_v23 = vpop.f32.mrf.mxu1 }
 0x582   : > { %v3288_v3 = vadd.f32 %v3519_v39, %v3287_v23  ;;  %v3347_v5 = vmax.f32 %v3293_v52, 0.0 }
 0x583   : > { %v3665_v24 = vpop.f32.mrf.mxu1 }
 0x584   : > { %v3346_v11 = vmax.f32 %v3288_v3, 0.0  ;;  %v3303_v20 = vadd.f32 %v3665_v24, %v3519_v39 }
 0x585   : > { %v3297_v15 = vpop.f32.mrf.mxu1 }
 0x586   : > { %v3358_v19 = vmax.f32 %v3346_v11, %v3347_v5  ;;  %v3298_v21 = vadd.f32 %v3519_v39, %v3297_v15  ;;  %v3349_v29 = vmax.f32 %v3303_v20, 0.0 }
 0x587   : > { %v3668_v22 = vpop.f32.mrf.mxu1 }
 0x588   : > { %v3348_v27 = vmax.f32 %v3298_v21, 0.0  ;;  %v3313_v35 = vadd.f32 %v3668_v22, %v3519_v39 }
 0x589   : > { %v3307_v28 = vpop.f32.mrf.mxu1 }
 0x58a   : > { %v3359_v30 = vmax.f32 %v3358_v19, %v3348_v27  ;;  %v3308_v36 = vadd.f32 %v3519_v39, %v3307_v28  ;;  %v3351_v45 = vmax.f32 %v3313_v35, 0.0 }
 0x58b   : > { %v3671_v37 = vpop.f32.mrf.mxu1 }
 0x58c   : > { %v3360_v38 = vmax.f32 %v3359_v30, %v3349_v29  ;;  %v3350_v43 = vmax.f32 %v3308_v36, 0.0  ;;  %v3323_v46 = vadd.f32 %v3671_v37, %v3519_v39 }
 0x58d   : > { %v3317_v44 = vpop.f32.mrf.mxu1 }
 0x58e   : > { %v3318_v53 = vadd.f32 %v3519_v39, %v3317_v44  ;;  %v3361_v54 = vmax.f32 %v3350_v43, %v3351_v45  ;;  %v3353_v59 = vmax.f32 %v3323_v46, 0.0 }
 0x590   : > { %v3352_v62 = vmax.f32 %v3318_v53, 0.0 }
 0x592   : > { %v3362_v4 = vmax.f32 %v3361_v54, %v3352_v62 }
 0x594   : > { %v3363_v7 = vmax.f32 %v3362_v4, %v3353_v59 }
 0x596   : > { %3368 = vrot.lane.b32.xlu0 %v3363_v7, %s3699_s18 }
 0x5ac   : > { %v3674_v12 = vpop.f32.mrf.mxu1 }
 0x5ad   : > { %v3333_v41 = vadd.f32 %v3674_v12, %v3519_v39 }
 0x5ae   : > { %v3327_v26 = vpop.f32.mrf.mxu1 }
 0x5af   : > { %v3328_v40 = vadd.f32 %v3519_v39, %v3327_v26  ;;  %v3355_v57 = vmax.f32 %v3333_v41, 0.0 }
 0x5b1   : > { %v3354_v55 = vmax.f32 %v3328_v40, 0.0 }
 0x5b3   : > { %v3364_v17 = vmax.f32 %v3354_v55, %v3355_v57 }
 0x608   : > { %v3369_v2 = vpop.permute.xlu0 %3368 }
 0x609   : > { %v3375_v16 = vsel %vm3005_vm0, %v3360_v38, %v3369_v2 }
 0x62c   : > { %v3677_v42 = vpop.f32.mrf.mxu1 }
 0x62d   : > { %v3343_v58 = vadd.f32 %v3677_v42, %v3519_v39 }
 0x62e   : > { %v3337_v56 = vpop.f32.mrf.mxu1 }
 0x62f   : > { %v3338_v14 = vadd.f32 %v3519_v39, %v3337_v56  ;;  %v3357_v48 = vmax.f32 %v3343_v58, 0.0 }
 0x631   : > { %v3356_v47 = vmax.f32 %v3338_v14, 0.0 }
 0x633   : > { %v3365_v49 = vmax.f32 %v3364_v17, %v3356_v47 }
 0x635   : > { %v3366_v50 = vmax.f32 %v3365_v49, %v3357_v48 }
 0x637   : > { %3372 = vrot.lane.b32.xlu0 %v3366_v50, %s3700_s19 }
 0x6a9   : > { %v3373_v34 = vpop.permute.xlu0 %3372 }
 0x6aa   : > { %v3377_v8 = vsel %vm3376_vm1, %v3375_v16, %v3373_v34 }
 0x6ab   : > { %3379 = vst.msk [vmem:[%s330_s23] sm:$0xff] %vm3378_vm2, %v3377_v8 }
 0x6ac PF: > { %s19_s30 = sadd.s32 1, %s3696_s30  }
 0x6ad   : > { %p16_p4 = scmp.ge.s32.totalorder %s19_s30, 4  }
 0x6af   :  { %18 = sbr.rel (!%p16_p4) target bundleno = 1 (0x1), region = 86 }

</bundles_post_ra>
